<compile_context>
chip_gen: v5e
topology: v5e:2x2
jax: 0.10.0
libtpu: 0.0.40
codegen_flags: <defaults>
</compile_context>

<pallas_src>
import functools

import numpy as np
import jax
import jax.numpy as jnp
from jax import lax
from jax.experimental import pallas as pl
from jax.experimental.pallas import tpu as pltpu


# ----------------------------- helpers --------------------------------------

def _shift_lanes(x, s):
    """y[:, i] = x[:, (i + s) % n] (circular left shift by s, s in [0, n))."""
    if s == 0:
        return x
    return jnp.concatenate([x[:, s:], x[:, :s]], axis=-1)


def _make_shift_masks(K, B, H, W):
    """(K*K, B*H*W) float32 validity masks for each conv tap (dy, dx)."""
    p = K // 2
    idx = np.arange(B * H * W)
    y = (idx // W) % H
    x = idx % W
    masks = []
    for dy in range(K):
        for dx in range(K):
            yy = y + dy - p
            xx = x + dx - p
            m = (yy >= 0) & (yy < H) & (xx >= 0) & (xx < W)
            masks.append(m)
    return jnp.asarray(np.stack(masks).astype(np.float32))


# ----------------------------- Pallas kernels -------------------------------

def _convlstm_layer_kernel(x_ref, wx_ref, wh_ref, b_ref, mask_ref,
                           hseq_ref, cfin_ref, h_sc, c_sc, *, K, W, Hd):
    """One ConvLSTM layer; grid=(T,), h/c persist in VMEM scratch.

    x_ref    : (1, Cin, BHW)     current timestep input (channels x spatial)
    wx_ref   : (K, K, 4*Hd, Cin) input-to-gates conv weights
    wh_ref   : (K, K, 4*Hd, Hd)  hidden-to-gates conv weights
    b_ref    : (4*Hd, 1)         conv bias
    mask_ref : (K*K, BHW)        per-tap boundary masks ('SAME' zero padding)
    hseq_ref : (1, Hd, BHW)      per-timestep hidden output
    cfin_ref : (Hd, BHW)         final cell state (resident accumulator)
    h_sc/c_sc: (Hd, BHW)         recurrent state scratch
    """
    t = pl.program_id(0)

    @pl.when(t == 0)
    def _init():
        h_sc[...] = jnp.zeros_like(h_sc)
        c_sc[...] = jnp.zeros_like(c_sc)

    x = x_ref[0]            # (Cin, BHW)
    h = h_sc[...]           # (Hd, BHW)
    masks = mask_ref[...]   # (K*K, BHW)
    n = x.shape[-1]
    p = K // 2

    # Bias as accumulator init (lane broadcast).
    acc = jnp.broadcast_to(b_ref[...], (4 * Hd, n))

    # 'SAME' conv as K*K shifted-masked MXU matmuls, split into x/h parts.
    for dy in range(K):
        for dx in range(K):
            s = ((dy - p) * W + (dx - p)) % n
            m = masks[dy * K + dx:dy * K + dx + 1, :]        # (1, BHW)
            xs = _shift_lanes(x, s) * m
            hs = _shift_lanes(h, s) * m
            acc = acc + jnp.dot(wx_ref[dy, dx], xs,
                                preferred_element_type=jnp.float32)
            acc = acc + jnp.dot(wh_ref[dy, dx], hs,
                                preferred_element_type=jnp.float32)

    # Gates: aligned sublane slices (Hd rows each), order i, f, o, g.
    i = jax.nn.sigmoid(acc[0 * Hd:1 * Hd])
    f = jax.nn.sigmoid(acc[1 * Hd:2 * Hd])
    o = jax.nn.sigmoid(acc[2 * Hd:3 * Hd])
    g = jnp.tanh(acc[3 * Hd:4 * Hd])

    c_next = f * c_sc[...] + i * g
    h_next = o * jnp.tanh(c_next)

    h_sc[...] = h_next
    c_sc[...] = c_next
    hseq_ref[0] = h_next
    cfin_ref[...] = c_next


def _mlp_kernel(x_ref, w1_ref, b1_ref, w2_ref, b2_ref, out_ref):
    """Two fc layers: Linear -> Sigmoid -> Linear (num_fc_layers=2)."""
    h = jnp.dot(x_ref[...], w1_ref[...],
                preferred_element_type=jnp.float32) + b1_ref[...]
    h = jax.nn.sigmoid(h)
    out_ref[...] = jnp.dot(h, w2_ref[...],
                           preferred_element_type=jnp.float32) + b2_ref[...]


# ------------------------------ Pallas wrappers -----------------------------

_VMEM_SPEC = pl.BlockSpec(memory_space=pltpu.MemorySpace.VMEM)


def convlstm_layer_forward(x_seq, wx, wh, b, masks, *, W):
    """Runs a full ConvLSTM layer over time with a single pallas_call.

    x_seq : (T, Cin, B*H*W) float32
    Returns (h_seq (T, Hd, B*H*W), c_final (Hd, B*H*W)).
    """
    T, Cin, BHW = x_seq.shape
    K = wx.shape[0]
    Hd = wh.shape[-1]
    KK = K * K

    kernel = functools.partial(_convlstm_layer_kernel, K=K, W=W, Hd=Hd)
    grid_spec = pltpu.PrefetchScalarGridSpec(
        num_scalar_prefetch=0,
        grid=(T,),
        in_specs=[
            pl.BlockSpec((1, Cin, BHW), lambda t: (t, 0, 0)),       # x_t stream
            pl.BlockSpec((K, K, 4 * Hd, Cin), lambda t: (0, 0, 0, 0)),
            pl.BlockSpec((K, K, 4 * Hd, Hd), lambda t: (0, 0, 0, 0)),
            pl.BlockSpec((4 * Hd, 1), lambda t: (0, 0)),
            pl.BlockSpec((KK, BHW), lambda t: (0, 0)),
        ],
        out_specs=(
            pl.BlockSpec((1, Hd, BHW), lambda t: (t, 0, 0)),        # h_t stream
            pl.BlockSpec((Hd, BHW), lambda t: (0, 0)),              # resident c
        ),
        scratch_shapes=[pltpu.VMEM((Hd, BHW), jnp.float32),
                        pltpu.VMEM((Hd, BHW), jnp.float32)],
    )
    h_seq, c_fin = pl.pallas_call(
        kernel,
        grid_spec=grid_spec,
        out_shape=(jax.ShapeDtypeStruct((T, Hd, BHW), jnp.float32),
                   jax.ShapeDtypeStruct((Hd, BHW), jnp.float32)),
        compiler_params=pltpu.CompilerParams(
            dimension_semantics=("arbitrary",)),   # time axis is a recurrence
    )(x_seq, wx, wh, b, masks)
    return h_seq, c_fin


def mlp_forward(x, w1, b1, w2, b2):
    B = x.shape[0]
    out_dim = w2.shape[-1]
    return pl.pallas_call(
        _mlp_kernel,
        out_shape=jax.ShapeDtypeStruct((B, out_dim), jnp.float32),
        in_specs=[_VMEM_SPEC] * 5,
        out_specs=_VMEM_SPEC,
    )(x, w1, b1, w2, b2)


# ------------------------------ Model forward -------------------------------

def convlstm_regression_forward(params, conv_input_tbchw, fc_input):
    """Matches ConvLSTMRegression.forward (batch_first=False, pooling all False,
    dropout p=0.0, num_fc_layers=2)."""
    # (T, B, C, H, W) -> (T, C, B*H*W): channels on sublanes, spatial on lanes.
    T, B, C, H, W = conv_input_tbchw.shape
    x = jnp.transpose(conv_input_tbchw, (0, 2, 1, 3, 4)).astype(jnp.float32)
    x = x.reshape(T, C, B * H * W)

    K = params["conv_wx"][0].shape[0]
    masks = _make_shift_masks(K, B, H, W)          # trace-time constant

    cur = x
    last_states = []
    for li in range(len(params["conv_wx"])):
        wx, wh, b = params["conv_wx"][li], params["conv_wh"][li], params["conv_b"][li]
        Hd = wh.shape[-1]
        h_seq, c_fin = convlstm_layer_forward(cur, wx, wh, b, masks, W=W)
        cur = h_seq
        # return hidden states in torch NCHW layout
        h_fin = h_seq[T - 1]
        last_states.append(
            (h_fin.reshape(Hd, B, H, W).transpose(1, 0, 2, 3),
             c_fin.reshape(Hd, B, H, W).transpose(1, 0, 2, 3)))

    # TODO(synk): nn.Dropout2d is identity here (p=0.0 / eval semantics).
    Hd = params["conv_wh"][-1].shape[-1]
    h_last = cur[T - 1]                                   # (Hd, B*H*W)
    # flatten in torch order (C, H, W) per batch element
    flat = h_last.reshape(Hd, B, H * W).transpose(1, 0, 2).reshape(B, Hd * H * W)
    fc_in = jnp.concatenate([flat, fc_input.astype(jnp.float32)], axis=1)
    pred = mlp_forward(fc_in, params["fc_w1"], params["fc_b1"],
                       params["fc_w2"], params["fc_b2"])
    return pred, last_states


# ------------------------------ Pure-JAX reference --------------------------

def reference_forward(params, conv_input_tbchw, fc_input):
    x = jnp.transpose(conv_input_tbchw, (1, 0, 3, 4, 2)).astype(jnp.float32)
    B, T, H, W, _ = x.shape
    cur = x
    for li in range(len(params["conv_wx"])):
        wx, wh, b = params["conv_wx"][li], params["conv_wh"][li], params["conv_b"][li]
        Hd = wh.shape[-1]
        # (K,K,4Hd,Cin_x)+(K,K,4Hd,Hd) -> HWIO (K,K,Cin_tot,4Hd)
        w_hwio = jnp.concatenate([wx, wh], axis=-1).transpose(0, 1, 3, 2)
        bia = b.reshape(1, 1, 1, -1)
        h = jnp.zeros((B, H, W, Hd), jnp.float32)
        c = jnp.zeros((B, H, W, Hd), jnp.float32)
        outs = []
        for t in range(T):
            comb = jnp.concatenate([cur[:, t], h], axis=-1)
            conv = lax.conv_general_dilated(
                comb, w_hwio, (1, 1), "SAME",
                dimension_numbers=("NHWC", "HWIO", "NHWC")) + bia
            i = jax.nn.sigmoid(conv[..., 0 * Hd:1 * Hd])
            f = jax.nn.sigmoid(conv[..., 1 * Hd:2 * Hd])
            o = jax.nn.sigmoid(conv[..., 2 * Hd:3 * Hd])
            g = jnp.tanh(conv[..., 3 * Hd:4 * Hd])
            c = f * c + i * g
            h = o * jnp.tanh(c)
            outs.append(h)
        cur = jnp.stack(outs, axis=1)
    flat = jnp.transpose(cur[:, -1], (0, 3, 1, 2)).reshape(B, -1)
    fc_in = jnp.concatenate([flat, fc_input.astype(jnp.float32)], axis=1)
    hdn = jax.nn.sigmoid(fc_in @ params["fc_w1"] + params["fc_b1"])
    return hdn @ params["fc_w2"] + params["fc_b2"]


# ------------------------------ Parameter init -------------------------------

def init_params(key, *, H, W, conv_input_dim, conv_hidden_dim, kernel_size,
                num_conv_layers, fc_input_size, fc_hidden_dim):
    K = kernel_size
    Hd = conv_hidden_dim
    keys = jax.random.split(key, 3 * num_conv_layers + 4)
    ki = iter(range(len(keys)))

    conv_wx, conv_wh, conv_b = [], [], []
    for li in range(num_conv_layers):
        cin_x = conv_input_dim if li == 0 else Hd
        fan_in = (cin_x + Hd) * K * K
        bound = 1.0 / np.sqrt(fan_in)
        conv_wx.append(jax.random.uniform(keys[next(ki)], (K, K, 4 * Hd, cin_x),
                                          jnp.float32, -bound, bound))
        conv_wh.append(jax.random.uniform(keys[next(ki)], (K, K, 4 * Hd, Hd),
                                          jnp.float32, -bound, bound))
        conv_b.append(jax.random.uniform(keys[next(ki)], (4 * Hd, 1),
                                         jnp.float32, -bound, bound))

    fc_in_dim = Hd * H * W + fc_input_size
    b1 = 1.0 / np.sqrt(fc_in_dim)
    b2 = 1.0 / np.sqrt(fc_hidden_dim)
    params = {
        "conv_wx": conv_wx,
        "conv_wh": conv_wh,
        "conv_b": conv_b,
        "fc_w1": jax.random.uniform(keys[next(ki)], (fc_in_dim, fc_hidden_dim),
                                    jnp.float32, -b1, b1),
        "fc_b1": jax.random.uniform(keys[next(ki)], (1, fc_hidden_dim),
                                    jnp.float32, -b1, b1),
        "fc_w2": jax.random.uniform(keys[next(ki)], (fc_hidden_dim, 1),
                                    jnp.float32, -b2, b2),
        "fc_b2": jax.random.uniform(keys[next(ki)], (1, 1),
                                    jnp.float32, -b2, b2),
    }
    return params


# ----------------------------------- Main ------------------------------------

if __name__ == "__main__":
    # Config (matches ConvLSTMRegression(__init__) with pooling=[False,False],
    # dropout=0.0, num_fc_layers=2, batch_first=False).
    H, W = 8, 8
    conv_input_dim = 2
    conv_hidden_dim = 8
    kernel_size = 3
    num_conv_layers = 2
    fc_input_size = 4
    fc_hidden_dim = 32
    T, B = 4, 2          # B*H*W = 128 -> exactly one lane-dense vreg row

    key = jax.random.PRNGKey(0)
    kp, kx, kf = jax.random.split(key, 3)

    params = init_params(kp, H=H, W=W, conv_input_dim=conv_input_dim,
                         conv_hidden_dim=conv_hidden_dim,
                         kernel_size=kernel_size,
                         num_conv_layers=num_conv_layers,
                         fc_input_size=fc_input_size,
                         fc_hidden_dim=fc_hidden_dim)

    # conv_input in torch layout (t, b, c, h, w); fc_input (b, fc_input_size)
    conv_input = jax.random.normal(kx, (T, B, conv_input_dim, H, W), jnp.float32)
    fc_input = jax.random.normal(kf, (B, fc_input_size), jnp.float32)

    fwd = jax.jit(convlstm_regression_forward)
    pred, hidden = fwd(params, conv_input, fc_input)
    pred = jax.block_until_ready(pred)
    jax.block_until_ready(hidden)

    # Sanity-check against a pure-JAX reference of the same math.
    ref = jax.block_until_ready(reference_forward(params, conv_input, fc_input))
    np.testing.assert_allclose(np.asarray(pred), np.asarray(ref),
                               rtol=1e-3, atol=1e-3)
    assert pred.shape == (B, 1)
    assert len(hidden) == num_conv_layers
    assert hidden[0][0].shape == (B, conv_hidden_dim, H, W)
    assert hidden[0][1].shape == (B, conv_hidden_dim, H, W)

    print("KERNEL_OK")
</pallas_src>

<mosaic_0001>
module attributes {stable_mosaic.version = 11 : i64} {
  func.func @_convlstm_layer_kernel(%arg0: i32, %arg1: memref<1x8x128xf32, #tpu.memory_space<vmem>>, %arg2: memref<3x3x32x8xf32, #tpu.memory_space<vmem>>, %arg3: memref<3x3x32x8xf32, #tpu.memory_space<vmem>>, %arg4: memref<32x1xf32, #tpu.memory_space<vmem>>, %arg5: memref<9x128xf32, #tpu.memory_space<vmem>>, %arg6: memref<1x8x128xf32, #tpu.memory_space<vmem>>, %arg7: memref<8x128xf32, #tpu.memory_space<vmem>>, %arg8: memref<8x128xf32, #tpu.memory_space<vmem>>, %arg9: memref<8x128xf32, #tpu.memory_space<vmem>>) attributes {dimension_semantics = [#tpu.dimension_semantics<arbitrary>], iteration_bounds = array<i64: 4>, scalar_prefetch = 0 : i64, scratch_operands = 2 : i64, tpu.core_type = #tpu.core_type<tc>, window_params = [{transform_indices = @transform_0, window_bounds = array<i64: 1, 8, 128>}, {pipeline_mode = #tpu.pipeline_mode<synchronous>, transform_indices = @transform_1, window_bounds = array<i64: 3, 3, 32, 8>}, {pipeline_mode = #tpu.pipeline_mode<synchronous>, transform_indices = @transform_2, window_bounds = array<i64: 3, 3, 32, 8>}, {pipeline_mode = #tpu.pipeline_mode<synchronous>, transform_indices = @transform_3, window_bounds = array<i64: 32, 1>}, {pipeline_mode = #tpu.pipeline_mode<synchronous>, transform_indices = @transform_4, window_bounds = array<i64: 9, 128>}, {transform_indices = @transform_5, window_bounds = array<i64: 1, 8, 128>}, {pipeline_mode = #tpu.pipeline_mode<synchronous>, transform_indices = @transform_6, window_bounds = array<i64: 8, 128>}]} {
    %c0_i32 = arith.constant 0 : i32
    %0 = arith.cmpi eq, %arg0, %c0_i32 : i32
    %1 = arith.extui %0 : i1 to i32
    %c0_i32_0 = arith.constant 0 : i32
    %2 = arith.cmpi ne, %1, %c0_i32_0 : i32
    scf.if %2 {
      %cst_110 = arith.constant 0.000000e+00 : f32
      %207 = vector.broadcast %cst_110 : f32 to vector<8x128xf32>
      %c0_111 = arith.constant 0 : index
      %c0_112 = arith.constant 0 : index
      %208 = vector.load %arg8[%c0_111, %c0_112] : memref<8x128xf32, #tpu.memory_space<vmem>>, vector<8x128xf32>
      tpu.vector_store %arg8[%c0_111, %c0_112], %207 {strides = array<i32>} : memref<8x128xf32, #tpu.memory_space<vmem>>, vector<8x128xf32>,
      %cst_113 = arith.constant 0.000000e+00 : f32
      %209 = vector.broadcast %cst_113 : f32 to vector<8x128xf32>
      %c0_114 = arith.constant 0 : index
      %c0_115 = arith.constant 0 : index
      %210 = vector.load %arg9[%c0_114, %c0_115] : memref<8x128xf32, #tpu.memory_space<vmem>>, vector<8x128xf32>
      tpu.vector_store %arg9[%c0_114, %c0_115], %209 {strides = array<i32>} : memref<8x128xf32, #tpu.memory_space<vmem>>, vector<8x128xf32>,
    } else {
    }
    %c0 = arith.constant 0 : index
    %c0_1 = arith.constant 0 : index
    %c0_2 = arith.constant 0 : index
    %3 = vector.load %arg1[%c0, %c0_1, %c0_2] : memref<1x8x128xf32, #tpu.memory_space<vmem>>, vector<1x8x128xf32>
    %4 = vector.shape_cast %3 : vector<1x8x128xf32> to vector<8x128xf32>
    %c0_3 = arith.constant 0 : index
    %c0_4 = arith.constant 0 : index
    %5 = vector.load %arg8[%c0_3, %c0_4] : memref<8x128xf32, #tpu.memory_space<vmem>>, vector<8x128xf32>
    %c0_5 = arith.constant 0 : index
    %c0_6 = arith.constant 0 : index
    %6 = vector.load %arg5[%c0_5, %c0_6] : memref<9x128xf32, #tpu.memory_space<vmem>>, vector<9x128xf32>
    %c0_7 = arith.constant 0 : index
    %c0_8 = arith.constant 0 : index
    %7 = vector.load %arg4[%c0_7, %c0_8] : memref<32x1xf32, #tpu.memory_space<vmem>>, vector<32x1xf32>
    %8 = vector.shape_cast %7 : vector<32x1xf32> to vector<32x1xf32>
    %9 = vector.broadcast %8 : vector<32x1xf32> to vector<32x128xf32>
    %10 = vector.extract_strided_slice %6 {offsets = [0, 0], sizes = [1, 128], strides = [1, 1]} : vector<9x128xf32> to vector<1x128xf32>
    %11 = vector.extract_strided_slice %4 {offsets = [0, 119], sizes = [8, 9], strides = [1, 1]} : vector<8x128xf32> to vector<8x9xf32>
    %12 = vector.extract_strided_slice %4 {offsets = [0, 0], sizes = [8, 119], strides = [1, 1]} : vector<8x128xf32> to vector<8x119xf32>
    %13 = tpu.concatenate %11, %12 in 1 : vector<8x9xf32>, vector<8x119xf32> -> vector<8x128xf32>
    %14 = vector.broadcast %10 : vector<1x128xf32> to vector<8x128xf32>
    %15 = arith.mulf %13, %14 : vector<8x128xf32>
    %16 = vector.extract_strided_slice %5 {offsets = [0, 119], sizes = [8, 9], strides = [1, 1]} : vector<8x128xf32> to vector<8x9xf32>
    %17 = vector.extract_strided_slice %5 {offsets = [0, 0], sizes = [8, 119], strides = [1, 1]} : vector<8x128xf32> to vector<8x119xf32>
    %18 = tpu.concatenate %16, %17 in 1 : vector<8x9xf32>, vector<8x119xf32> -> vector<8x128xf32>
    %19 = vector.broadcast %10 : vector<1x128xf32> to vector<8x128xf32>
    %20 = arith.mulf %18, %19 : vector<8x128xf32>
    %c0_9 = arith.constant 0 : index
    %c0_10 = arith.constant 0 : index
    %c0_11 = arith.constant 0 : index
    %c0_12 = arith.constant 0 : index
    %21 = vector.load %arg2[%c0_9, %c0_10, %c0_11, %c0_12] : memref<3x3x32x8xf32, #tpu.memory_space<vmem>>, vector<1x1x32x8xf32>
    %22 = vector.shape_cast %21 : vector<1x1x32x8xf32> to vector<32x8xf32>
    %cst = arith.constant dense<0.000000e+00> : vector<32x128xf32>
    %23 = tpu.matmul %22, %15, %cst {dimension_numbers = #tpu.dot_dimension_numbers<[1], [0], [0], [1], [0, 0, 1, 1], [], []>} : vector<32x8xf32>, vector<8x128xf32>, vector<32x128xf32> -> vector<32x128xf32>
    %24 = arith.addf %9, %23 : vector<32x128xf32>
    %c0_13 = arith.constant 0 : index
    %c0_14 = arith.constant 0 : index
    %c0_15 = arith.constant 0 : index
    %c0_16 = arith.constant 0 : index
    %25 = vector.load %arg3[%c0_13, %c0_14, %c0_15, %c0_16] : memref<3x3x32x8xf32, #tpu.memory_space<vmem>>, vector<1x1x32x8xf32>
    %26 = vector.shape_cast %25 : vector<1x1x32x8xf32> to vector<32x8xf32>
    %cst_17 = arith.constant dense<0.000000e+00> : vector<32x128xf32>
    %27 = tpu.matmul %26, %20, %cst_17 {dimension_numbers = #tpu.dot_dimension_numbers<[1], [0], [0], [1], [0, 0, 1, 1], [], []>} : vector<32x8xf32>, vector<8x128xf32>, vector<32x128xf32> -> vector<32x128xf32>
    %28 = arith.addf %24, %27 : vector<32x128xf32>
    %29 = vector.extract_strided_slice %6 {offsets = [1, 0], sizes = [1, 128], strides = [1, 1]} : vector<9x128xf32> to vector<1x128xf32>
    %30 = vector.extract_strided_slice %4 {offsets = [0, 120], sizes = [8, 8], strides = [1, 1]} : vector<8x128xf32> to vector<8x8xf32>
    %31 = vector.extract_strided_slice %4 {offsets = [0, 0], sizes = [8, 120], strides = [1, 1]} : vector<8x128xf32> to vector<8x120xf32>
    %32 = tpu.concatenate %30, %31 in 1 : vector<8x8xf32>, vector<8x120xf32> -> vector<8x128xf32>
    %33 = vector.broadcast %29 : vector<1x128xf32> to vector<8x128xf32>
    %34 = arith.mulf %32, %33 : vector<8x128xf32>
    %35 = vector.extract_strided_slice %5 {offsets = [0, 120], sizes = [8, 8], strides = [1, 1]} : vector<8x128xf32> to vector<8x8xf32>
    %36 = vector.extract_strided_slice %5 {offsets = [0, 0], sizes = [8, 120], strides = [1, 1]} : vector<8x128xf32> to vector<8x120xf32>
    %37 = tpu.concatenate %35, %36 in 1 : vector<8x8xf32>, vector<8x120xf32> -> vector<8x128xf32>
    %38 = vector.broadcast %29 : vector<1x128xf32> to vector<8x128xf32>
    %39 = arith.mulf %37, %38 : vector<8x128xf32>
    %c0_18 = arith.constant 0 : index
    %c1 = arith.constant 1 : index
    %c0_19 = arith.constant 0 : index
    %c0_20 = arith.constant 0 : index
    %40 = vector.load %arg2[%c0_18, %c1, %c0_19, %c0_20] : memref<3x3x32x8xf32, #tpu.memory_space<vmem>>, vector<1x1x32x8xf32>
    %41 = vector.shape_cast %40 : vector<1x1x32x8xf32> to vector<32x8xf32>
    %cst_21 = arith.constant dense<0.000000e+00> : vector<32x128xf32>
    %42 = tpu.matmul %41, %34, %cst_21 {dimension_numbers = #tpu.dot_dimension_numbers<[1], [0], [0], [1], [0, 0, 1, 1], [], []>} : vector<32x8xf32>, vector<8x128xf32>, vector<32x128xf32> -> vector<32x128xf32>
    %43 = arith.addf %28, %42 : vector<32x128xf32>
    %c0_22 = arith.constant 0 : index
    %c1_23 = arith.constant 1 : index
    %c0_24 = arith.constant 0 : index
    %c0_25 = arith.constant 0 : index
    %44 = vector.load %arg3[%c0_22, %c1_23, %c0_24, %c0_25] : memref<3x3x32x8xf32, #tpu.memory_space<vmem>>, vector<1x1x32x8xf32>
    %45 = vector.shape_cast %44 : vector<1x1x32x8xf32> to vector<32x8xf32>
    %cst_26 = arith.constant dense<0.000000e+00> : vector<32x128xf32>
    %46 = tpu.matmul %45, %39, %cst_26 {dimension_numbers = #tpu.dot_dimension_numbers<[1], [0], [0], [1], [0, 0, 1, 1], [], []>} : vector<32x8xf32>, vector<8x128xf32>, vector<32x128xf32> -> vector<32x128xf32>
    %47 = arith.addf %43, %46 : vector<32x128xf32>
    %48 = vector.extract_strided_slice %6 {offsets = [2, 0], sizes = [1, 128], strides = [1, 1]} : vector<9x128xf32> to vector<1x128xf32>
    %49 = vector.extract_strided_slice %4 {offsets = [0, 121], sizes = [8, 7], strides = [1, 1]} : vector<8x128xf32> to vector<8x7xf32>
    %50 = vector.extract_strided_slice %4 {offsets = [0, 0], sizes = [8, 121], strides = [1, 1]} : vector<8x128xf32> to vector<8x121xf32>
    %51 = tpu.concatenate %49, %50 in 1 : vector<8x7xf32>, vector<8x121xf32> -> vector<8x128xf32>
    %52 = vector.broadcast %48 : vector<1x128xf32> to vector<8x128xf32>
    %53 = arith.mulf %51, %52 : vector<8x128xf32>
    %54 = vector.extract_strided_slice %5 {offsets = [0, 121], sizes = [8, 7], strides = [1, 1]} : vector<8x128xf32> to vector<8x7xf32>
    %55 = vector.extract_strided_slice %5 {offsets = [0, 0], sizes = [8, 121], strides = [1, 1]} : vector<8x128xf32> to vector<8x121xf32>
    %56 = tpu.concatenate %54, %55 in 1 : vector<8x7xf32>, vector<8x121xf32> -> vector<8x128xf32>
    %57 = vector.broadcast %48 : vector<1x128xf32> to vector<8x128xf32>
    %58 = arith.mulf %56, %57 : vector<8x128xf32>
    %c0_27 = arith.constant 0 : index
    %c2 = arith.constant 2 : index
    %c0_28 = arith.constant 0 : index
    %c0_29 = arith.constant 0 : index
    %59 = vector.load %arg2[%c0_27, %c2, %c0_28, %c0_29] : memref<3x3x32x8xf32, #tpu.memory_space<vmem>>, vector<1x1x32x8xf32>
    %60 = vector.shape_cast %59 : vector<1x1x32x8xf32> to vector<32x8xf32>
    %cst_30 = arith.constant dense<0.000000e+00> : vector<32x128xf32>
    %61 = tpu.matmul %60, %53, %cst_30 {dimension_numbers = #tpu.dot_dimension_numbers<[1], [0], [0], [1], [0, 0, 1, 1], [], []>} : vector<32x8xf32>, vector<8x128xf32>, vector<32x128xf32> -> vector<32x128xf32>
    %62 = arith.addf %47, %61 : vector<32x128xf32>
    %c0_31 = arith.constant 0 : index
    %c2_32 = arith.constant 2 : index
    %c0_33 = arith.constant 0 : index
    %c0_34 = arith.constant 0 : index
    %63 = vector.load %arg3[%c0_31, %c2_32, %c0_33, %c0_34] : memref<3x3x32x8xf32, #tpu.memory_space<vmem>>, vector<1x1x32x8xf32>
    %64 = vector.shape_cast %63 : vector<1x1x32x8xf32> to vector<32x8xf32>
    %cst_35 = arith.constant dense<0.000000e+00> : vector<32x128xf32>
    %65 = tpu.matmul %64, %58, %cst_35 {dimension_numbers = #tpu.dot_dimension_numbers<[1], [0], [0], [1], [0, 0, 1, 1], [], []>} : vector<32x8xf32>, vector<8x128xf32>, vector<32x128xf32> -> vector<32x128xf32>
    %66 = arith.addf %62, %65 : vector<32x128xf32>
    %67 = vector.extract_strided_slice %6 {offsets = [3, 0], sizes = [1, 128], strides = [1, 1]} : vector<9x128xf32> to vector<1x128xf32>
    %68 = vector.extract_strided_slice %4 {offsets = [0, 127], sizes = [8, 1], strides = [1, 1]} : vector<8x128xf32> to vector<8x1xf32>
    %69 = vector.extract_strided_slice %4 {offsets = [0, 0], sizes = [8, 127], strides = [1, 1]} : vector<8x128xf32> to vector<8x127xf32>
    %70 = tpu.concatenate %68, %69 in 1 : vector<8x1xf32>, vector<8x127xf32> -> vector<8x128xf32>
    %71 = vector.broadcast %67 : vector<1x128xf32> to vector<8x128xf32>
    %72 = arith.mulf %70, %71 : vector<8x128xf32>
    %73 = vector.extract_strided_slice %5 {offsets = [0, 127], sizes = [8, 1], strides = [1, 1]} : vector<8x128xf32> to vector<8x1xf32>
    %74 = vector.extract_strided_slice %5 {offsets = [0, 0], sizes = [8, 127], strides = [1, 1]} : vector<8x128xf32> to vector<8x127xf32>
    %75 = tpu.concatenate %73, %74 in 1 : vector<8x1xf32>, vector<8x127xf32> -> vector<8x128xf32>
    %76 = vector.broadcast %67 : vector<1x128xf32> to vector<8x128xf32>
    %77 = arith.mulf %75, %76 : vector<8x128xf32>
    %c1_36 = arith.constant 1 : index
    %c0_37 = arith.constant 0 : index
    %c0_38 = arith.constant 0 : index
    %c0_39 = arith.constant 0 : index
    %78 = vector.load %arg2[%c1_36, %c0_37, %c0_38, %c0_39] : memref<3x3x32x8xf32, #tpu.memory_space<vmem>>, vector<1x1x32x8xf32>
    %79 = vector.shape_cast %78 : vector<1x1x32x8xf32> to vector<32x8xf32>
    %cst_40 = arith.constant dense<0.000000e+00> : vector<32x128xf32>
    %80 = tpu.matmul %79, %72, %cst_40 {dimension_numbers = #tpu.dot_dimension_numbers<[1], [0], [0], [1], [0, 0, 1, 1], [], []>} : vector<32x8xf32>, vector<8x128xf32>, vector<32x128xf32> -> vector<32x128xf32>
    %81 = arith.addf %66, %80 : vector<32x128xf32>
    %c1_41 = arith.constant 1 : index
    %c0_42 = arith.constant 0 : index
    %c0_43 = arith.constant 0 : index
    %c0_44 = arith.constant 0 : index
    %82 = vector.load %arg3[%c1_41, %c0_42, %c0_43, %c0_44] : memref<3x3x32x8xf32, #tpu.memory_space<vmem>>, vector<1x1x32x8xf32>
    %83 = vector.shape_cast %82 : vector<1x1x32x8xf32> to vector<32x8xf32>
    %cst_45 = arith.constant dense<0.000000e+00> : vector<32x128xf32>
    %84 = tpu.matmul %83, %77, %cst_45 {dimension_numbers = #tpu.dot_dimension_numbers<[1], [0], [0], [1], [0, 0, 1, 1], [], []>} : vector<32x8xf32>, vector<8x128xf32>, vector<32x128xf32> -> vector<32x128xf32>
    %85 = arith.addf %81, %84 : vector<32x128xf32>
    %86 = vector.extract_strided_slice %6 {offsets = [4, 0], sizes = [1, 128], strides = [1, 1]} : vector<9x128xf32> to vector<1x128xf32>
    %87 = vector.broadcast %86 : vector<1x128xf32> to vector<8x128xf32>
    %88 = arith.mulf %4, %87 : vector<8x128xf32>
    %89 = vector.broadcast %86 : vector<1x128xf32> to vector<8x128xf32>
    %90 = arith.mulf %5, %89 : vector<8x128xf32>
    %c1_46 = arith.constant 1 : index
    %c1_47 = arith.constant 1 : index
    %c0_48 = arith.constant 0 : index
    %c0_49 = arith.constant 0 : index
    %91 = vector.load %arg2[%c1_46, %c1_47, %c0_48, %c0_49] : memref<3x3x32x8xf32, #tpu.memory_space<vmem>>, vector<1x1x32x8xf32>
    %92 = vector.shape_cast %91 : vector<1x1x32x8xf32> to vector<32x8xf32>
    %cst_50 = arith.constant dense<0.000000e+00> : vector<32x128xf32>
    %93 = tpu.matmul %92, %88, %cst_50 {dimension_numbers = #tpu.dot_dimension_numbers<[1], [0], [0], [1], [0, 0, 1, 1], [], []>} : vector<32x8xf32>, vector<8x128xf32>, vector<32x128xf32> -> vector<32x128xf32>
    %94 = arith.addf %85, %93 : vector<32x128xf32>
    %c1_51 = arith.constant 1 : index
    %c1_52 = arith.constant 1 : index
    %c0_53 = arith.constant 0 : index
    %c0_54 = arith.constant 0 : index
    %95 = vector.load %arg3[%c1_51, %c1_52, %c0_53, %c0_54] : memref<3x3x32x8xf32, #tpu.memory_space<vmem>>, vector<1x1x32x8xf32>
    %96 = vector.shape_cast %95 : vector<1x1x32x8xf32> to vector<32x8xf32>
    %cst_55 = arith.constant dense<0.000000e+00> : vector<32x128xf32>
    %97 = tpu.matmul %96, %90, %cst_55 {dimension_numbers = #tpu.dot_dimension_numbers<[1], [0], [0], [1], [0, 0, 1, 1], [], []>} : vector<32x8xf32>, vector<8x128xf32>, vector<32x128xf32> -> vector<32x128xf32>
    %98 = arith.addf %94, %97 : vector<32x128xf32>
    %99 = vector.extract_strided_slice %6 {offsets = [5, 0], sizes = [1, 128], strides = [1, 1]} : vector<9x128xf32> to vector<1x128xf32>
    %100 = vector.extract_strided_slice %4 {offsets = [0, 1], sizes = [8, 127], strides = [1, 1]} : vector<8x128xf32> to vector<8x127xf32>
    %101 = vector.extract_strided_slice %4 {offsets = [0, 0], sizes = [8, 1], strides = [1, 1]} : vector<8x128xf32> to vector<8x1xf32>
    %102 = tpu.concatenate %100, %101 in 1 : vector<8x127xf32>, vector<8x1xf32> -> vector<8x128xf32>
    %103 = vector.broadcast %99 : vector<1x128xf32> to vector<8x128xf32>
    %104 = arith.mulf %102, %103 : vector<8x128xf32>
    %105 = vector.extract_strided_slice %5 {offsets = [0, 1], sizes = [8, 127], strides = [1, 1]} : vector<8x128xf32> to vector<8x127xf32>
    %106 = vector.extract_strided_slice %5 {offsets = [0, 0], sizes = [8, 1], strides = [1, 1]} : vector<8x128xf32> to vector<8x1xf32>
    %107 = tpu.concatenate %105, %106 in 1 : vector<8x127xf32>, vector<8x1xf32> -> vector<8x128xf32>
    %108 = vector.broadcast %99 : vector<1x128xf32> to vector<8x128xf32>
    %109 = arith.mulf %107, %108 : vector<8x128xf32>
    %c1_56 = arith.constant 1 : index
    %c2_57 = arith.constant 2 : index
    %c0_58 = arith.constant 0 : index
    %c0_59 = arith.constant 0 : index
    %110 = vector.load %arg2[%c1_56, %c2_57, %c0_58, %c0_59] : memref<3x3x32x8xf32, #tpu.memory_space<vmem>>, vector<1x1x32x8xf32>
    %111 = vector.shape_cast %110 : vector<1x1x32x8xf32> to vector<32x8xf32>
    %cst_60 = arith.constant dense<0.000000e+00> : vector<32x128xf32>
    %112 = tpu.matmul %111, %104, %cst_60 {dimension_numbers = #tpu.dot_dimension_numbers<[1], [0], [0], [1], [0, 0, 1, 1], [], []>} : vector<32x8xf32>, vector<8x128xf32>, vector<32x128xf32> -> vector<32x128xf32>
    %113 = arith.addf %98, %112 : vector<32x128xf32>
    %c1_61 = arith.constant 1 : index
    %c2_62 = arith.constant 2 : index
    %c0_63 = arith.constant 0 : index
    %c0_64 = arith.constant 0 : index
    %114 = vector.load %arg3[%c1_61, %c2_62, %c0_63, %c0_64] : memref<3x3x32x8xf32, #tpu.memory_space<vmem>>, vector<1x1x32x8xf32>
    %115 = vector.shape_cast %114 : vector<1x1x32x8xf32> to vector<32x8xf32>
    %cst_65 = arith.constant dense<0.000000e+00> : vector<32x128xf32>
    %116 = tpu.matmul %115, %109, %cst_65 {dimension_numbers = #tpu.dot_dimension_numbers<[1], [0], [0], [1], [0, 0, 1, 1], [], []>} : vector<32x8xf32>, vector<8x128xf32>, vector<32x128xf32> -> vector<32x128xf32>
    %117 = arith.addf %113, %116 : vector<32x128xf32>
    %118 = vector.extract_strided_slice %6 {offsets = [6, 0], sizes = [1, 128], strides = [1, 1]} : vector<9x128xf32> to vector<1x128xf32>
    %119 = vector.extract_strided_slice %4 {offsets = [0, 7], sizes = [8, 121], strides = [1, 1]} : vector<8x128xf32> to vector<8x121xf32>
    %120 = vector.extract_strided_slice %4 {offsets = [0, 0], sizes = [8, 7], strides = [1, 1]} : vector<8x128xf32> to vector<8x7xf32>
    %121 = tpu.concatenate %119, %120 in 1 : vector<8x121xf32>, vector<8x7xf32> -> vector<8x128xf32>
    %122 = vector.broadcast %118 : vector<1x128xf32> to vector<8x128xf32>
    %123 = arith.mulf %121, %122 : vector<8x128xf32>
    %124 = vector.extract_strided_slice %5 {offsets = [0, 7], sizes = [8, 121], strides = [1, 1]} : vector<8x128xf32> to vector<8x121xf32>
    %125 = vector.extract_strided_slice %5 {offsets = [0, 0], sizes = [8, 7], strides = [1, 1]} : vector<8x128xf32> to vector<8x7xf32>
    %126 = tpu.concatenate %124, %125 in 1 : vector<8x121xf32>, vector<8x7xf32> -> vector<8x128xf32>
    %127 = vector.broadcast %118 : vector<1x128xf32> to vector<8x128xf32>
    %128 = arith.mulf %126, %127 : vector<8x128xf32>
    %c2_66 = arith.constant 2 : index
    %c0_67 = arith.constant 0 : index
    %c0_68 = arith.constant 0 : index
    %c0_69 = arith.constant 0 : index
    %129 = vector.load %arg2[%c2_66, %c0_67, %c0_68, %c0_69] : memref<3x3x32x8xf32, #tpu.memory_space<vmem>>, vector<1x1x32x8xf32>
    %130 = vector.shape_cast %129 : vector<1x1x32x8xf32> to vector<32x8xf32>
    %cst_70 = arith.constant dense<0.000000e+00> : vector<32x128xf32>
    %131 = tpu.matmul %130, %123, %cst_70 {dimension_numbers = #tpu.dot_dimension_numbers<[1], [0], [0], [1], [0, 0, 1, 1], [], []>} : vector<32x8xf32>, vector<8x128xf32>, vector<32x128xf32> -> vector<32x128xf32>
    %132 = arith.addf %117, %131 : vector<32x128xf32>
    %c2_71 = arith.constant 2 : index
    %c0_72 = arith.constant 0 : index
    %c0_73 = arith.constant 0 : index
    %c0_74 = arith.constant 0 : index
    %133 = vector.load %arg3[%c2_71, %c0_72, %c0_73, %c0_74] : memref<3x3x32x8xf32, #tpu.memory_space<vmem>>, vector<1x1x32x8xf32>
    %134 = vector.shape_cast %133 : vector<1x1x32x8xf32> to vector<32x8xf32>
    %cst_75 = arith.constant dense<0.000000e+00> : vector<32x128xf32>
    %135 = tpu.matmul %134, %128, %cst_75 {dimension_numbers = #tpu.dot_dimension_numbers<[1], [0], [0], [1], [0, 0, 1, 1], [], []>} : vector<32x8xf32>, vector<8x128xf32>, vector<32x128xf32> -> vector<32x128xf32>
    %136 = arith.addf %132, %135 : vector<32x128xf32>
    %137 = vector.extract_strided_slice %6 {offsets = [7, 0], sizes = [1, 128], strides = [1, 1]} : vector<9x128xf32> to vector<1x128xf32>
    %138 = vector.extract_strided_slice %4 {offsets = [0, 8], sizes = [8, 120], strides = [1, 1]} : vector<8x128xf32> to vector<8x120xf32>
    %139 = vector.extract_strided_slice %4 {offsets = [0, 0], sizes = [8, 8], strides = [1, 1]} : vector<8x128xf32> to vector<8x8xf32>
    %140 = tpu.concatenate %138, %139 in 1 : vector<8x120xf32>, vector<8x8xf32> -> vector<8x128xf32>
    %141 = vector.broadcast %137 : vector<1x128xf32> to vector<8x128xf32>
    %142 = arith.mulf %140, %141 : vector<8x128xf32>
    %143 = vector.extract_strided_slice %5 {offsets = [0, 8], sizes = [8, 120], strides = [1, 1]} : vector<8x128xf32> to vector<8x120xf32>
    %144 = vector.extract_strided_slice %5 {offsets = [0, 0], sizes = [8, 8], strides = [1, 1]} : vector<8x128xf32> to vector<8x8xf32>
    %145 = tpu.concatenate %143, %144 in 1 : vector<8x120xf32>, vector<8x8xf32> -> vector<8x128xf32>
    %146 = vector.broadcast %137 : vector<1x128xf32> to vector<8x128xf32>
    %147 = arith.mulf %145, %146 : vector<8x128xf32>
    %c2_76 = arith.constant 2 : index
    %c1_77 = arith.constant 1 : index
    %c0_78 = arith.constant 0 : index
    %c0_79 = arith.constant 0 : index
    %148 = vector.load %arg2[%c2_76, %c1_77, %c0_78, %c0_79] : memref<3x3x32x8xf32, #tpu.memory_space<vmem>>, vector<1x1x32x8xf32>
    %149 = vector.shape_cast %148 : vector<1x1x32x8xf32> to vector<32x8xf32>
    %cst_80 = arith.constant dense<0.000000e+00> : vector<32x128xf32>
    %150 = tpu.matmul %149, %142, %cst_80 {dimension_numbers = #tpu.dot_dimension_numbers<[1], [0], [0], [1], [0, 0, 1, 1], [], []>} : vector<32x8xf32>, vector<8x128xf32>, vector<32x128xf32> -> vector<32x128xf32>
    %151 = arith.addf %136, %150 : vector<32x128xf32>
    %c2_81 = arith.constant 2 : index
    %c1_82 = arith.constant 1 : index
    %c0_83 = arith.constant 0 : index
    %c0_84 = arith.constant 0 : index
    %152 = vector.load %arg3[%c2_81, %c1_82, %c0_83, %c0_84] : memref<3x3x32x8xf32, #tpu.memory_space<vmem>>, vector<1x1x32x8xf32>
    %153 = vector.shape_cast %152 : vector<1x1x32x8xf32> to vector<32x8xf32>
    %cst_85 = arith.constant dense<0.000000e+00> : vector<32x128xf32>
    %154 = tpu.matmul %153, %147, %cst_85 {dimension_numbers = #tpu.dot_dimension_numbers<[1], [0], [0], [1], [0, 0, 1, 1], [], []>} : vector<32x8xf32>, vector<8x128xf32>, vector<32x128xf32> -> vector<32x128xf32>
    %155 = arith.addf %151, %154 : vector<32x128xf32>
    %156 = vector.extract_strided_slice %6 {offsets = [8, 0], sizes = [1, 128], strides = [1, 1]} : vector<9x128xf32> to vector<1x128xf32>
    %157 = vector.extract_strided_slice %4 {offsets = [0, 9], sizes = [8, 119], strides = [1, 1]} : vector<8x128xf32> to vector<8x119xf32>
    %158 = vector.extract_strided_slice %4 {offsets = [0, 0], sizes = [8, 9], strides = [1, 1]} : vector<8x128xf32> to vector<8x9xf32>
    %159 = tpu.concatenate %157, %158 in 1 : vector<8x119xf32>, vector<8x9xf32> -> vector<8x128xf32>
    %160 = vector.broadcast %156 : vector<1x128xf32> to vector<8x128xf32>
    %161 = arith.mulf %159, %160 : vector<8x128xf32>
    %162 = vector.extract_strided_slice %5 {offsets = [0, 9], sizes = [8, 119], strides = [1, 1]} : vector<8x128xf32> to vector<8x119xf32>
    %163 = vector.extract_strided_slice %5 {offsets = [0, 0], sizes = [8, 9], strides = [1, 1]} : vector<8x128xf32> to vector<8x9xf32>
    %164 = tpu.concatenate %162, %163 in 1 : vector<8x119xf32>, vector<8x9xf32> -> vector<8x128xf32>
    %165 = vector.broadcast %156 : vector<1x128xf32> to vector<8x128xf32>
    %166 = arith.mulf %164, %165 : vector<8x128xf32>
    %c2_86 = arith.constant 2 : index
    %c2_87 = arith.constant 2 : index
    %c0_88 = arith.constant 0 : index
    %c0_89 = arith.constant 0 : index
    %167 = vector.load %arg2[%c2_86, %c2_87, %c0_88, %c0_89] : memref<3x3x32x8xf32, #tpu.memory_space<vmem>>, vector<1x1x32x8xf32>
    %168 = vector.shape_cast %167 : vector<1x1x32x8xf32> to vector<32x8xf32>
    %cst_90 = arith.constant dense<0.000000e+00> : vector<32x128xf32>
    %169 = tpu.matmul %168, %161, %cst_90 {dimension_numbers = #tpu.dot_dimension_numbers<[1], [0], [0], [1], [0, 0, 1, 1], [], []>} : vector<32x8xf32>, vector<8x128xf32>, vector<32x128xf32> -> vector<32x128xf32>
    %170 = arith.addf %155, %169 : vector<32x128xf32>
    %c2_91 = arith.constant 2 : index
    %c2_92 = arith.constant 2 : index
    %c0_93 = arith.constant 0 : index
    %c0_94 = arith.constant 0 : index
    %171 = vector.load %arg3[%c2_91, %c2_92, %c0_93, %c0_94] : memref<3x3x32x8xf32, #tpu.memory_space<vmem>>, vector<1x1x32x8xf32>
    %172 = vector.shape_cast %171 : vector<1x1x32x8xf32> to vector<32x8xf32>
    %cst_95 = arith.constant dense<0.000000e+00> : vector<32x128xf32>
    %173 = tpu.matmul %172, %166, %cst_95 {dimension_numbers = #tpu.dot_dimension_numbers<[1], [0], [0], [1], [0, 0, 1, 1], [], []>} : vector<32x8xf32>, vector<8x128xf32>, vector<32x128xf32> -> vector<32x128xf32>
    %174 = arith.addf %170, %173 : vector<32x128xf32>
    %175 = vector.extract_strided_slice %174 {offsets = [0, 0], sizes = [8, 128], strides = [1, 1]} : vector<32x128xf32> to vector<8x128xf32>
    %176 = arith.negf %175 : vector<8x128xf32>
    %177 = math.exp %176 : vector<8x128xf32>
    %cst_96 = arith.constant 1.000000e+00 : f32
    %178 = vector.broadcast %cst_96 : f32 to vector<8x128xf32>
    %179 = arith.addf %178, %177 : vector<8x128xf32>
    %180 = arith.divf %178, %179 : vector<8x128xf32>
    %181 = vector.extract_strided_slice %174 {offsets = [8, 0], sizes = [8, 128], strides = [1, 1]} : vector<32x128xf32> to vector<8x128xf32>
    %182 = arith.negf %181 : vector<8x128xf32>
    %183 = math.exp %182 : vector<8x128xf32>
    %cst_97 = arith.constant 1.000000e+00 : f32
    %184 = vector.broadcast %cst_97 : f32 to vector<8x128xf32>
    %185 = arith.addf %184, %183 : vector<8x128xf32>
    %186 = arith.divf %184, %185 : vector<8x128xf32>
    %187 = vector.extract_strided_slice %174 {offsets = [16, 0], sizes = [8, 128], strides = [1, 1]} : vector<32x128xf32> to vector<8x128xf32>
    %188 = arith.negf %187 : vector<8x128xf32>
    %189 = math.exp %188 : vector<8x128xf32>
    %cst_98 = arith.constant 1.000000e+00 : f32
    %190 = vector.broadcast %cst_98 : f32 to vector<8x128xf32>
    %191 = arith.addf %190, %189 : vector<8x128xf32>
    %192 = arith.divf %190, %191 : vector<8x128xf32>
    %193 = vector.extract_strided_slice %174 {offsets = [24, 0], sizes = [8, 128], strides = [1, 1]} : vector<32x128xf32> to vector<8x128xf32>
    %194 = math.tanh %193 : vector<8x128xf32>
    %c0_99 = arith.constant 0 : index
    %c0_100 = arith.constant 0 : index
    %195 = vector.load %arg9[%c0_99, %c0_100] : memref<8x128xf32, #tpu.memory_space<vmem>>, vector<8x128xf32>
    %196 = arith.mulf %186, %195 : vector<8x128xf32>
    %197 = arith.mulf %180, %194 : vector<8x128xf32>
    %198 = arith.addf %196, %197 : vector<8x128xf32>
    %199 = math.tanh %198 : vector<8x128xf32>
    %200 = arith.mulf %192, %199 : vector<8x128xf32>
    %c0_101 = arith.constant 0 : index
    %c0_102 = arith.constant 0 : index
    %201 = vector.load %arg8[%c0_101, %c0_102] : memref<8x128xf32, #tpu.memory_space<vmem>>, vector<8x128xf32>
    tpu.vector_store %arg8[%c0_101, %c0_102], %200 {strides = array<i32>} : memref<8x128xf32, #tpu.memory_space<vmem>>, vector<8x128xf32>,
    %c0_103 = arith.constant 0 : index
    %c0_104 = arith.constant 0 : index
    %202 = vector.load %arg9[%c0_103, %c0_104] : memref<8x128xf32, #tpu.memory_space<vmem>>, vector<8x128xf32>
    tpu.vector_store %arg9[%c0_103, %c0_104], %198 {strides = array<i32>} : memref<8x128xf32, #tpu.memory_space<vmem>>, vector<8x128xf32>,
    %c0_105 = arith.constant 0 : index
    %c0_106 = arith.constant 0 : index
    %c0_107 = arith.constant 0 : index
    %203 = vector.load %arg6[%c0_105, %c0_106, %c0_107] : memref<1x8x128xf32, #tpu.memory_space<vmem>>, vector<1x8x128xf32>
    %204 = vector.shape_cast %203 : vector<1x8x128xf32> to vector<8x128xf32>
    %205 = vector.shape_cast %200 : vector<8x128xf32> to vector<1x8x128xf32>
    tpu.vector_store %arg6[%c0_105, %c0_106, %c0_107], %205 {strides = array<i32>} : memref<1x8x128xf32, #tpu.memory_space<vmem>>, vector<1x8x128xf32>,
    %c0_108 = arith.constant 0 : index
    %c0_109 = arith.constant 0 : index
    %206 = vector.load %arg7[%c0_108, %c0_109] : memref<8x128xf32, #tpu.memory_space<vmem>>, vector<8x128xf32>
    tpu.vector_store %arg7[%c0_108, %c0_109], %198 {strides = array<i32>} : memref<8x128xf32, #tpu.memory_space<vmem>>, vector<8x128xf32>,
    return
  }
  func.func @transform_0(%arg0: i32) -> (i32, i32, i32) {
    %c0_i32 = arith.constant 0 : i32
    %c0_i32_0 = arith.constant 0 : i32
    %c0_i32_1 = arith.constant 0 : i32
    return %arg0, %c0_i32, %c0_i32_0 : i32, i32, i32
  }
  func.func @transform_1(%arg0: i32) -> (i32, i32, i32, i32) {
    %c0_i32 = arith.constant 0 : i32
    %c0_i32_0 = arith.constant 0 : i32
    %c0_i32_1 = arith.constant 0 : i32
    %c0_i32_2 = arith.constant 0 : i32
    %c0_i32_3 = arith.constant 0 : i32
    return %c0_i32, %c0_i32_0, %c0_i32_1, %c0_i32_2 : i32, i32, i32, i32
  }
  func.func @transform_2(%arg0: i32) -> (i32, i32, i32, i32) {
    %c0_i32 = arith.constant 0 : i32
    %c0_i32_0 = arith.constant 0 : i32
    %c0_i32_1 = arith.constant 0 : i32
    %c0_i32_2 = arith.constant 0 : i32
    %c0_i32_3 = arith.constant 0 : i32
    return %c0_i32, %c0_i32_0, %c0_i32_1, %c0_i32_2 : i32, i32, i32, i32
  }
  func.func @transform_3(%arg0: i32) -> (i32, i32) {
    %c0_i32 = arith.constant 0 : i32
    %c0_i32_0 = arith.constant 0 : i32
    %c0_i32_1 = arith.constant 0 : i32
    return %c0_i32, %c0_i32_0 : i32, i32
  }
  func.func @transform_4(%arg0: i32) -> (i32, i32) {
    %c0_i32 = arith.constant 0 : i32
    %c0_i32_0 = arith.constant 0 : i32
    %c0_i32_1 = arith.constant 0 : i32
    return %c0_i32, %c0_i32_0 : i32, i32
  }
  func.func @transform_5(%arg0: i32) -> (i32, i32, i32) {
    %c0_i32 = arith.constant 0 : i32
    %c0_i32_0 = arith.constant 0 : i32
    %c0_i32_1 = arith.constant 0 : i32
    return %arg0, %c0_i32, %c0_i32_0 : i32, i32, i32
  }
  func.func @transform_6(%arg0: i32) -> (i32, i32) {
    %c0_i32 = arith.constant 0 : i32
    %c0_i32_0 = arith.constant 0 : i32
    %c0_i32_1 = arith.constant 0 : i32
    return %c0_i32, %c0_i32_0 : i32, i32
  }
}

module attributes {stable_mosaic.version = 11 : i64} {
  func.func @_mlp_kernel(%arg0: memref<2x516xf32, #tpu.memory_space<vmem>>, %arg1: memref<516x32xf32, #tpu.memory_space<vmem>>, %arg2: memref<1x32xf32, #tpu.memory_space<vmem>>, %arg3: memref<32x1xf32, #tpu.memory_space<vmem>>, %arg4: memref<1x1xf32, #tpu.memory_space<vmem>>, %arg5: memref<2x1xf32, #tpu.memory_space<vmem>>) attributes {dimension_semantics = [], scalar_prefetch = 0 : i64, scratch_operands = 0 : i64, tpu.core_type = #tpu.core_type<tc>} {
    %c0 = arith.constant 0 : index
    %c0_0 = arith.constant 0 : index
    %0 = vector.load %arg0[%c0, %c0_0] : memref<2x516xf32, #tpu.memory_space<vmem>>, vector<2x516xf32>
    %c0_1 = arith.constant 0 : index
    %c0_2 = arith.constant 0 : index
    %1 = vector.load %arg1[%c0_1, %c0_2] : memref<516x32xf32, #tpu.memory_space<vmem>>, vector<516x32xf32>
    %cst = arith.constant dense<0.000000e+00> : vector<2x32xf32>
    %2 = tpu.matmul %0, %1, %cst {dimension_numbers = #tpu.dot_dimension_numbers<[1], [0], [0], [1], [0, 0, 1, 1], [], []>} : vector<2x516xf32>, vector<516x32xf32>, vector<2x32xf32> -> vector<2x32xf32>
    %c0_3 = arith.constant 0 : index
    %c0_4 = arith.constant 0 : index
    %3 = vector.load %arg2[%c0_3, %c0_4] : memref<1x32xf32, #tpu.memory_space<vmem>>, vector<1x32xf32>
    %4 = vector.broadcast %3 : vector<1x32xf32> to vector<2x32xf32>
    %5 = arith.addf %2, %4 : vector<2x32xf32>
    %6 = arith.negf %5 : vector<2x32xf32>
    %7 = math.exp %6 : vector<2x32xf32>
    %cst_5 = arith.constant 1.000000e+00 : f32
    %8 = vector.broadcast %cst_5 : f32 to vector<2x32xf32>
    %9 = arith.addf %8, %7 : vector<2x32xf32>
    %10 = arith.divf %8, %9 : vector<2x32xf32>
    %c0_6 = arith.constant 0 : index
    %c0_7 = arith.constant 0 : index
    %11 = vector.load %arg3[%c0_6, %c0_7] : memref<32x1xf32, #tpu.memory_space<vmem>>, vector<32x1xf32>
    %cst_8 = arith.constant dense<0.000000e+00> : vector<2x1xf32>
    %12 = tpu.matmul %10, %11, %cst_8 {dimension_numbers = #tpu.dot_dimension_numbers<[1], [0], [0], [1], [0, 0, 1, 1], [], []>} : vector<2x32xf32>, vector<32x1xf32>, vector<2x1xf32> -> vector<2x1xf32>
    %c0_9 = arith.constant 0 : index
    %c0_10 = arith.constant 0 : index
    %13 = vector.load %arg4[%c0_9, %c0_10] : memref<1x1xf32, #tpu.memory_space<vmem>>, vector<1x1xf32>
    %14 = vector.broadcast %13 : vector<1x1xf32> to vector<2x1xf32>
    %15 = arith.addf %12, %14 : vector<2x1xf32>
    %c0_11 = arith.constant 0 : index
    %c0_12 = arith.constant 0 : index
    %16 = vector.load %arg5[%c0_11, %c0_12] : memref<2x1xf32, #tpu.memory_space<vmem>>, vector<2x1xf32>
    tpu.vector_store %arg5[%c0_11, %c0_12], %15 {strides = array<i32>} : memref<2x1xf32, #tpu.memory_space<vmem>>, vector<2x1xf32>,
    return
  }
}

module attributes {stable_mosaic.version = 11 : i64} {
  func.func @_convlstm_layer_kernel(%arg0: i32, %arg1: memref<1x2x128xf32, #tpu.memory_space<vmem>>, %arg2: memref<3x3x32x2xf32, #tpu.memory_space<vmem>>, %arg3: memref<3x3x32x8xf32, #tpu.memory_space<vmem>>, %arg4: memref<32x1xf32, #tpu.memory_space<vmem>>, %arg5: memref<9x128xf32, #tpu.memory_space<vmem>>, %arg6: memref<1x8x128xf32, #tpu.memory_space<vmem>>, %arg7: memref<8x128xf32, #tpu.memory_space<vmem>>, %arg8: memref<8x128xf32, #tpu.memory_space<vmem>>, %arg9: memref<8x128xf32, #tpu.memory_space<vmem>>) attributes {dimension_semantics = [#tpu.dimension_semantics<arbitrary>], iteration_bounds = array<i64: 4>, scalar_prefetch = 0 : i64, scratch_operands = 2 : i64, tpu.core_type = #tpu.core_type<tc>, window_params = [{transform_indices = @transform_0, window_bounds = array<i64: 1, 2, 128>}, {pipeline_mode = #tpu.pipeline_mode<synchronous>, transform_indices = @transform_1, window_bounds = array<i64: 3, 3, 32, 2>}, {pipeline_mode = #tpu.pipeline_mode<synchronous>, transform_indices = @transform_2, window_bounds = array<i64: 3, 3, 32, 8>}, {pipeline_mode = #tpu.pipeline_mode<synchronous>, transform_indices = @transform_3, window_bounds = array<i64: 32, 1>}, {pipeline_mode = #tpu.pipeline_mode<synchronous>, transform_indices = @transform_4, window_bounds = array<i64: 9, 128>}, {transform_indices = @transform_5, window_bounds = array<i64: 1, 8, 128>}, {pipeline_mode = #tpu.pipeline_mode<synchronous>, transform_indices = @transform_6, window_bounds = array<i64: 8, 128>}]} {
    %c0_i32 = arith.constant 0 : i32
    %0 = arith.cmpi eq, %arg0, %c0_i32 : i32
    %1 = arith.extui %0 : i1 to i32
    %c0_i32_0 = arith.constant 0 : i32
    %2 = arith.cmpi ne, %1, %c0_i32_0 : i32
    scf.if %2 {
      %cst_110 = arith.constant 0.000000e+00 : f32
      %207 = vector.broadcast %cst_110 : f32 to vector<8x128xf32>
      %c0_111 = arith.constant 0 : index
      %c0_112 = arith.constant 0 : index
      %208 = vector.load %arg8[%c0_111, %c0_112] : memref<8x128xf32, #tpu.memory_space<vmem>>, vector<8x128xf32>
      tpu.vector_store %arg8[%c0_111, %c0_112], %207 {strides = array<i32>} : memref<8x128xf32, #tpu.memory_space<vmem>>, vector<8x128xf32>,
      %cst_113 = arith.constant 0.000000e+00 : f32
      %209 = vector.broadcast %cst_113 : f32 to vector<8x128xf32>
      %c0_114 = arith.constant 0 : index
      %c0_115 = arith.constant 0 : index
      %210 = vector.load %arg9[%c0_114, %c0_115] : memref<8x128xf32, #tpu.memory_space<vmem>>, vector<8x128xf32>
      tpu.vector_store %arg9[%c0_114, %c0_115], %209 {strides = array<i32>} : memref<8x128xf32, #tpu.memory_space<vmem>>, vector<8x128xf32>,
    } else {
    }
    %c0 = arith.constant 0 : index
    %c0_1 = arith.constant 0 : index
    %c0_2 = arith.constant 0 : index
    %3 = vector.load %arg1[%c0, %c0_1, %c0_2] : memref<1x2x128xf32, #tpu.memory_space<vmem>>, vector<1x2x128xf32>
    %4 = vector.shape_cast %3 : vector<1x2x128xf32> to vector<2x128xf32>
    %c0_3 = arith.constant 0 : index
    %c0_4 = arith.constant 0 : index
    %5 = vector.load %arg8[%c0_3, %c0_4] : memref<8x128xf32, #tpu.memory_space<vmem>>, vector<8x128xf32>
    %c0_5 = arith.constant 0 : index
    %c0_6 = arith.constant 0 : index
    %6 = vector.load %arg5[%c0_5, %c0_6] : memref<9x128xf32, #tpu.memory_space<vmem>>, vector<9x128xf32>
    %c0_7 = arith.constant 0 : index
    %c0_8 = arith.constant 0 : index
    %7 = vector.load %arg4[%c0_7, %c0_8] : memref<32x1xf32, #tpu.memory_space<vmem>>, vector<32x1xf32>
    %8 = vector.shape_cast %7 : vector<32x1xf32> to vector<32x1xf32>
    %9 = vector.broadcast %8 : vector<32x1xf32> to vector<32x128xf32>
    %10 = vector.extract_strided_slice %6 {offsets = [0, 0], sizes = [1, 128], strides = [1, 1]} : vector<9x128xf32> to vector<1x128xf32>
    %11 = vector.extract_strided_slice %4 {offsets = [0, 119], sizes = [2, 9], strides = [1, 1]} : vector<2x128xf32> to vector<2x9xf32>
    %12 = vector.extract_strided_slice %4 {offsets = [0, 0], sizes = [2, 119], strides = [1, 1]} : vector<2x128xf32> to vector<2x119xf32>
    %13 = tpu.concatenate %11, %12 in 1 : vector<2x9xf32>, vector<2x119xf32> -> vector<2x128xf32>
    %14 = vector.broadcast %10 : vector<1x128xf32> to vector<2x128xf32>
    %15 = arith.mulf %13, %14 : vector<2x128xf32>
    %16 = vector.extract_strided_slice %5 {offsets = [0, 119], sizes = [8, 9], strides = [1, 1]} : vector<8x128xf32> to vector<8x9xf32>
    %17 = vector.extract_strided_slice %5 {offsets = [0, 0], sizes = [8, 119], strides = [1, 1]} : vector<8x128xf32> to vector<8x119xf32>
    %18 = tpu.concatenate %16, %17 in 1 : vector<8x9xf32>, vector<8x119xf32> -> vector<8x128xf32>
    %19 = vector.broadcast %10 : vector<1x128xf32> to vector<8x128xf32>
    %20 = arith.mulf %18, %19 : vector<8x128xf32>
    %c0_9 = arith.constant 0 : index
    %c0_10 = arith.constant 0 : index
    %c0_11 = arith.constant 0 : index
    %c0_12 = arith.constant 0 : index
    %21 = vector.load %arg2[%c0_9, %c0_10, %c0_11, %c0_12] : memref<3x3x32x2xf32, #tpu.memory_space<vmem>>, vector<1x1x32x2xf32>
    %22 = vector.shape_cast %21 : vector<1x1x32x2xf32> to vector<32x2xf32>
    %cst = arith.constant dense<0.000000e+00> : vector<32x128xf32>
    %23 = tpu.matmul %22, %15, %cst {dimension_numbers = #tpu.dot_dimension_numbers<[1], [0], [0], [1], [0, 0, 1, 1], [], []>} : vector<32x2xf32>, vector<2x128xf32>, vector<32x128xf32> -> vector<32x128xf32>
    %24 = arith.addf %9, %23 : vector<32x128xf32>
    %c0_13 = arith.constant 0 : index
    %c0_14 = arith.constant 0 : index
    %c0_15 = arith.constant 0 : index
    %c0_16 = arith.constant 0 : index
    %25 = vector.load %arg3[%c0_13, %c0_14, %c0_15, %c0_16] : memref<3x3x32x8xf32, #tpu.memory_space<vmem>>, vector<1x1x32x8xf32>
    %26 = vector.shape_cast %25 : vector<1x1x32x8xf32> to vector<32x8xf32>
    %cst_17 = arith.constant dense<0.000000e+00> : vector<32x128xf32>
    %27 = tpu.matmul %26, %20, %cst_17 {dimension_numbers = #tpu.dot_dimension_numbers<[1], [0], [0], [1], [0, 0, 1, 1], [], []>} : vector<32x8xf32>, vector<8x128xf32>, vector<32x128xf32> -> vector<32x128xf32>
    %28 = arith.addf %24, %27 : vector<32x128xf32>
    %29 = vector.extract_strided_slice %6 {offsets = [1, 0], sizes = [1, 128], strides = [1, 1]} : vector<9x128xf32> to vector<1x128xf32>
    %30 = vector.extract_strided_slice %4 {offsets = [0, 120], sizes = [2, 8], strides = [1, 1]} : vector<2x128xf32> to vector<2x8xf32>
    %31 = vector.extract_strided_slice %4 {offsets = [0, 0], sizes = [2, 120], strides = [1, 1]} : vector<2x128xf32> to vector<2x120xf32>
    %32 = tpu.concatenate %30, %31 in 1 : vector<2x8xf32>, vector<2x120xf32> -> vector<2x128xf32>
    %33 = vector.broadcast %29 : vector<1x128xf32> to vector<2x128xf32>
    %34 = arith.mulf %32, %33 : vector<2x128xf32>
    %35 = vector.extract_strided_slice %5 {offsets = [0, 120], sizes = [8, 8], strides = [1, 1]} : vector<8x128xf32> to vector<8x8xf32>
    %36 = vector.extract_strided_slice %5 {offsets = [0, 0], sizes = [8, 120], strides = [1, 1]} : vector<8x128xf32> to vector<8x120xf32>
    %37 = tpu.concatenate %35, %36 in 1 : vector<8x8xf32>, vector<8x120xf32> -> vector<8x128xf32>
    %38 = vector.broadcast %29 : vector<1x128xf32> to vector<8x128xf32>
    %39 = arith.mulf %37, %38 : vector<8x128xf32>
    %c0_18 = arith.constant 0 : index
    %c1 = arith.constant 1 : index
    %c0_19 = arith.constant 0 : index
    %c0_20 = arith.constant 0 : index
    %40 = vector.load %arg2[%c0_18, %c1, %c0_19, %c0_20] : memref<3x3x32x2xf32, #tpu.memory_space<vmem>>, vector<1x1x32x2xf32>
    %41 = vector.shape_cast %40 : vector<1x1x32x2xf32> to vector<32x2xf32>
    %cst_21 = arith.constant dense<0.000000e+00> : vector<32x128xf32>
    %42 = tpu.matmul %41, %34, %cst_21 {dimension_numbers = #tpu.dot_dimension_numbers<[1], [0], [0], [1], [0, 0, 1, 1], [], []>} : vector<32x2xf32>, vector<2x128xf32>, vector<32x128xf32> -> vector<32x128xf32>
    %43 = arith.addf %28, %42 : vector<32x128xf32>
    %c0_22 = arith.constant 0 : index
    %c1_23 = arith.constant 1 : index
    %c0_24 = arith.constant 0 : index
    %c0_25 = arith.constant 0 : index
    %44 = vector.load %arg3[%c0_22, %c1_23, %c0_24, %c0_25] : memref<3x3x32x8xf32, #tpu.memory_space<vmem>>, vector<1x1x32x8xf32>
    %45 = vector.shape_cast %44 : vector<1x1x32x8xf32> to vector<32x8xf32>
    %cst_26 = arith.constant dense<0.000000e+00> : vector<32x128xf32>
    %46 = tpu.matmul %45, %39, %cst_26 {dimension_numbers = #tpu.dot_dimension_numbers<[1], [0], [0], [1], [0, 0, 1, 1], [], []>} : vector<32x8xf32>, vector<8x128xf32>, vector<32x128xf32> -> vector<32x128xf32>
    %47 = arith.addf %43, %46 : vector<32x128xf32>
    %48 = vector.extract_strided_slice %6 {offsets = [2, 0], sizes = [1, 128], strides = [1, 1]} : vector<9x128xf32> to vector<1x128xf32>
    %49 = vector.extract_strided_slice %4 {offsets = [0, 121], sizes = [2, 7], strides = [1, 1]} : vector<2x128xf32> to vector<2x7xf32>
    %50 = vector.extract_strided_slice %4 {offsets = [0, 0], sizes = [2, 121], strides = [1, 1]} : vector<2x128xf32> to vector<2x121xf32>
    %51 = tpu.concatenate %49, %50 in 1 : vector<2x7xf32>, vector<2x121xf32> -> vector<2x128xf32>
    %52 = vector.broadcast %48 : vector<1x128xf32> to vector<2x128xf32>
    %53 = arith.mulf %51, %52 : vector<2x128xf32>
    %54 = vector.extract_strided_slice %5 {offsets = [0, 121], sizes = [8, 7], strides = [1, 1]} : vector<8x128xf32> to vector<8x7xf32>
    %55 = vector.extract_strided_slice %5 {offsets = [0, 0], sizes = [8, 121], strides = [1, 1]} : vector<8x128xf32> to vector<8x121xf32>
    %56 = tpu.concatenate %54, %55 in 1 : vector<8x7xf32>, vector<8x121xf32> -> vector<8x128xf32>
    %57 = vector.broadcast %48 : vector<1x128xf32> to vector<8x128xf32>
    %58 = arith.mulf %56, %57 : vector<8x128xf32>
    %c0_27 = arith.constant 0 : index
    %c2 = arith.constant 2 : index
    %c0_28 = arith.constant 0 : index
    %c0_29 = arith.constant 0 : index
    %59 = vector.load %arg2[%c0_27, %c2, %c0_28, %c0_29] : memref<3x3x32x2xf32, #tpu.memory_space<vmem>>, vector<1x1x32x2xf32>
    %60 = vector.shape_cast %59 : vector<1x1x32x2xf32> to vector<32x2xf32>
    %cst_30 = arith.constant dense<0.000000e+00> : vector<32x128xf32>
    %61 = tpu.matmul %60, %53, %cst_30 {dimension_numbers = #tpu.dot_dimension_numbers<[1], [0], [0], [1], [0, 0, 1, 1], [], []>} : vector<32x2xf32>, vector<2x128xf32>, vector<32x128xf32> -> vector<32x128xf32>
    %62 = arith.addf %47, %61 : vector<32x128xf32>
    %c0_31 = arith.constant 0 : index
    %c2_32 = arith.constant 2 : index
    %c0_33 = arith.constant 0 : index
    %c0_34 = arith.constant 0 : index
    %63 = vector.load %arg3[%c0_31, %c2_32, %c0_33, %c0_34] : memref<3x3x32x8xf32, #tpu.memory_space<vmem>>, vector<1x1x32x8xf32>
    %64 = vector.shape_cast %63 : vector<1x1x32x8xf32> to vector<32x8xf32>
    %cst_35 = arith.constant dense<0.000000e+00> : vector<32x128xf32>
    %65 = tpu.matmul %64, %58, %cst_35 {dimension_numbers = #tpu.dot_dimension_numbers<[1], [0], [0], [1], [0, 0, 1, 1], [], []>} : vector<32x8xf32>, vector<8x128xf32>, vector<32x128xf32> -> vector<32x128xf32>
    %66 = arith.addf %62, %65 : vector<32x128xf32>
    %67 = vector.extract_strided_slice %6 {offsets = [3, 0], sizes = [1, 128], strides = [1, 1]} : vector<9x128xf32> to vector<1x128xf32>
    %68 = vector.extract_strided_slice %4 {offsets = [0, 127], sizes = [2, 1], strides = [1, 1]} : vector<2x128xf32> to vector<2x1xf32>
    %69 = vector.extract_strided_slice %4 {offsets = [0, 0], sizes = [2, 127], strides = [1, 1]} : vector<2x128xf32> to vector<2x127xf32>
    %70 = tpu.concatenate %68, %69 in 1 : vector<2x1xf32>, vector<2x127xf32> -> vector<2x128xf32>
    %71 = vector.broadcast %67 : vector<1x128xf32> to vector<2x128xf32>
    %72 = arith.mulf %70, %71 : vector<2x128xf32>
    %73 = vector.extract_strided_slice %5 {offsets = [0, 127], sizes = [8, 1], strides = [1, 1]} : vector<8x128xf32> to vector<8x1xf32>
    %74 = vector.extract_strided_slice %5 {offsets = [0, 0], sizes = [8, 127], strides = [1, 1]} : vector<8x128xf32> to vector<8x127xf32>
    %75 = tpu.concatenate %73, %74 in 1 : vector<8x1xf32>, vector<8x127xf32> -> vector<8x128xf32>
    %76 = vector.broadcast %67 : vector<1x128xf32> to vector<8x128xf32>
    %77 = arith.mulf %75, %76 : vector<8x128xf32>
    %c1_36 = arith.constant 1 : index
    %c0_37 = arith.constant 0 : index
    %c0_38 = arith.constant 0 : index
    %c0_39 = arith.constant 0 : index
    %78 = vector.load %arg2[%c1_36, %c0_37, %c0_38, %c0_39] : memref<3x3x32x2xf32, #tpu.memory_space<vmem>>, vector<1x1x32x2xf32>
    %79 = vector.shape_cast %78 : vector<1x1x32x2xf32> to vector<32x2xf32>
    %cst_40 = arith.constant dense<0.000000e+00> : vector<32x128xf32>
    %80 = tpu.matmul %79, %72, %cst_40 {dimension_numbers = #tpu.dot_dimension_numbers<[1], [0], [0], [1], [0, 0, 1, 1], [], []>} : vector<32x2xf32>, vector<2x128xf32>, vector<32x128xf32> -> vector<32x128xf32>
    %81 = arith.addf %66, %80 : vector<32x128xf32>
    %c1_41 = arith.constant 1 : index
    %c0_42 = arith.constant 0 : index
    %c0_43 = arith.constant 0 : index
    %c0_44 = arith.constant 0 : index
    %82 = vector.load %arg3[%c1_41, %c0_42, %c0_43, %c0_44] : memref<3x3x32x8xf32, #tpu.memory_space<vmem>>, vector<1x1x32x8xf32>
    %83 = vector.shape_cast %82 : vector<1x1x32x8xf32> to vector<32x8xf32>
    %cst_45 = arith.constant dense<0.000000e+00> : vector<32x128xf32>
    %84 = tpu.matmul %83, %77, %cst_45 {dimension_numbers = #tpu.dot_dimension_numbers<[1], [0], [0], [1], [0, 0, 1, 1], [], []>} : vector<32x8xf32>, vector<8x128xf32>, vector<32x128xf32> -> vector<32x128xf32>
    %85 = arith.addf %81, %84 : vector<32x128xf32>
    %86 = vector.extract_strided_slice %6 {offsets = [4, 0], sizes = [1, 128], strides = [1, 1]} : vector<9x128xf32> to vector<1x128xf32>
    %87 = vector.broadcast %86 : vector<1x128xf32> to vector<2x128xf32>
    %88 = arith.mulf %4, %87 : vector<2x128xf32>
    %89 = vector.broadcast %86 : vector<1x128xf32> to vector<8x128xf32>
    %90 = arith.mulf %5, %89 : vector<8x128xf32>
    %c1_46 = arith.constant 1 : index
    %c1_47 = arith.constant 1 : index
    %c0_48 = arith.constant 0 : index
    %c0_49 = arith.constant 0 : index
    %91 = vector.load %arg2[%c1_46, %c1_47, %c0_48, %c0_49] : memref<3x3x32x2xf32, #tpu.memory_space<vmem>>, vector<1x1x32x2xf32>
    %92 = vector.shape_cast %91 : vector<1x1x32x2xf32> to vector<32x2xf32>
    %cst_50 = arith.constant dense<0.000000e+00> : vector<32x128xf32>
    %93 = tpu.matmul %92, %88, %cst_50 {dimension_numbers = #tpu.dot_dimension_numbers<[1], [0], [0], [1], [0, 0, 1, 1], [], []>} : vector<32x2xf32>, vector<2x128xf32>, vector<32x128xf32> -> vector<32x128xf32>
    %94 = arith.addf %85, %93 : vector<32x128xf32>
    %c1_51 = arith.constant 1 : index
    %c1_52 = arith.constant 1 : index
    %c0_53 = arith.constant 0 : index
    %c0_54 = arith.constant 0 : index
    %95 = vector.load %arg3[%c1_51, %c1_52, %c0_53, %c0_54] : memref<3x3x32x8xf32, #tpu.memory_space<vmem>>, vector<1x1x32x8xf32>
    %96 = vector.shape_cast %95 : vector<1x1x32x8xf32> to vector<32x8xf32>
    %cst_55 = arith.constant dense<0.000000e+00> : vector<32x128xf32>
    %97 = tpu.matmul %96, %90, %cst_55 {dimension_numbers = #tpu.dot_dimension_numbers<[1], [0], [0], [1], [0, 0, 1, 1], [], []>} : vector<32x8xf32>, vector<8x128xf32>, vector<32x128xf32> -> vector<32x128xf32>
    %98 = arith.addf %94, %97 : vector<32x128xf32>
    %99 = vector.extract_strided_slice %6 {offsets = [5, 0], sizes = [1, 128], strides = [1, 1]} : vector<9x128xf32> to vector<1x128xf32>
    %100 = vector.extract_strided_slice %4 {offsets = [0, 1], sizes = [2, 127], strides = [1, 1]} : vector<2x128xf32> to vector<2x127xf32>
    %101 = vector.extract_strided_slice %4 {offsets = [0, 0], sizes = [2, 1], strides = [1, 1]} : vector<2x128xf32> to vector<2x1xf32>
    %102 = tpu.concatenate %100, %101 in 1 : vector<2x127xf32>, vector<2x1xf32> -> vector<2x128xf32>
    %103 = vector.broadcast %99 : vector<1x128xf32> to vector<2x128xf32>
    %104 = arith.mulf %102, %103 : vector<2x128xf32>
    %105 = vector.extract_strided_slice %5 {offsets = [0, 1], sizes = [8, 127], strides = [1, 1]} : vector<8x128xf32> to vector<8x127xf32>
    %106 = vector.extract_strided_slice %5 {offsets = [0, 0], sizes = [8, 1], strides = [1, 1]} : vector<8x128xf32> to vector<8x1xf32>
    %107 = tpu.concatenate %105, %106 in 1 : vector<8x127xf32>, vector<8x1xf32> -> vector<8x128xf32>
    %108 = vector.broadcast %99 : vector<1x128xf32> to vector<8x128xf32>
    %109 = arith.mulf %107, %108 : vector<8x128xf32>
    %c1_56 = arith.constant 1 : index
    %c2_57 = arith.constant 2 : index
    %c0_58 = arith.constant 0 : index
    %c0_59 = arith.constant 0 : index
    %110 = vector.load %arg2[%c1_56, %c2_57, %c0_58, %c0_59] : memref<3x3x32x2xf32, #tpu.memory_space<vmem>>, vector<1x1x32x2xf32>
    %111 = vector.shape_cast %110 : vector<1x1x32x2xf32> to vector<32x2xf32>
    %cst_60 = arith.constant dense<0.000000e+00> : vector<32x128xf32>
    %112 = tpu.matmul %111, %104, %cst_60 {dimension_numbers = #tpu.dot_dimension_numbers<[1], [0], [0], [1], [0, 0, 1, 1], [], []>} : vector<32x2xf32>, vector<2x128xf32>, vector<32x128xf32> -> vector<32x128xf32>
    %113 = arith.addf %98, %112 : vector<32x128xf32>
    %c1_61 = arith.constant 1 : index
    %c2_62 = arith.constant 2 : index
    %c0_63 = arith.constant 0 : index
    %c0_64 = arith.constant 0 : index
    %114 = vector.load %arg3[%c1_61, %c2_62, %c0_63, %c0_64] : memref<3x3x32x8xf32, #tpu.memory_space<vmem>>, vector<1x1x32x8xf32>
    %115 = vector.shape_cast %114 : vector<1x1x32x8xf32> to vector<32x8xf32>
    %cst_65 = arith.constant dense<0.000000e+00> : vector<32x128xf32>
    %116 = tpu.matmul %115, %109, %cst_65 {dimension_numbers = #tpu.dot_dimension_numbers<[1], [0], [0], [1], [0, 0, 1, 1], [], []>} : vector<32x8xf32>, vector<8x128xf32>, vector<32x128xf32> -> vector<32x128xf32>
    %117 = arith.addf %113, %116 : vector<32x128xf32>
    %118 = vector.extract_strided_slice %6 {offsets = [6, 0], sizes = [1, 128], strides = [1, 1]} : vector<9x128xf32> to vector<1x128xf32>
    %119 = vector.extract_strided_slice %4 {offsets = [0, 7], sizes = [2, 121], strides = [1, 1]} : vector<2x128xf32> to vector<2x121xf32>
    %120 = vector.extract_strided_slice %4 {offsets = [0, 0], sizes = [2, 7], strides = [1, 1]} : vector<2x128xf32> to vector<2x7xf32>
    %121 = tpu.concatenate %119, %120 in 1 : vector<2x121xf32>, vector<2x7xf32> -> vector<2x128xf32>
    %122 = vector.broadcast %118 : vector<1x128xf32> to vector<2x128xf32>
    %123 = arith.mulf %121, %122 : vector<2x128xf32>
    %124 = vector.extract_strided_slice %5 {offsets = [0, 7], sizes = [8, 121], strides = [1, 1]} : vector<8x128xf32> to vector<8x121xf32>
    %125 = vector.extract_strided_slice %5 {offsets = [0, 0], sizes = [8, 7], strides = [1, 1]} : vector<8x128xf32> to vector<8x7xf32>
    %126 = tpu.concatenate %124, %125 in 1 : vector<8x121xf32>, vector<8x7xf32> -> vector<8x128xf32>
    %127 = vector.broadcast %118 : vector<1x128xf32> to vector<8x128xf32>
    %128 = arith.mulf %126, %127 : vector<8x128xf32>
    %c2_66 = arith.constant 2 : index
    %c0_67 = arith.constant 0 : index
    %c0_68 = arith.constant 0 : index
    %c0_69 = arith.constant 0 : index
    %129 = vector.load %arg2[%c2_66, %c0_67, %c0_68, %c0_69] : memref<3x3x32x2xf32, #tpu.memory_space<vmem>>, vector<1x1x32x2xf32>
    %130 = vector.shape_cast %129 : vector<1x1x32x2xf32> to vector<32x2xf32>
    %cst_70 = arith.constant dense<0.000000e+00> : vector<32x128xf32>
    %131 = tpu.matmul %130, %123, %cst_70 {dimension_numbers = #tpu.dot_dimension_numbers<[1], [0], [0], [1], [0, 0, 1, 1], [], []>} : vector<32x2xf32>, vector<2x128xf32>, vector<32x128xf32> -> vector<32x128xf32>
    %132 = arith.addf %117, %131 : vector<32x128xf32>
    %c2_71 = arith.constant 2 : index
    %c0_72 = arith.constant 0 : index
    %c0_73 = arith.constant 0 : index
    %c0_74 = arith.constant 0 : index
    %133 = vector.load %arg3[%c2_71, %c0_72, %c0_73, %c0_74] : memref<3x3x32x8xf32, #tpu.memory_space<vmem>>, vector<1x1x32x8xf32>
    %134 = vector.shape_cast %133 : vector<1x1x32x8xf32> to vector<32x8xf32>
    %cst_75 = arith.constant dense<0.000000e+00> : vector<32x128xf32>
    %135 = tpu.matmul %134, %128, %cst_75 {dimension_numbers = #tpu.dot_dimension_numbers<[1], [0], [0], [1], [0, 0, 1, 1], [], []>} : vector<32x8xf32>, vector<8x128xf32>, vector<32x128xf32> -> vector<32x128xf32>
    %136 = arith.addf %132, %135 : vector<32x128xf32>
    %137 = vector.extract_strided_slice %6 {offsets = [7, 0], sizes = [1, 128], strides = [1, 1]} : vector<9x128xf32> to vector<1x128xf32>
    %138 = vector.extract_strided_slice %4 {offsets = [0, 8], sizes = [2, 120], strides = [1, 1]} : vector<2x128xf32> to vector<2x120xf32>
    %139 = vector.extract_strided_slice %4 {offsets = [0, 0], sizes = [2, 8], strides = [1, 1]} : vector<2x128xf32> to vector<2x8xf32>
    %140 = tpu.concatenate %138, %139 in 1 : vector<2x120xf32>, vector<2x8xf32> -> vector<2x128xf32>
    %141 = vector.broadcast %137 : vector<1x128xf32> to vector<2x128xf32>
    %142 = arith.mulf %140, %141 : vector<2x128xf32>
    %143 = vector.extract_strided_slice %5 {offsets = [0, 8], sizes = [8, 120], strides = [1, 1]} : vector<8x128xf32> to vector<8x120xf32>
    %144 = vector.extract_strided_slice %5 {offsets = [0, 0], sizes = [8, 8], strides = [1, 1]} : vector<8x128xf32> to vector<8x8xf32>
    %145 = tpu.concatenate %143, %144 in 1 : vector<8x120xf32>, vector<8x8xf32> -> vector<8x128xf32>
    %146 = vector.broadcast %137 : vector<1x128xf32> to vector<8x128xf32>
    %147 = arith.mulf %145, %146 : vector<8x128xf32>
    %c2_76 = arith.constant 2 : index
    %c1_77 = arith.constant 1 : index
    %c0_78 = arith.constant 0 : index
    %c0_79 = arith.constant 0 : index
    %148 = vector.load %arg2[%c2_76, %c1_77, %c0_78, %c0_79] : memref<3x3x32x2xf32, #tpu.memory_space<vmem>>, vector<1x1x32x2xf32>
    %149 = vector.shape_cast %148 : vector<1x1x32x2xf32> to vector<32x2xf32>
    %cst_80 = arith.constant dense<0.000000e+00> : vector<32x128xf32>
    %150 = tpu.matmul %149, %142, %cst_80 {dimension_numbers = #tpu.dot_dimension_numbers<[1], [0], [0], [1], [0, 0, 1, 1], [], []>} : vector<32x2xf32>, vector<2x128xf32>, vector<32x128xf32> -> vector<32x128xf32>
    %151 = arith.addf %136, %150 : vector<32x128xf32>
    %c2_81 = arith.constant 2 : index
    %c1_82 = arith.constant 1 : index
    %c0_83 = arith.constant 0 : index
    %c0_84 = arith.constant 0 : index
    %152 = vector.load %arg3[%c2_81, %c1_82, %c0_83, %c0_84] : memref<3x3x32x8xf32, #tpu.memory_space<vmem>>, vector<1x1x32x8xf32>
    %153 = vector.shape_cast %152 : vector<1x1x32x8xf32> to vector<32x8xf32>
    %cst_85 = arith.constant dense<0.000000e+00> : vector<32x128xf32>
    %154 = tpu.matmul %153, %147, %cst_85 {dimension_numbers = #tpu.dot_dimension_numbers<[1], [0], [0], [1], [0, 0, 1, 1], [], []>} : vector<32x8xf32>, vector<8x128xf32>, vector<32x128xf32> -> vector<32x128xf32>
    %155 = arith.addf %151, %154 : vector<32x128xf32>
    %156 = vector.extract_strided_slice %6 {offsets = [8, 0], sizes = [1, 128], strides = [1, 1]} : vector<9x128xf32> to vector<1x128xf32>
    %157 = vector.extract_strided_slice %4 {offsets = [0, 9], sizes = [2, 119], strides = [1, 1]} : vector<2x128xf32> to vector<2x119xf32>
    %158 = vector.extract_strided_slice %4 {offsets = [0, 0], sizes = [2, 9], strides = [1, 1]} : vector<2x128xf32> to vector<2x9xf32>
    %159 = tpu.concatenate %157, %158 in 1 : vector<2x119xf32>, vector<2x9xf32> -> vector<2x128xf32>
    %160 = vector.broadcast %156 : vector<1x128xf32> to vector<2x128xf32>
    %161 = arith.mulf %159, %160 : vector<2x128xf32>
    %162 = vector.extract_strided_slice %5 {offsets = [0, 9], sizes = [8, 119], strides = [1, 1]} : vector<8x128xf32> to vector<8x119xf32>
    %163 = vector.extract_strided_slice %5 {offsets = [0, 0], sizes = [8, 9], strides = [1, 1]} : vector<8x128xf32> to vector<8x9xf32>
    %164 = tpu.concatenate %162, %163 in 1 : vector<8x119xf32>, vector<8x9xf32> -> vector<8x128xf32>
    %165 = vector.broadcast %156 : vector<1x128xf32> to vector<8x128xf32>
    %166 = arith.mulf %164, %165 : vector<8x128xf32>
    %c2_86 = arith.constant 2 : index
    %c2_87 = arith.constant 2 : index
    %c0_88 = arith.constant 0 : index
    %c0_89 = arith.constant 0 : index
    %167 = vector.load %arg2[%c2_86, %c2_87, %c0_88, %c0_89] : memref<3x3x32x2xf32, #tpu.memory_space<vmem>>, vector<1x1x32x2xf32>
    %168 = vector.shape_cast %167 : vector<1x1x32x2xf32> to vector<32x2xf32>
    %cst_90 = arith.constant dense<0.000000e+00> : vector<32x128xf32>
    %169 = tpu.matmul %168, %161, %cst_90 {dimension_numbers = #tpu.dot_dimension_numbers<[1], [0], [0], [1], [0, 0, 1, 1], [], []>} : vector<32x2xf32>, vector<2x128xf32>, vector<32x128xf32> -> vector<32x128xf32>
    %170 = arith.addf %155, %169 : vector<32x128xf32>
    %c2_91 = arith.constant 2 : index
    %c2_92 = arith.constant 2 : index
    %c0_93 = arith.constant 0 : index
    %c0_94 = arith.constant 0 : index
    %171 = vector.load %arg3[%c2_91, %c2_92, %c0_93, %c0_94] : memref<3x3x32x8xf32, #tpu.memory_space<vmem>>, vector<1x1x32x8xf32>
    %172 = vector.shape_cast %171 : vector<1x1x32x8xf32> to vector<32x8xf32>
    %cst_95 = arith.constant dense<0.000000e+00> : vector<32x128xf32>
    %173 = tpu.matmul %172, %166, %cst_95 {dimension_numbers = #tpu.dot_dimension_numbers<[1], [0], [0], [1], [0, 0, 1, 1], [], []>} : vector<32x8xf32>, vector<8x128xf32>, vector<32x128xf32> -> vector<32x128xf32>
    %174 = arith.addf %170, %173 : vector<32x128xf32>
    %175 = vector.extract_strided_slice %174 {offsets = [0, 0], sizes = [8, 128], strides = [1, 1]} : vector<32x128xf32> to vector<8x128xf32>
    %176 = arith.negf %175 : vector<8x128xf32>
    %177 = math.exp %176 : vector<8x128xf32>
    %cst_96 = arith.constant 1.000000e+00 : f32
    %178 = vector.broadcast %cst_96 : f32 to vector<8x128xf32>
    %179 = arith.addf %178, %177 : vector<8x128xf32>
    %180 = arith.divf %178, %179 : vector<8x128xf32>
    %181 = vector.extract_strided_slice %174 {offsets = [8, 0], sizes = [8, 128], strides = [1, 1]} : vector<32x128xf32> to vector<8x128xf32>
    %182 = arith.negf %181 : vector<8x128xf32>
    %183 = math.exp %182 : vector<8x128xf32>
    %cst_97 = arith.constant 1.000000e+00 : f32
    %184 = vector.broadcast %cst_97 : f32 to vector<8x128xf32>
    %185 = arith.addf %184, %183 : vector<8x128xf32>
    %186 = arith.divf %184, %185 : vector<8x128xf32>
    %187 = vector.extract_strided_slice %174 {offsets = [16, 0], sizes = [8, 128], strides = [1, 1]} : vector<32x128xf32> to vector<8x128xf32>
    %188 = arith.negf %187 : vector<8x128xf32>
    %189 = math.exp %188 : vector<8x128xf32>
    %cst_98 = arith.constant 1.000000e+00 : f32
    %190 = vector.broadcast %cst_98 : f32 to vector<8x128xf32>
    %191 = arith.addf %190, %189 : vector<8x128xf32>
    %192 = arith.divf %190, %191 : vector<8x128xf32>
    %193 = vector.extract_strided_slice %174 {offsets = [24, 0], sizes = [8, 128], strides = [1, 1]} : vector<32x128xf32> to vector<8x128xf32>
    %194 = math.tanh %193 : vector<8x128xf32>
    %c0_99 = arith.constant 0 : index
    %c0_100 = arith.constant 0 : index
    %195 = vector.load %arg9[%c0_99, %c0_100] : memref<8x128xf32, #tpu.memory_space<vmem>>, vector<8x128xf32>
    %196 = arith.mulf %186, %195 : vector<8x128xf32>
    %197 = arith.mulf %180, %194 : vector<8x128xf32>
    %198 = arith.addf %196, %197 : vector<8x128xf32>
    %199 = math.tanh %198 : vector<8x128xf32>
    %200 = arith.mulf %192, %199 : vector<8x128xf32>
    %c0_101 = arith.constant 0 : index
    %c0_102 = arith.constant 0 : index
    %201 = vector.load %arg8[%c0_101, %c0_102] : memref<8x128xf32, #tpu.memory_space<vmem>>, vector<8x128xf32>
    tpu.vector_store %arg8[%c0_101, %c0_102], %200 {strides = array<i32>} : memref<8x128xf32, #tpu.memory_space<vmem>>, vector<8x128xf32>,
    %c0_103 = arith.constant 0 : index
    %c0_104 = arith.constant 0 : index
    %202 = vector.load %arg9[%c0_103, %c0_104] : memref<8x128xf32, #tpu.memory_space<vmem>>, vector<8x128xf32>
    tpu.vector_store %arg9[%c0_103, %c0_104], %198 {strides = array<i32>} : memref<8x128xf32, #tpu.memory_space<vmem>>, vector<8x128xf32>,
    %c0_105 = arith.constant 0 : index
    %c0_106 = arith.constant 0 : index
    %c0_107 = arith.constant 0 : index
    %203 = vector.load %arg6[%c0_105, %c0_106, %c0_107] : memref<1x8x128xf32, #tpu.memory_space<vmem>>, vector<1x8x128xf32>
    %204 = vector.shape_cast %203 : vector<1x8x128xf32> to vector<8x128xf32>
    %205 = vector.shape_cast %200 : vector<8x128xf32> to vector<1x8x128xf32>
    tpu.vector_store %arg6[%c0_105, %c0_106, %c0_107], %205 {strides = array<i32>} : memref<1x8x128xf32, #tpu.memory_space<vmem>>, vector<1x8x128xf32>,
    %c0_108 = arith.constant 0 : index
    %c0_109 = arith.constant 0 : index
    %206 = vector.load %arg7[%c0_108, %c0_109] : memref<8x128xf32, #tpu.memory_space<vmem>>, vector<8x128xf32>
    tpu.vector_store %arg7[%c0_108, %c0_109], %198 {strides = array<i32>} : memref<8x128xf32, #tpu.memory_space<vmem>>, vector<8x128xf32>,
    return
  }
  func.func @transform_0(%arg0: i32) -> (i32, i32, i32) {
    %c0_i32 = arith.constant 0 : i32
    %c0_i32_0 = arith.constant 0 : i32
    %c0_i32_1 = arith.constant 0 : i32
    return %arg0, %c0_i32, %c0_i32_0 : i32, i32, i32
  }
  func.func @transform_1(%arg0: i32) -> (i32, i32, i32, i32) {
    %c0_i32 = arith.constant 0 : i32
    %c0_i32_0 = arith.constant 0 : i32
    %c0_i32_1 = arith.constant 0 : i32
    %c0_i32_2 = arith.constant 0 : i32
    %c0_i32_3 = arith.constant 0 : i32
    return %c0_i32, %c0_i32_0, %c0_i32_1, %c0_i32_2 : i32, i32, i32, i32
  }
  func.func @transform_2(%arg0: i32) -> (i32, i32, i32, i32) {
    %c0_i32 = arith.constant 0 : i32
    %c0_i32_0 = arith.constant 0 : i32
    %c0_i32_1 = arith.constant 0 : i32
    %c0_i32_2 = arith.constant 0 : i32
    %c0_i32_3 = arith.constant 0 : i32
    return %c0_i32, %c0_i32_0, %c0_i32_1, %c0_i32_2 : i32, i32, i32, i32
  }
  func.func @transform_3(%arg0: i32) -> (i32, i32) {
    %c0_i32 = arith.constant 0 : i32
    %c0_i32_0 = arith.constant 0 : i32
    %c0_i32_1 = arith.constant 0 : i32
    return %c0_i32, %c0_i32_0 : i32, i32
  }
  func.func @transform_4(%arg0: i32) -> (i32, i32) {
    %c0_i32 = arith.constant 0 : i32
    %c0_i32_0 = arith.constant 0 : i32
    %c0_i32_1 = arith.constant 0 : i32
    return %c0_i32, %c0_i32_0 : i32, i32
  }
  func.func @transform_5(%arg0: i32) -> (i32, i32, i32) {
    %c0_i32 = arith.constant 0 : i32
    %c0_i32_0 = arith.constant 0 : i32
    %c0_i32_1 = arith.constant 0 : i32
    return %arg0, %c0_i32, %c0_i32_0 : i32, i32, i32
  }
  func.func @transform_6(%arg0: i32) -> (i32, i32) {
    %c0_i32 = arith.constant 0 : i32
    %c0_i32_0 = arith.constant 0 : i32
    %c0_i32_1 = arith.constant 0 : i32
    return %c0_i32, %c0_i32_0 : i32, i32
  }
}

</mosaic_0001>

<bundles_post_ra>
// kernel: squeeze.5
= control target key start
LH: loop header
LB: loop body
LE: loop exit
PB: predicated region body
PF: predicated region fallthrough
CT: control target
= control target key end

     0   :  { %vm3_vm0 = vcmask 523264   ;;  %s108_s0 = inlined_call_operand.vmem [shape: f32[1,8,128], index: 0, kind: input, shape index: {}]   ;;  %s109_s1 = inlined_call_operand.vmem [shape: f32[8,2,64], index: 1, kind: output, shape index: {}]  }
   0x1   :  { %v6_v0 = vld [vmem:[%s108_s0] sm:$0xff]   ;;  %s70_s0 = smov 64  }
   0x2   :  { %7 = vrot.lane.b32.xlu0 %v6_v0, %s70_s0  ;;  %4 = vst.msk [vmem:[#allocation0] ss:$8 sm:$0xf] %vm3_vm0, %v6_v0  }
   0x3   :  { %5 = vst.msk [vmem:[#allocation0] ss:$8 sm:$0xf0] %vm3_vm0, %v6_v0  }
  0x74   :  { %v8_v1 = vpop.permute.xlu0 %7  }
  0x75   :  { %11 = vst.msk [vmem:[#allocation0 + $0x1] ss:$8 sm:$0xf] %vm3_vm0, %v8_v1  }
  0x76   :  { %13 = vst.msk [vmem:[#allocation0 + $0x1] ss:$8 sm:$0xf0] %vm3_vm0, %v8_v1  }
  0x7c   :  { %v16_v2 = vld [vmem:[#allocation0] sm:$0x3]  ;;  %v21_v3 = vld [vmem:[#allocation0 + $0x8] sm:$0x3]  ;;  %v27_v4 = vld [vmem:[#allocation0 + $0x10] sm:$0x3] }
  0x7d   :  { %19 = vst [vmem:[%s109_s1] sm:$0x3] %v16_v2  ;;  %v33_v5 = vld [vmem:[#allocation0 + $0x18] sm:$0x3]  ;;  %v39_v6 = vld [vmem:[#allocation0 + $0x20] sm:$0x3] }
  0x7e   :  { %62 = vst [vmem:[%s109_s1 + $0x2] sm:$0x3] %v21_v3  ;;  %v45_v7 = vld [vmem:[#allocation0 + $0x28] sm:$0x3]  ;;  %v51_v8 = vld [vmem:[#allocation0 + $0x30] sm:$0x3] }
  0x7f   :  { %63 = vst [vmem:[%s109_s1 + $0x4] sm:$0x3] %v27_v4  ;;  %v57_v9 = vld [vmem:[#allocation0 + $0x38] sm:$0x3] }
  0x80   :  { %64 = vst [vmem:[%s109_s1 + $0x6] sm:$0x3] %v33_v5 }
  0x81   :  { %65 = vst [vmem:[%s109_s1 + $0x8] sm:$0x3] %v39_v6 }
  0x82   :  { %66 = vst [vmem:[%s109_s1 + $0xa] sm:$0x3] %v45_v7 }
  0x83   :  { %67 = vst [vmem:[%s109_s1 + $0xc] sm:$0x3] %v51_v8 }
  0x84   :  { %68 = vst [vmem:[%s109_s1 + $0xe] sm:$0x3] %v57_v9 }

// kernel: squeeze.3
= control target key start
LH: loop header
LB: loop body
LE: loop exit
PB: predicated region body
PF: predicated region fallthrough
CT: control target
= control target key end

     0   :  { %s264_s8 = smov 120   ;;  %s265_s9 = smov 88   ;;  %vm3_vm0 = vcmask 64512   ;;  %s547_s0 = inlined_call_operand.vmem [shape: f32[1,8,128], index: 0, kind: input, shape index: {}]   ;;  %s548_s1 = inlined_call_operand.vmem [shape: f32[8,2,8,8], index: 1, kind: output, shape index: {}]  }
   0x1   :  { %v32_v0 = vld [vmem:[%s547_s0] sm:$0xff]   ;;  %s263_s0 = smov 104   ;;  %s266_s18 = smov 96  }
   0x2   :  { %33 = vrot.lane.b32.xlu1 %v32_v0, %s263_s0  ;;  %9 = vrot.lane.b32.xlu0 %v32_v0, %s264_s8  ;;  %4 = vst.msk [vmem:[%s548_s1] ss:$16 sm:$0x3] %vm3_vm0, %v32_v0   ;;  %s267_s19 = smov 112   ;;  %s268_s20 = smov 80  }
   0x3   :  { %57 = vrot.lane.b32.xlu2 %v32_v0, %s265_s9  ;;  %5 = vst.msk [vmem:[%s548_s1] ss:$16 sm:$0xc] %vm3_vm0, %v32_v0   ;;  %s269_s21 = smov 64   ;;  %s270_s22 = smov 72  }
   0x4   :  { %6 = vst.msk [vmem:[%s548_s1] ss:$16 sm:$0x30] %vm3_vm0, %v32_v0   ;;  %s271_s23 = smov 56   ;;  %s272_s24 = smov 40  }
   0x5   :  { %7 = vst.msk [vmem:[%s548_s1] ss:$16 sm:$0xc0] %vm3_vm0, %v32_v0   ;;  %s273_s25 = smov 48   ;;  %s274_s26 = smov 32  }
   0x6   :  { %s275_s27 = smov 16   ;;  %s276_s28 = smov 24  }
   0x7   :  { %s277_s29 = smov 8  }
   0xa   :  { %45 = vrot.lane.b32.xlu1 %v32_v0, %s266_s18  ;;  %21 = vrot.lane.b32.xlu0 %v32_v0, %s267_s19 }
   0xb   :  { %69 = vrot.lane.b32.xlu2 %v32_v0, %s268_s20 }
  0x12   :  { %93 = vrot.lane.b32.xlu1 %v32_v0, %s269_s21  ;;  %81 = vrot.lane.b32.xlu0 %v32_v0, %s270_s22 }
  0x13   :  { %105 = vrot.lane.b32.xlu2 %v32_v0, %s271_s23 }
  0x1a   :  { %129 = vrot.lane.b32.xlu1 %v32_v0, %s272_s24  ;;  %117 = vrot.lane.b32.xlu0 %v32_v0, %s273_s25 }
  0x1b   :  { %141 = vrot.lane.b32.xlu2 %v32_v0, %s274_s26 }
  0x22   :  { %165 = vrot.lane.b32.xlu1 %v32_v0, %s275_s27  ;;  %153 = vrot.lane.b32.xlu0 %v32_v0, %s276_s28 }
  0x23   :  { %177 = vrot.lane.b32.xlu2 %v32_v0, %s277_s29 }
  0x5d   :  { %v58_v1 = vpop.permute.xlu2 %57  }
  0x5e   :  { %204 = vst.msk [vmem:[%s548_s1 + $0x5] ss:$16 sm:$0x3] %vm3_vm0, %v58_v1  }
  0x5f   :  { %205 = vst.msk [vmem:[%s548_s1 + $0x5] ss:$16 sm:$0xc] %vm3_vm0, %v58_v1  }
  0x60   :  { %206 = vst.msk [vmem:[%s548_s1 + $0x5] ss:$16 sm:$0x30] %vm3_vm0, %v58_v1  }
  0x61   :  { %207 = vst.msk [vmem:[%s548_s1 + $0x5] ss:$16 sm:$0xc0] %vm3_vm0, %v58_v1  }
  0x65   :  { %v70_v2 = vpop.permute.xlu2 %69  }
  0x66   :  { %208 = vst.msk [vmem:[%s548_s1 + $0x6] ss:$16 sm:$0x3] %vm3_vm0, %v70_v2  }
  0x67   :  { %209 = vst.msk [vmem:[%s548_s1 + $0x6] ss:$16 sm:$0xc] %vm3_vm0, %v70_v2  }
  0x68   :  { %210 = vst.msk [vmem:[%s548_s1 + $0x6] ss:$16 sm:$0x30] %vm3_vm0, %v70_v2  }
  0x69   :  { %211 = vst.msk [vmem:[%s548_s1 + $0x6] ss:$16 sm:$0xc0] %vm3_vm0, %v70_v2  }
  0x6d   :  { %v106_v3 = vpop.permute.xlu2 %105  }
  0x6e   :  { %220 = vst.msk [vmem:[%s548_s1 + $0x9] ss:$16 sm:$0x3] %vm3_vm0, %v106_v3  }
  0x6f   :  { %221 = vst.msk [vmem:[%s548_s1 + $0x9] ss:$16 sm:$0xc] %vm3_vm0, %v106_v3  }
  0x70   :  { %222 = vst.msk [vmem:[%s548_s1 + $0x9] ss:$16 sm:$0x30] %vm3_vm0, %v106_v3  }
  0x71   :  { %223 = vst.msk [vmem:[%s548_s1 + $0x9] ss:$16 sm:$0xc0] %vm3_vm0, %v106_v3  }
  0x74   :  { %v34_v4 = vpop.permute.xlu1 %33   ;;  %v10_v5 = vpop.permute.xlu0 %9  }
  0x75   :  { %196 = vst.msk [vmem:[%s548_s1 + $0x3] ss:$16 sm:$0x3] %vm3_vm0, %v34_v4   ;;  %v142_v6 = vpop.permute.xlu2 %141  }
  0x76   :  { %197 = vst.msk [vmem:[%s548_s1 + $0x3] ss:$16 sm:$0xc] %vm3_vm0, %v34_v4  }
  0x77   :  { %198 = vst.msk [vmem:[%s548_s1 + $0x3] ss:$16 sm:$0x30] %vm3_vm0, %v34_v4  }
  0x78   :  { %199 = vst.msk [vmem:[%s548_s1 + $0x3] ss:$16 sm:$0xc0] %vm3_vm0, %v34_v4  }
  0x79   :  { %188 = vst.msk [vmem:[%s548_s1 + $0x1] ss:$16 sm:$0x3] %vm3_vm0, %v10_v5  }
  0x7a   :  { %189 = vst.msk [vmem:[%s548_s1 + $0x1] ss:$16 sm:$0xc] %vm3_vm0, %v10_v5  }
  0x7b   :  { %190 = vst.msk [vmem:[%s548_s1 + $0x1] ss:$16 sm:$0x30] %vm3_vm0, %v10_v5  }
  0x7c   :  { %191 = vst.msk [vmem:[%s548_s1 + $0x1] ss:$16 sm:$0xc0] %vm3_vm0, %v10_v5   ;;  %v46_v7 = vpop.permute.xlu1 %45   ;;  %v22_v8 = vpop.permute.xlu0 %21  }
  0x7d   :  { %200 = vst.msk [vmem:[%s548_s1 + $0x4] ss:$16 sm:$0x3] %vm3_vm0, %v46_v7   ;;  %v178_v9 = vpop.permute.xlu2 %177  }
  0x7e   :  { %201 = vst.msk [vmem:[%s548_s1 + $0x4] ss:$16 sm:$0xc] %vm3_vm0, %v46_v7  }
  0x7f   :  { %202 = vst.msk [vmem:[%s548_s1 + $0x4] ss:$16 sm:$0x30] %vm3_vm0, %v46_v7  }
  0x80   :  { %203 = vst.msk [vmem:[%s548_s1 + $0x4] ss:$16 sm:$0xc0] %vm3_vm0, %v46_v7  }
  0x81   :  { %192 = vst.msk [vmem:[%s548_s1 + $0x2] ss:$16 sm:$0x3] %vm3_vm0, %v22_v8  }
  0x82   :  { %193 = vst.msk [vmem:[%s548_s1 + $0x2] ss:$16 sm:$0xc] %vm3_vm0, %v22_v8  }
  0x83   :  { %194 = vst.msk [vmem:[%s548_s1 + $0x2] ss:$16 sm:$0x30] %vm3_vm0, %v22_v8  }
  0x84   :  { %195 = vst.msk [vmem:[%s548_s1 + $0x2] ss:$16 sm:$0xc0] %vm3_vm0, %v22_v8   ;;  %v94_v10 = vpop.permute.xlu1 %93   ;;  %v82_v11 = vpop.permute.xlu0 %81  }
  0x85   :  { %216 = vst.msk [vmem:[%s548_s1 + $0x8] ss:$16 sm:$0x3] %vm3_vm0, %v94_v10  }
  0x86   :  { %217 = vst.msk [vmem:[%s548_s1 + $0x8] ss:$16 sm:$0xc] %vm3_vm0, %v94_v10  }
  0x87   :  { %218 = vst.msk [vmem:[%s548_s1 + $0x8] ss:$16 sm:$0x30] %vm3_vm0, %v94_v10  }
  0x88   :  { %219 = vst.msk [vmem:[%s548_s1 + $0x8] ss:$16 sm:$0xc0] %vm3_vm0, %v94_v10  }
  0x89   :  { %212 = vst.msk [vmem:[%s548_s1 + $0x7] ss:$16 sm:$0x3] %vm3_vm0, %v82_v11  }
  0x8a   :  { %213 = vst.msk [vmem:[%s548_s1 + $0x7] ss:$16 sm:$0xc] %vm3_vm0, %v82_v11  }
  0x8b   :  { %214 = vst.msk [vmem:[%s548_s1 + $0x7] ss:$16 sm:$0x30] %vm3_vm0, %v82_v11  }
  0x8c   :  { %215 = vst.msk [vmem:[%s548_s1 + $0x7] ss:$16 sm:$0xc0] %vm3_vm0, %v82_v11   ;;  %v130_v12 = vpop.permute.xlu1 %129   ;;  %v118_v13 = vpop.permute.xlu0 %117  }
  0x8d   :  { %232 = vst.msk [vmem:[%s548_s1 + $0xc] ss:$16 sm:$0x3] %vm3_vm0, %v142_v6  }
  0x8e   :  { %233 = vst.msk [vmem:[%s548_s1 + $0xc] ss:$16 sm:$0xc] %vm3_vm0, %v142_v6  }
  0x8f   :  { %234 = vst.msk [vmem:[%s548_s1 + $0xc] ss:$16 sm:$0x30] %vm3_vm0, %v142_v6  }
  0x90   :  { %235 = vst.msk [vmem:[%s548_s1 + $0xc] ss:$16 sm:$0xc0] %vm3_vm0, %v142_v6  }
  0x91   :  { %228 = vst.msk [vmem:[%s548_s1 + $0xb] ss:$16 sm:$0x3] %vm3_vm0, %v130_v12  }
  0x92   :  { %229 = vst.msk [vmem:[%s548_s1 + $0xb] ss:$16 sm:$0xc] %vm3_vm0, %v130_v12  }
  0x93   :  { %230 = vst.msk [vmem:[%s548_s1 + $0xb] ss:$16 sm:$0x30] %vm3_vm0, %v130_v12  }
  0x94   :  { %231 = vst.msk [vmem:[%s548_s1 + $0xb] ss:$16 sm:$0xc0] %vm3_vm0, %v130_v12   ;;  %v166_v14 = vpop.permute.xlu1 %165   ;;  %v154_v15 = vpop.permute.xlu0 %153  }
  0x95   :  { %224 = vst.msk [vmem:[%s548_s1 + $0xa] ss:$16 sm:$0x3] %vm3_vm0, %v118_v13  }
  0x96   :  { %225 = vst.msk [vmem:[%s548_s1 + $0xa] ss:$16 sm:$0xc] %vm3_vm0, %v118_v13  }
  0x97   :  { %226 = vst.msk [vmem:[%s548_s1 + $0xa] ss:$16 sm:$0x30] %vm3_vm0, %v118_v13  }
  0x98   :  { %227 = vst.msk [vmem:[%s548_s1 + $0xa] ss:$16 sm:$0xc0] %vm3_vm0, %v118_v13  }
  0x99   :  { %244 = vst.msk [vmem:[%s548_s1 + $0xf] ss:$16 sm:$0x3] %vm3_vm0, %v178_v9  }
  0x9a   :  { %245 = vst.msk [vmem:[%s548_s1 + $0xf] ss:$16 sm:$0xc] %vm3_vm0, %v178_v9  }
  0x9b   :  { %246 = vst.msk [vmem:[%s548_s1 + $0xf] ss:$16 sm:$0x30] %vm3_vm0, %v178_v9  }
  0x9c   :  { %247 = vst.msk [vmem:[%s548_s1 + $0xf] ss:$16 sm:$0xc0] %vm3_vm0, %v178_v9  }
  0x9d   :  { %240 = vst.msk [vmem:[%s548_s1 + $0xe] ss:$16 sm:$0x3] %vm3_vm0, %v166_v14  }
  0x9e   :  { %241 = vst.msk [vmem:[%s548_s1 + $0xe] ss:$16 sm:$0xc] %vm3_vm0, %v166_v14  }
  0x9f   :  { %242 = vst.msk [vmem:[%s548_s1 + $0xe] ss:$16 sm:$0x30] %vm3_vm0, %v166_v14  }
  0xa0   :  { %243 = vst.msk [vmem:[%s548_s1 + $0xe] ss:$16 sm:$0xc0] %vm3_vm0, %v166_v14  }
  0xa1   :  { %236 = vst.msk [vmem:[%s548_s1 + $0xd] ss:$16 sm:$0x3] %vm3_vm0, %v154_v15  }
  0xa2   :  { %237 = vst.msk [vmem:[%s548_s1 + $0xd] ss:$16 sm:$0xc] %vm3_vm0, %v154_v15  }
  0xa3   :  { %238 = vst.msk [vmem:[%s548_s1 + $0xd] ss:$16 sm:$0x30] %vm3_vm0, %v154_v15  }
  0xa4   :  { %239 = vst.msk [vmem:[%s548_s1 + $0xd] ss:$16 sm:$0xc0] %vm3_vm0, %v154_v15  }

// kernel: convlstm_regression_forward.5
= control target key start
LH: loop header
LB: loop body
LE: loop exit
PB: predicated region body
PF: predicated region fallthrough
CT: control target
= control target key end

     0   :  { %vm110_vm0 = vcmask 1043456   ;;  %vm107_vm1 = vcmask 31744   ;;  %vm241_vm5 = vcmask 261120   ;;  %vm265_vm7 = vcmask 1024   ;;  %s533_s1 = inlined_call_operand.vmem [shape: f32[516,32], index: 1, kind: input, shape index: {}]   ;;  %s534_s0 = inlined_call_operand.vmem [shape: f32[2,516], index: 0, kind: input, shape index: {}]   ;;  %s535_s2 = inlined_call_operand.vmem [shape: f32[1,32], index: 2, kind: input, shape index: {}]   ;;  %s536_s3 = inlined_call_operand.vmem [shape: f32[32,1], index: 3, kind: input, shape index: {}]   ;;  %s537_s4 = inlined_call_operand.<no memory space> [shape: f32[1,1], index: 4, kind: input, shape index: {}]   ;;  %s538_s5 = inlined_call_operand.vmem [shape: f32[2,1], index: 5, kind: output, shape index: {}]  }
   0x1   :  { %v71_v0 = vld [vmem:[%s533_s1 + $0x178] sm:$0xff]  ;;  %v70_v2 = vld [vmem:[%s533_s1 + $0x170] sm:$0xff]  ;;  %v69_v6 = vld [vmem:[%s533_s1 + $0x168] sm:$0xff] }
   0x2   :  { %v39_v1 = vld [vmem:[%s533_s1 + $0x78] sm:$0xff]  ;;  %154 = vmatpush.msra.mxu2 %v71_v0  ;;  %v38_v4 = vld [vmem:[%s533_s1 + $0x70] sm:$0xff]  ;;  %v37_v8 = vld [vmem:[%s533_s1 + $0x68] sm:$0xff] }
   0x3   :  { %114 = vmatpush.msra.mxu0 %v39_v1  ;;  %v87_v3 = vld [vmem:[%s533_s1 + $0x1f8] sm:$0xff]  ;;  %v86_v7 = vld [vmem:[%s533_s1 + $0x1f0] sm:$0xff]  ;;  %v85_v10 = vld [vmem:[%s533_s1 + $0x1e8] sm:$0xff] }
   0x4   :  { %v55_v5 = vld [vmem:[%s533_s1 + $0xf8] sm:$0xff]  ;;  %174 = vmatpush.msra.mxu3 %v87_v3  ;;  %155 = vmatpush.msra.mxu2 %v70_v2  ;;  %v54_v9 = vld [vmem:[%s533_s1 + $0xf0] sm:$0xff]  ;;  %v68_v11 = vld [vmem:[%s533_s1 + $0x160] sm:$0xff] }
   0x5   :  { %134 = vmatpush.msra.mxu1 %v55_v5  ;;  %115 = vmatpush.msra.mxu0 %v38_v4  ;;  %v36_v12 = vld [vmem:[%s533_s1 + $0x60] sm:$0xff]  ;;  %v53_v13 = vld [vmem:[%s533_s1 + $0xe8] sm:$0xff]  ;;  %v67_v16 = vld [vmem:[%s533_s1 + $0x158] sm:$0xff] }
   0x6   :  { %175 = vmatpush.msra.mxu3 %v86_v7  ;;  %156 = vmatpush.msra.mxu2 %v69_v6  ;;  %v84_v14 = vld [vmem:[%s533_s1 + $0x1e0] sm:$0xff]  ;;  %v35_v17 = vld [vmem:[%s533_s1 + $0x58] sm:$0xff]  ;;  %v66_v20 = vld [vmem:[%s533_s1 + $0x150] sm:$0xff] }
   0x7   :  { %135 = vmatpush.msra.mxu1 %v54_v9  ;;  %116 = vmatpush.msra.mxu0 %v37_v8  ;;  %v52_v15 = vld [vmem:[%s533_s1 + $0xe0] sm:$0xff]  ;;  %v83_v18 = vld [vmem:[%s533_s1 + $0x1d8] sm:$0xff]  ;;  %v34_v21 = vld [vmem:[%s533_s1 + $0x50] sm:$0xff] }
   0x8   :  { %176 = vmatpush.msra.mxu3 %v85_v10  ;;  %157 = vmatpush.msra.mxu2 %v68_v11  ;;  %v51_v19 = vld [vmem:[%s533_s1 + $0xd8] sm:$0xff]  ;;  %v82_v22 = vld [vmem:[%s533_s1 + $0x1d0] sm:$0xff]  ;;  %v65_v24 = vld [vmem:[%s533_s1 + $0x148] sm:$0xff] }
   0x9   :  { %136 = vmatpush.msra.mxu1 %v53_v13  ;;  %117 = vmatpush.msra.mxu0 %v36_v12  ;;  %v50_v23 = vld [vmem:[%s533_s1 + $0xd0] sm:$0xff]  ;;  %v33_v25 = vld [vmem:[%s533_s1 + $0x48] sm:$0xff]  ;;  %v64_v28 = vld [vmem:[%s533_s1 + $0x140] sm:$0xff] }
   0xa   :  { %177 = vmatpush.msra.mxu3 %v84_v14  ;;  %158 = vmatpush.msra.mxu2 %v67_v16  ;;  %v81_v26 = vld [vmem:[%s533_s1 + $0x1c8] sm:$0xff]  ;;  %v32_v29 = vld [vmem:[%s533_s1 + $0x40] sm:$0xff]  ;;  %v63_v32 = vld [vmem:[%s533_s1 + $0x138] sm:$0xff] }
   0xb   :  { %137 = vmatpush.msra.mxu1 %v52_v15  ;;  %118 = vmatpush.msra.mxu0 %v35_v17  ;;  %v49_v27 = vld [vmem:[%s533_s1 + $0xc8] sm:$0xff]  ;;  %v80_v30 = vld [vmem:[%s533_s1 + $0x1c0] sm:$0xff]  ;;  %v31_v33 = vld [vmem:[%s533_s1 + $0x38] sm:$0xff] }
   0xc   :  { %178 = vmatpush.msra.mxu3 %v83_v18  ;;  %159 = vmatpush.msra.mxu2 %v66_v20  ;;  %v48_v31 = vld [vmem:[%s533_s1 + $0xc0] sm:$0xff]  ;;  %v79_v34 = vld [vmem:[%s533_s1 + $0x1b8] sm:$0xff]  ;;  %v62_v36 = vld [vmem:[%s533_s1 + $0x130] sm:$0xff] }
   0xd   :  { %138 = vmatpush.msra.mxu1 %v51_v19  ;;  %119 = vmatpush.msra.mxu0 %v34_v21  ;;  %v47_v35 = vld [vmem:[%s533_s1 + $0xb8] sm:$0xff]  ;;  %v30_v37 = vld [vmem:[%s533_s1 + $0x30] sm:$0xff]  ;;  %v61_v40 = vld [vmem:[%s533_s1 + $0x128] sm:$0xff] }
   0xe   :  { %179 = vmatpush.msra.mxu3 %v82_v22  ;;  %160 = vmatpush.msra.mxu2 %v65_v24  ;;  %v78_v38 = vld [vmem:[%s533_s1 + $0x1b0] sm:$0xff]  ;;  %v29_v41 = vld [vmem:[%s533_s1 + $0x28] sm:$0xff]  ;;  %v60_v42 = vld [vmem:[%s533_s1 + $0x120] sm:$0xff]  ;;  %v10_v22 = vstv %s537_s4 }
   0xf   :  { %139 = vmatpush.msra.mxu1 %v50_v23  ;;  %120 = vmatpush.msra.mxu0 %v33_v25  ;;  %v46_v39 = vld [vmem:[%s533_s1 + $0xb0] sm:$0xff]  ;;  %v77_v43 = vld [vmem:[%s533_s1 + $0x1a8] sm:$0xff]  ;;  %v28_v45 = vld [vmem:[%s533_s1 + $0x20] sm:$0xff]  ;;  %11 = vst [vmem:[#allocation2] sm:$0x1] %v10_v22 }
  0x10   :  { %180 = vmatpush.msra.mxu3 %v81_v26  ;;  %161 = vmatpush.msra.mxu2 %v64_v28  ;;  %v45_v44 = vld [vmem:[%s533_s1 + $0xa8] sm:$0xff]  ;;  %v22_v46 = vld [vmem:[%s534_s0] sm:$0xff]  ;;  %v59_v50 = vld [vmem:[%s533_s1 + $0x118] sm:$0xff] }
  0x11   :  { %140 = vmatpush.msra.mxu1 %v49_v27  ;;  %121 = vmatpush.msra.mxu0 %v32_v29  ;;  %v23_v47 = vld [vmem:[%s534_s0 + $0x8] sm:$0x3]  ;;  %v76_v48 = vld [vmem:[%s533_s1 + $0x1a0] sm:$0xff]  ;;  %95 = vst [vmem:[#allocation1] ss:$4 sm:$0xff] %v22_v46  ;;  %v27_v51 = vld [vmem:[%s533_s1 + $0x18] sm:$0xff] }
  0x12   :  { %181 = vmatpush.msra.mxu3 %v80_v30  ;;  %162 = vmatpush.msra.mxu2 %v63_v32  ;;  %v44_v49 = vld [vmem:[%s533_s1 + $0xa0] sm:$0xff]  ;;  %97 = vst [vmem:[#allocation1 + $0x20] ss:$4 sm:$0xff] %v23_v47  ;;  %v75_v52 = vld [vmem:[%s533_s1 + $0x198] sm:$0xff]  ;;  %v58_v54 = vld [vmem:[%s533_s1 + $0x110] sm:$0xff] }
  0x13   :  { %141 = vmatpush.msra.mxu1 %v48_v31  ;;  %122 = vmatpush.msra.mxu0 %v31_v33  ;;  %v43_v53 = vld [vmem:[%s533_s1 + $0x98] sm:$0xff]  ;;  %v26_v55 = vld [vmem:[%s533_s1 + $0x10] sm:$0xff]  ;;  %v57_v58 = vld [vmem:[%s533_s1 + $0x108] sm:$0xff] }
  0x14   :  { %182 = vmatpush.msra.mxu3 %v79_v34  ;;  %163 = vmatpush.msra.mxu2 %v62_v36  ;;  %v74_v56 = vld [vmem:[%s533_s1 + $0x190] sm:$0xff]  ;;  %v25_v59 = vld [vmem:[%s533_s1 + $0x8] sm:$0xff]  ;;  %v56_v62 = vld [vmem:[%s533_s1 + $0x100] sm:$0xff] }
  0x15   :  { %142 = vmatpush.msra.mxu1 %v47_v35  ;;  %123 = vmatpush.msra.mxu0 %v30_v37  ;;  %v42_v57 = vld [vmem:[%s533_s1 + $0x90] sm:$0xff]  ;;  %v73_v60 = vld [vmem:[%s533_s1 + $0x188] sm:$0xff]  ;;  %v24_v63 = vld [vmem:[%s533_s1] sm:$0xff] }
  0x16   :  { %183 = vmatpush.msra.mxu3 %v78_v38  ;;  %164 = vmatpush.msra.mxu2 %v61_v40  ;;  %v41_v61 = vld [vmem:[%s533_s1 + $0x88] sm:$0xff]  ;;  %v72_v1 = vld [vmem:[%s533_s1 + $0x180] sm:$0xff]  ;;  %v236_v8 = vld [vmem:[%s536_s3 + $0x18] sm:$0xff] }
  0x17   :  { %143 = vmatpush.msra.mxu1 %v46_v39  ;;  %124 = vmatpush.msra.mxu0 %v29_v41  ;;  %v88_v4 = vld [vmem:[%s533_s1 + $0x200] sm:$0xf]  ;;  %v235_v9 = vld [vmem:[%s536_s3 + $0x10] sm:$0xff]  ;;  %v234_v10 = vld [vmem:[%s536_s3 + $0x8] sm:$0xff] }
  0x18   :  { %184 = vmatpush.msra.mxu3 %v77_v43  ;;  %165 = vmatpush.msra.mxu2 %v60_v42  ;;  %v100_v0 = vld.sshfl [vmem:[#allocation1 + $0x10] sm:$0xff pattern:$0x73625140]  ;;  %v98_v2 = vld.sshfl [vmem:[#allocation1] sm:$0xff pattern:$0x73625140] }
  0x19   :  { %144 = vmatpush.msra.mxu1 %v45_v44  ;;  %125 = vmatpush.msra.mxu0 %v28_v45  ;;  %v101_v3 = vld.sshfl [vmem:[#allocation1 + $0x18] sm:$0xff pattern:$0x73625140]  ;;  %v40_v5 = vld [vmem:[%s533_s1 + $0x80] sm:$0xff]  ;;  %v276_v37 = vld [vmem:[#allocation2] ss:$0 sm:$0xff] }
  0x1a   :  { %185 = vmatpush.msra.mxu3 %v76_v48  ;;  %166 = vmatpush.msra.mxu2 %v59_v50  ;;  %v99_v6 = vld.sshfl [vmem:[#allocation1 + $0x8] sm:$0xff pattern:$0x73625140]  ;;  %v102_v7 = vld.sshfl [vmem:[#allocation1 + $0x20] sm:$0xff pattern:$0x73625140] }
  0x1b   :  { %145 = vmatpush.msra.mxu1 %v44_v49  ;;  %126 = vmatpush.msra.mxu0 %v27_v51  ;;  %v233_v11 = vld [vmem:[%s536_s3] sm:$0xff] }
  0x1c   :  { %186 = vmatpush.msra.mxu3 %v75_v52  ;;  %167 = vmatpush.msra.mxu2 %v58_v54  ;;  %v275_v12 = vld [vmem:[%s535_s2] ss:$0 sm:$0xff] }
  0x1d   :  { %146 = vmatpush.msra.mxu1 %v43_v53  ;;  %127 = vmatpush.msra.mxu0 %v26_v55 }
  0x1e   :  { %187 = vmatpush.msra.mxu3 %v74_v56  ;;  %168 = vmatpush.msra.mxu2 %v57_v58 }
  0x1f   :  { %147 = vmatpush.msra.mxu1 %v42_v57  ;;  %128 = vmatpush.msra.mxu0 %v25_v59 }
  0x20   :  { %188 = vmatpush.msra.mxu3 %v73_v60  ;;  %169 = vmatpush.msra.mxu2 %v56_v62 }
  0x21   :  { %148 = vmatpush.msra.mxu1 %v41_v61  ;;  %129 = vmatpush.msra.mxu0 %v24_v63 }
  0x22   :  { %170 = vmatmul.f32.vlgmr.msra.gmra.mxu2 %v100_v0  ;;  %189 = vmatpush.msra.mxu3 %v72_v1 }
  0x23   :  { %130 = vmatmul.f32.vlgmr.msra.gmra.mxu0 %v98_v2  ;;  %190 = vmatmul.f32.vlgmr.msra.gmra.mxu3 %v101_v3 }
  0x24   :  { %271 = vmatpush.msk.msrb.mxu0 %vm110_vm0, %v88_v4  ;;  %149 = vmatpush.msra.mxu1 %v40_v5 }
  0x25   :  { %150 = vmatmul.f32.vlgmr.msra.gmra.mxu1 %v99_v6 }
  0x26   :  { %257 = vmatpush.msrb.mxu1 %v236_v8 }
  0x28   :  { %258 = vmatpush.msrb.mxu1 %v235_v9 }
  0x2a   :  { %259 = vmatpush.msrb.mxu1 %v234_v10 }
  0x2b   :  { %272 = vmatmul.msk.f32.vlgmr.msrb.gmra.mxu0 %vm107_vm1, %v102_v7 }
  0x2c   :  { %260 = vmatpush.msrb.mxu1 %v233_v11 }
  0xa0   :  { %v131_v13 = vpop.f32.mrf.mxu0 }
  0xa1   :  { %v132_v14 = vadd.f32 %v275_v12, %v131_v13 }
  0xa2   :  { %v151_v15 = vpop.f32.mrf.mxu1 }
  0xa3   :  { %v152_v16 = vadd.f32 %v151_v15, %v132_v14 }
  0xa5   :  { %v171_v17 = vpop.f32.mrf.mxu2 }
  0xa6   :  { %v172_v18 = vadd.f32 %v171_v17, %v152_v16  ;;  %v191_v19 = vpop.f32.mrf.mxu3 }
  0xa8   :  { %v192_v20 = vadd.f32 %v191_v19, %v172_v18  ;;  %v211_v21 = vpop.f32.mrf.mxu0 }
  0xaa   :  { %v212_v23 = vadd.f32 %v211_v21, %v192_v20 }
  0xac   :  { %v273_v24 = vmul.f32 -1.442695, %v212_v23 }
  0xae   :  { %277 = vpow2.f32 %v273_v24 }
  0xb4   :  { %v278_v25 = vpop.eup %277 }
  0xb5   :  { %v217_v26 = vadd.f32 1.0, %v278_v25 }
  0xb7   :  { %279 = vrcp.f32 %v217_v26  ;;  %v229_v30 = vand.u32 2147483648, %v217_v26  ;;  %v227_v32 = vand.u32 2147483647, %v217_v26  ;;  %vm223_vm3 = vweird.f32 %v217_v26 }
  0xb9   :  { %v230_v34 = vor.u32 1.1754944e-38, %v229_v30  ;;  %vm228_vm6 = vcmp.eq.f32.partialorder %v227_v32, 8.507059e+37 }
  0xbd   :  { %v280_v27 = vpop.eup %279 }
  0xbe   :  { %v219_v28 = vmul.f32 %v280_v27, %v217_v26  ;;  %vm224_vm2 = vweird.f32 %v280_v27 }
  0xbf   :  { %vm225_vm4 = vmor %vm223_vm3, %vm224_vm2 }
  0xc0   :  { %v220_v29 = vsub.f32 1.0, %v219_v28 }
  0xc2   :  { %v221_v31 = vmul.f32 %v280_v27, %v220_v29 }
  0xc4   :  { %v222_v33 = vadd.f32 %v280_v27, %v221_v31 }
  0xc6   :  { %v226_v35 = vsel %vm225_vm4, %v280_v27, %v222_v33 }
  0xc7   :  { %v231_v36 = vsel %vm228_vm6, %v230_v34, %v226_v35 }
  0xc8   :  { %274 = vmatmul.msk.f32.vlgmr.msrb.gmra.mxu1 %vm241_vm5, %v231_v36 }
 0x145   :  { %v262_v38 = vpop.f32.mrf.mxu1 }
 0x146   :  { %v263_v39 = vadd.f32 %v276_v37, %v262_v38 }
 0x148   :  { %266 = vst.msk [vmem:[%s538_s5] sm:$0x3] %vm265_vm7, %v263_v39 }

// kernel: convlstm_regression_forward.4
= control target key start
LH: loop header
LB: loop body
LE: loop exit
PB: predicated region body
PF: predicated region fallthrough
CT: control target
= control target key end

     0   :  { %s1624_s21 = smov 0   ;;  %s1974_s0 = inlined_call_operand.vmem [shape: f32[4,8,128], index: 0, kind: input, shape index: {}]   ;;  %s1975_s1 = inlined_call_operand.vmem [shape: f32[3,3,32,8], index: 1, kind: input, shape index: {}]   ;;  %s1976_s2 = inlined_call_operand.vmem [shape: f32[3,3,32,8], index: 2, kind: input, shape index: {}]   ;;  %s1977_s3 = inlined_call_operand.vmem [shape: f32[32,1], index: 3, kind: input, shape index: {}]   ;;  %s1978_s4 = inlined_call_operand.vmem [shape: f32[9,128], index: 4, kind: input, shape index: {}]   ;;  %s1979_s5 = inlined_call_operand.vmem [shape: f32[4,8,128], index: 5, kind: output, shape index: {0}]   ;;  %s1980_s6 = inlined_call_operand.vmem [shape: f32[8,128], index: 6, kind: output, shape index: {1}]  }
   0x1 LB: > { %s1382_s22 = sadd.s32 4294967295, %s1577_s21   ;;  %p1386_p0 = scmp.ge.s32.totalorder %s1577_s21, 1  ;;  %s1577_s21 = sphi %s1624_s21, %s17_s21  }
   0x2   : > { %p209_p1 = scmp.lt.s32.totalorder %s1577_s21, 5 }
   0x4   : > { %p210_p2 = pnand %p1386_p0, %p209_p1 }
   0x5   : > { %p237_p3 = scmp.lt.s32.totalorder (!%p210_p2), %s1382_s22, 3  ;;  %p1389_p4 = scmp.ne.s32.totalorder (!%p210_p2), %s1382_s22, 0 }
   0x6   : > { %213 = sbr.rel (%p210_p2) target bundleno = 448 (0x1c0), region = 40 }
   0xb   : > { %s238_s23 = scalar_select %p237_p3, %s1382_s22, 3 }
   0xc   : > { %248 = sbr.rel (%p1389_p4) target bundleno = 20 (0x14), region = 44 }
   0xd   : > { %s1387_s24 = sshll.u32 %s238_s23, 3 }
   0xe   : > { %s240_s27 = scalar_lea.vmem %s1974_s0, %s1387_s24  ;;  %s1638_s30 = scalar_lea.vmem %s1979_s5, %s1387_s24 }
  0x11   : > { %v1579_v0 = vmov 0.0  }
  0x12   : > { %249 = vst [vmem:[#allocation2] sm:$0xff] %v1579_v0 }
  0x13   : > { %250 = vst [vmem:[#allocation3] sm:$0xff] %v1579_v0 }
  0x14 PF: > { %v251_v1 = vld [vmem:[%s240_s27] sm:$0xff]  ;;  %s1580_s7 = smov 9   ;;  %s1581_s8 = smov 8   ;;  %v257_v4 = vld [vmem:[%s1977_s3 + $0x10] sm:$0xff]  ;;  %v1588_v5 = vmov 0   ;;  %v258_v8 = vld [vmem:[%s1977_s3 + $0x18] sm:$0xff] }
  0x15   : > { %280 = vrot.lane.b32.xlu0 %v251_v1, %s1580_s7  ;;  %389 = vrot.lane.b32.xlu1 %v251_v1, %s1581_s8  ;;  %s1582_s9 = smov 7   ;;  %s1583_s10 = smov 1   ;;  %v255_v3 = vld [vmem:[%s1977_s3] sm:$0xff]  ;;  %v292_v17 = vld [vmem:[%s1975_s1 + $0x10] sm:$0xff]  ;;  %vm294_vm0 = vcmask 64512  }
  0x16   : > { %498 = vrot.lane.b32.xlu2 %v251_v1, %s1582_s9  ;;  %s1584_s11 = smov 127   ;;  %s1585_s12 = smov 121   ;;  %1553 = vset.pattern.permute.xlu0 %v1588_v5  ;;  %v1659_v6 = vld [vmem:[%s1978_s4] sm:$0xff]  ;;  %v293_v26 = vld [vmem:[%s1975_s1 + $0x18] sm:$0xff]  ;;  %v342_v27 = vld [vmem:[%s1976_s2 + $0x10] sm:$0xff] }
  0x17   : > { %s1586_s13 = smov 120   ;;  %s1587_s14 = smov 119   ;;  %1551 = vset.pattern.permute.xlu1 %v1588_v5  ;;  %1552 = vset.pattern.permute.xlu2 %v1588_v5  ;;  %v501_v7 = vperm.slane %v1659_v6, 2  ;;  %v283_v9 = vperm.slane %v1659_v6, 0  ;;  %v392_v10 = vperm.slane %v1659_v6, 1  ;;  %v290_v18 = vld [vmem:[%s1975_s1] sm:$0xff] }
  0x18   : > { %v716_v19 = vperm.slane %v1659_v6, 4  ;;  %v340_v29 = vld [vmem:[%s1976_s2] sm:$0xff]  ;;  %v291_v30 = vld [vmem:[%s1975_s1 + $0x8] sm:$0xff]  ;;  %v610_v32 = vperm.slane %v1659_v6, 3  ;;  %v343_v35 = vld [vmem:[%s1976_s2 + $0x18] sm:$0xff]  ;;  %v822_v41 = vperm.slane %v1659_v6, 5 }
  0x19   : > { %v1640_v2 = vld [vmem:[#allocation2] sm:$0xff]  ;;  %v341_v39 = vld [vmem:[%s1976_s2 + $0x8] sm:$0xff]  ;;  %v931_v51 = vperm.slane %v1659_v6, 6  ;;  %v1400_v56 = vld [vmem:[%s1975_s1 + $0x30] sm:$0xff] }
  0x1a   : > { %v717_v20 = vmul.f32 %v716_v19, %v251_v1  ;;  %v718_v31 = vmul.f32 %v716_v19, %v1640_v2  ;;  %v1398_v36 = vld [vmem:[%s1975_s1 + $0x20] sm:$0xff]  ;;  %v1399_v45 = vld [vmem:[%s1975_s1 + $0x28] sm:$0xff]  ;;  %v1416_v59 = vld [vmem:[%s1975_s1 + $0x50] sm:$0xff] }
  0x1b   : > { %v1414_v40 = vld [vmem:[%s1975_s1 + $0x40] sm:$0xff]  ;;  %v1415_v49 = vld [vmem:[%s1975_s1 + $0x48] sm:$0xff]  ;;  %v1401_v60 = vld [vmem:[%s1975_s1 + $0x38] sm:$0xff] }
  0x1c   : > { %v1406_v46 = vld [vmem:[%s1976_s2 + $0x20] sm:$0xff]  ;;  %v256_v50 = vld [vmem:[%s1977_s3 + $0x8] sm:$0xff]  ;;  %v1408_v61 = vld [vmem:[%s1976_s2 + $0x30] sm:$0xff] }
  0x1d   : > { %286 = vrot.lane.b32.xlu0 %v1640_v2, %s1580_s7  ;;  %394 = vrot.lane.b32.xlu1 %v1640_v2, %s1581_s8  ;;  %v1422_v48 = vld [vmem:[%s1976_s2 + $0x40] sm:$0xff]  ;;  %v1407_v57 = vld [vmem:[%s1976_s2 + $0x28] sm:$0xff] }
  0x1e   : > { %503 = vrot.lane.b32.xlu2 %v1640_v2, %s1582_s9  ;;  %v1423_v58 = vld [vmem:[%s1976_s2 + $0x48] sm:$0xff]  ;;  %v1424_v62 = vld [vmem:[%s1976_s2 + $0x50] sm:$0xff]  ;;  %v1417_v63 = vld [vmem:[%s1975_s1 + $0x58] sm:$0xff] }
  0x1f   : > { %v1409_v0 = vld [vmem:[%s1976_s2 + $0x38] sm:$0xff]  ;;  %v1439_v19 = vld [vmem:[%s1976_s2 + $0x68] sm:$0xff] }
  0x25   : > { %607 = vrot.lane.b32.xlu0 %v251_v1, %s1583_s10  ;;  %612 = vrot.lane.b32.xlu1 %v1640_v2, %s1583_s10 }
  0x26   : > { %819 = vrot.lane.b32.xlu2 %v251_v1, %s1584_s11 }
  0x2d   : > { %824 = vrot.lane.b32.xlu0 %v1640_v2, %s1584_s11  ;;  %928 = vrot.lane.b32.xlu1 %v251_v1, %s1585_s12 }
  0x2e   : > { %933 = vrot.lane.b32.xlu2 %v1640_v2, %s1585_s12 }
  0x35   : > { %1037 = vrot.lane.b32.xlu0 %v251_v1, %s1586_s13  ;;  %1042 = vrot.lane.b32.xlu1 %v1640_v2, %s1586_s13 }
  0x36   : > { %1146 = vrot.lane.b32.xlu2 %v251_v1, %s1587_s14  ;;  %v1430_v1 = vld [vmem:[%s1975_s1 + $0x60] sm:$0xff] }
  0x3d   : > { %1151 = vrot.lane.b32.xlu0 %v1640_v2, %s1587_s14  ;;  %261 = vperm.xlu1 %1551, %v255_v3   ;;  %v1425_v2 = vld [vmem:[%s1976_s2 + $0x58] sm:$0xff]  ;;  %v1446_v3 = vld [vmem:[%s1975_s1 + $0x80] sm:$0xff] }
  0x3e   : > { %266 = vperm.xlu2 %1552, %v256_v50   ;;  %v1496_v50 = vld [vmem:[%s1975_s1 + $0xf0] sm:$0xff] }
  0x45   : > { %271 = vperm.xlu0 %1553, %v257_v4   ;;  %276 = vperm.xlu1 %1551, %v258_v8   ;;  %v1040_v4 = vperm.slane %v1659_v6, 7  ;;  %v1454_v6 = vld [vmem:[%s1976_s2 + $0x80] sm:$0xff] }
  0x70   : > { %v499_v11 = vpop.permute.xlu2 %498 }
  0x71   : > { %v502_v14 = vmul.f32 %v501_v7, %v499_v11 }
  0x78   : > { %v504_v21 = vpop.permute.xlu2 %503 }
  0x79   : > { %v506_v28 = vmul.f32 %v504_v21, %v501_v7  ;;  %v1448_v21 = vld [vmem:[%s1975_s1 + $0x90] sm:$0xff] }
  0x80   : > { %v820_v42 = vpop.permute.xlu2 %819 }
  0x81   : > { %v823_v43 = vmul.f32 %v822_v41, %v820_v42  ;;  %v1473_v42 = vld [vmem:[%s1976_s2 + $0xb8] sm:$0xff] }
  0x87   : > { %v281_v12 = vpop.permute.xlu0 %280  ;;  %v390_v13 = vpop.permute.xlu1 %389 }
  0x88   : > { %v284_v15 = vmul.f32 %v283_v9, %v281_v12  ;;  %v393_v16 = vmul.f32 %v392_v10, %v390_v13  ;;  %v934_v53 = vpop.permute.xlu2 %933  ;;  %v1447_v12 = vld [vmem:[%s1975_s1 + $0x88] sm:$0xff] }
  0x89   : > { %v936_v55 = vmul.f32 %v934_v53, %v931_v51  ;;  %v1554_v13 = vld [vmem:[%s1978_s4 + $0x8] ss:$0 sm:$0xff] }
  0x8a   : > { %322 = vmatpush.msra.mxu0 %v284_v15  ;;  %1531 = vmatpush.msra.mxu2 %v284_v15 }
  0x8b   : > { %1392 = vmatmul.msk.f32.vlgmr.msra.gmra.mxu2 %vm294_vm0, %v292_v17  ;;  %1390 = vmatmul.msk.f32.vlgmr.msra.gmra.mxu0 %vm294_vm0, %v290_v18  ;;  %v1432_v18 = vld [vmem:[%s1975_s1 + $0x70] sm:$0xff] }
  0x8c   : > { %539 = vmatpush.msrb.mxu0 %v502_v14  ;;  %430 = vmatpush.msrb.mxu2 %v393_v16 }
  0x8e   : > { %751 = vmatpush.msra.mxu0 %v717_v20  ;;  %v1455_v20 = vld [vmem:[%s1976_s2 + $0x88] sm:$0xff] }
  0x8f   : > { %v287_v22 = vpop.permute.xlu0 %286  ;;  %v395_v23 = vpop.permute.xlu1 %394 }
  0x90   : > { %v289_v24 = vmul.f32 %v287_v22, %v283_v9  ;;  %v397_v25 = vmul.f32 %v395_v23, %v392_v10  ;;  %v1431_v9 = vld [vmem:[%s1975_s1 + $0x68] sm:$0xff]  ;;  %v1438_v10 = vld [vmem:[%s1976_s2 + $0x60] sm:$0xff]  ;;  %v1147_v14 = vpop.permute.xlu2 %1146  ;;  %v1433_v22 = vld [vmem:[%s1975_s1 + $0x78] sm:$0xff] }
  0x91   : > { %v1150_v16 = vmul.f32 %v1554_v13, %v1147_v14  ;;  %v1440_v23 = vld [vmem:[%s1976_s2 + $0x70] sm:$0xff] }
  0x92   : > { %371 = vmatpush.msra.mxu1 %v289_v24  ;;  %1532 = vmatpush.msra.mxu3 %v289_v24  ;;  %v1456_v24 = vld [vmem:[%s1976_s2 + $0x90] sm:$0xff] }
  0x93   : > { %1393 = vmatmul.msk.f32.gmra.mxu2 %vm294_vm0, %v293_v26  ;;  %1396 = vmatmul.msk.f32.vlgmr.msra.gmra.mxu3 %vm294_vm0, %v342_v27  ;;  %v1441_v26 = vld [vmem:[%s1976_s2 + $0x78] sm:$0xff]  ;;  %v1462_v27 = vld [vmem:[%s1975_s1 + $0xa0] sm:$0xff] }
  0x94   : > { %480 = vmatpush.msrb.mxu3 %v397_v25  ;;  %1394 = vmatmul.msk.f32.vlgmr.msra.gmra.mxu1 %vm294_vm0, %v340_v29  ;;  %v1449_v25 = vld [vmem:[%s1975_s1 + $0x98] sm:$0xff]  ;;  %v1478_v29 = vld [vmem:[%s1975_s1 + $0xc0] sm:$0xff] }
  0x95   : > { %589 = vmatpush.msrb.mxu1 %v506_v28  ;;  %1391 = vmatmul.msk.f32.gmra.mxu0 %vm294_vm0, %v291_v30  ;;  %v1457_v28 = vld [vmem:[%s1976_s2 + $0x98] sm:$0xff]  ;;  %v1463_v30 = vld [vmem:[%s1975_s1 + $0xa8] sm:$0xff] }
  0x97   : > { %801 = vmatpush.msra.mxu1 %v718_v31  ;;  %v608_v33 = vpop.permute.xlu0 %607  ;;  %v613_v34 = vpop.permute.xlu1 %612  ;;  %v1470_v31 = vld [vmem:[%s1976_s2 + $0xa0] sm:$0xff] }
  0x98   : > { %v611_v37 = vmul.f32 %v610_v32, %v608_v33  ;;  %v615_v38 = vmul.f32 %v613_v34, %v610_v32  ;;  %v1486_v32 = vld [vmem:[%s1976_s2 + $0xc0] sm:$0xff]  ;;  %v1479_v33 = vld [vmem:[%s1975_s1 + $0xc8] sm:$0xff]  ;;  %v1464_v34 = vld [vmem:[%s1975_s1 + $0xb0] sm:$0xff] }
  0x9a   : > { %648 = vmatpush.msra.mxu2 %v611_v37  ;;  %698 = vmatpush.msra.mxu3 %v615_v38  ;;  %v1480_v37 = vld [vmem:[%s1975_s1 + $0xd0] sm:$0xff]  ;;  %v1465_v38 = vld [vmem:[%s1975_s1 + $0xb8] sm:$0xff] }
  0x9b   : > { %1397 = vmatmul.msk.f32.gmra.mxu3 %vm294_vm0, %v343_v35  ;;  %1402 = vmatmul.msk.f32.vlgmr.msrb.gmra.mxu2 %vm294_vm0, %v1398_v36  ;;  %v1471_v35 = vld [vmem:[%s1976_s2 + $0xa8] sm:$0xff] }
  0x9c   : > { %1395 = vmatmul.msk.f32.gmra.mxu1 %vm294_vm0, %v341_v39  ;;  %860 = vmatpush.msrb.mxu2 %v823_v43  ;;  %v1487_v36 = vld [vmem:[%s1976_s2 + $0xc8] sm:$0xff]  ;;  %v1472_v39 = vld [vmem:[%s1976_s2 + $0xb0] sm:$0xff]  ;;  %v1494_v43 = vld [vmem:[%s1975_s1 + $0xe0] sm:$0xff] }
  0x9d   : > { %1418 = vmatmul.msk.f32.vlgmr.msrb.gmra.mxu0 %vm294_vm0, %v1414_v40  ;;  %v1488_v40 = vld [vmem:[%s1976_s2 + $0xd0] sm:$0xff] }
  0x9f   : > { %v825_v44 = vpop.permute.xlu0 %824  ;;  %v929_v52 = vpop.permute.xlu1 %928 }
  0xa0   : > { %v827_v47 = vmul.f32 %v825_v44, %v822_v41  ;;  %v932_v54 = vmul.f32 %v931_v51, %v929_v52  ;;  %v1481_v41 = vld [vmem:[%s1975_s1 + $0xd8] sm:$0xff]  ;;  %v1503_v51 = vld [vmem:[%s1976_s2 + $0xe8] sm:$0xff] }
  0xa1   : > { %v1489_v44 = vld [vmem:[%s1976_s2 + $0xd8] sm:$0xff]  ;;  %v1519_v52 = vld [vmem:[%s1976_s2 + $0x108] sm:$0xff] }
  0xa2   : > { %969 = vmatpush.msrb.mxu0 %v932_v54  ;;  %v1512_v54 = vld [vmem:[%s1975_s1 + $0x110] sm:$0xff] }
  0xa3   : > { %1403 = vmatmul.msk.f32.gmra.mxu2 %vm294_vm0, %v1399_v45  ;;  %1410 = vmatmul.msk.f32.vlgmr.msrb.gmra.mxu3 %vm294_vm0, %v1406_v46  ;;  %v1510_v45 = vld [vmem:[%s1975_s1 + $0x100] sm:$0xff]  ;;  %v1495_v46 = vld [vmem:[%s1975_s1 + $0xe8] sm:$0xff] }
  0xa4   : > { %1426 = vmatmul.msk.f32.vlgmr.msrb.gmra.mxu1 %vm294_vm0, %v1422_v48  ;;  %910 = vmatpush.msrb.mxu3 %v827_v47  ;;  %v1502_v47 = vld [vmem:[%s1976_s2 + $0xe0] sm:$0xff] }
  0xa5   : > { %1419 = vmatmul.msk.f32.gmra.mxu0 %vm294_vm0, %v1415_v49  ;;  %1019 = vmatpush.msrb.mxu1 %v936_v55  ;;  %v1518_v48 = vld [vmem:[%s1976_s2 + $0x100] sm:$0xff]  ;;  %v1511_v49 = vld [vmem:[%s1975_s1 + $0x108] sm:$0xff] }
  0xa7   : > { %v1038_v5 = vpop.permute.xlu0 %1037  ;;  %v1043_v8 = vpop.permute.xlu1 %1042 }
  0xa8   : > { %v1041_v7 = vmul.f32 %v1040_v4, %v1038_v5  ;;  %v1045_v11 = vmul.f32 %v1043_v8, %v1040_v4 }
  0xab   : > { %1404 = vmatmul.msk.f32.gmra.mxu2 %vm294_vm0, %v1400_v56  ;;  %1411 = vmatmul.msk.f32.gmra.mxu3 %vm294_vm0, %v1407_v57 }
  0xac   : > { %1427 = vmatmul.msk.f32.gmra.mxu1 %vm294_vm0, %v1423_v58  ;;  %v1497_v58 = vld [vmem:[%s1975_s1 + $0xf8] sm:$0xff] }
  0xad   : > { %1420 = vmatmul.msk.f32.gmra.mxu0 %vm294_vm0, %v1416_v59  ;;  %v1504_v59 = vld [vmem:[%s1976_s2 + $0xf0] sm:$0xff] }
  0xaf   : > { %v1152_v15 = vpop.permute.xlu0 %1151  ;;  %v262_v55 = vpop.permute.xlu1 %261 }
  0xb0   : > { %v1154_v17 = vmul.f32 %v1554_v13, %v1152_v15 }
  0xb3   : > { %1405 = vmatmul.msk.f32.gmra.mxu2 %vm294_vm0, %v1401_v60  ;;  %1412 = vmatmul.msk.f32.gmra.mxu3 %vm294_vm0, %v1408_v61 }
  0xb4   : > { %1428 = vmatmul.msk.f32.gmra.mxu1 %vm294_vm0, %v1424_v62  ;;  %v1520_v62 = vld [vmem:[%s1976_s2 + $0x110] sm:$0xff] }
  0xb5   : > { %1421 = vmatmul.msk.f32.gmra.mxu0 %vm294_vm0, %v1417_v63 }
  0xb7   : > { %v272_v60 = vpop.permute.xlu0 %271 }
  0xbb   : > { %1413 = vmatmul.msk.f32.gmra.mxu3 %vm294_vm0, %v1409_v0  ;;  %1434 = vmatmul.msk.f32.vlgmr.msra.gmra.mxu2 %vm294_vm0, %v1430_v1  ;;  %v1513_v1 = vld [vmem:[%s1975_s1 + $0x118] sm:$0xff] }
  0xbc   : > { %1429 = vmatmul.msk.f32.gmra.mxu1 %vm294_vm0, %v1425_v2  ;;  %1078 = vmatpush.msra.mxu2 %v1041_v7 }
  0xbd   : > { %1450 = vmatmul.msk.f32.vlgmr.msra.gmra.mxu0 %vm294_vm0, %v1446_v3  ;;  %v267_v3 = vpop.permute.xlu2 %266 }
  0xbe   : > { %1187 = vmatpush.msra.mxu0 %v1150_v16 }
  0xc3   : > { %1435 = vmatmul.msk.f32.gmra.mxu2 %vm294_vm0, %v1431_v9  ;;  %1442 = vmatmul.msk.f32.vlgmr.msra.gmra.mxu3 %vm294_vm0, %v1438_v10  ;;  %v1505_v9 = vld [vmem:[%s1976_s2 + $0xf8] sm:$0xff]  ;;  %v277_v10 = vpop.permute.xlu1 %276 }
  0xc4   : > { %1458 = vmatmul.msk.f32.vlgmr.msra.gmra.mxu1 %vm294_vm0, %v1454_v6  ;;  %1128 = vmatpush.msra.mxu3 %v1045_v11  ;;  %v1521_v6 = vld [vmem:[%s1976_s2 + $0x118] sm:$0xff] }
  0xc5   : > { %1451 = vmatmul.msk.f32.gmra.mxu0 %vm294_vm0, %v1447_v12  ;;  %1237 = vmatpush.msra.mxu1 %v1154_v17 }
  0xcb   : > { %1436 = vmatmul.msk.f32.gmra.mxu2 %vm294_vm0, %v1432_v18  ;;  %1443 = vmatmul.msk.f32.gmra.mxu3 %vm294_vm0, %v1439_v19 }
  0xcc   : > { %1459 = vmatmul.msk.f32.gmra.mxu1 %vm294_vm0, %v1455_v20 }
  0xcd   : > { %1452 = vmatmul.msk.f32.gmra.mxu0 %vm294_vm0, %v1448_v21 }
  0xd3   : > { %1437 = vmatmul.msk.f32.gmra.mxu2 %vm294_vm0, %v1433_v22  ;;  %1444 = vmatmul.msk.f32.gmra.mxu3 %vm294_vm0, %v1440_v23 }
  0xd4   : > { %1460 = vmatmul.msk.f32.gmra.mxu1 %vm294_vm0, %v1456_v24 }
  0xd5   : > { %1453 = vmatmul.msk.f32.gmra.mxu0 %vm294_vm0, %v1449_v25 }
  0xdb   : > { %1445 = vmatmul.msk.f32.gmra.mxu3 %vm294_vm0, %v1441_v26  ;;  %1466 = vmatmul.msk.f32.vlgmr.msrb.gmra.mxu2 %vm294_vm0, %v1462_v27 }
  0xdc   : > { %1461 = vmatmul.msk.f32.gmra.mxu1 %vm294_vm0, %v1457_v28 }
  0xdd   : > { %1482 = vmatmul.msk.f32.vlgmr.msrb.gmra.mxu0 %vm294_vm0, %v1478_v29 }
  0xe3   : > { %1467 = vmatmul.msk.f32.gmra.mxu2 %vm294_vm0, %v1463_v30  ;;  %1474 = vmatmul.msk.f32.vlgmr.msrb.gmra.mxu3 %vm294_vm0, %v1470_v31 }
  0xe4   : > { %1490 = vmatmul.msk.f32.vlgmr.msrb.gmra.mxu1 %vm294_vm0, %v1486_v32 }
  0xe5   : > { %1483 = vmatmul.msk.f32.gmra.mxu0 %vm294_vm0, %v1479_v33 }
  0xeb   : > { %1468 = vmatmul.msk.f32.gmra.mxu2 %vm294_vm0, %v1464_v34  ;;  %1475 = vmatmul.msk.f32.gmra.mxu3 %vm294_vm0, %v1471_v35 }
  0xec   : > { %1491 = vmatmul.msk.f32.gmra.mxu1 %vm294_vm0, %v1487_v36 }
  0xed   : > { %1484 = vmatmul.msk.f32.gmra.mxu0 %vm294_vm0, %v1480_v37 }
  0xf3   : > { %1469 = vmatmul.msk.f32.gmra.mxu2 %vm294_vm0, %v1465_v38  ;;  %1476 = vmatmul.msk.f32.gmra.mxu3 %vm294_vm0, %v1472_v39 }
  0xf4   : > { %1492 = vmatmul.msk.f32.gmra.mxu1 %vm294_vm0, %v1488_v40 }
  0xf5   : > { %1485 = vmatmul.msk.f32.gmra.mxu0 %vm294_vm0, %v1481_v41 }
  0xfb   : > { %1477 = vmatmul.msk.f32.gmra.mxu3 %vm294_vm0, %v1473_v42  ;;  %1498 = vmatmul.msk.f32.vlgmr.msra.gmra.mxu2 %vm294_vm0, %v1494_v43 }
  0xfc   : > { %1493 = vmatmul.msk.f32.gmra.mxu1 %vm294_vm0, %v1489_v44 }
  0xfd   : > { %1514 = vmatmul.msk.f32.vlgmr.msra.gmra.mxu0 %vm294_vm0, %v1510_v45 }
 0x103   : > { %1499 = vmatmul.msk.f32.gmra.mxu2 %vm294_vm0, %v1495_v46  ;;  %1506 = vmatmul.msk.f32.vlgmr.msra.gmra.mxu3 %vm294_vm0, %v1502_v47 }
 0x104   : > { %1522 = vmatmul.msk.f32.vlgmr.msra.gmra.mxu1 %vm294_vm0, %v1518_v48 }
 0x105   : > { %1515 = vmatmul.msk.f32.gmra.mxu0 %vm294_vm0, %v1511_v49 }
 0x108   : > { %v324_v53 = vpop.f32.mrf.mxu0 }
 0x109   : > { %v336_v57 = vadd.f32 %v324_v53, %v262_v55 }
 0x10b   : > { %1500 = vmatmul.msk.f32.gmra.mxu2 %vm294_vm0, %v1496_v50  ;;  %1507 = vmatmul.msk.f32.gmra.mxu3 %vm294_vm0, %v1503_v51 }
 0x10c   : > { %1523 = vmatmul.msk.f32.gmra.mxu1 %vm294_vm0, %v1519_v52 }
 0x10d   : > { %1516 = vmatmul.msk.f32.gmra.mxu0 %vm294_vm0, %v1512_v54 }
 0x10e   : > { %v330_v56 = vpop.f32.mrf.mxu2 }
 0x10f   : > { %v338_v2 = vadd.f32 %v330_v56, %v272_v60 }
 0x111   : > { %v373_v61 = vpop.f32.mrf.mxu1 }
 0x112   : > { %v385_v63 = vadd.f32 %v373_v61, %v336_v57  ;;  %v327_v0 = vpop.f32.mrf.mxu0 }
 0x113   : > { %1501 = vmatmul.msk.f32.gmra.mxu2 %vm294_vm0, %v1497_v58  ;;  %1508 = vmatmul.msk.f32.gmra.mxu3 %vm294_vm0, %v1504_v59  ;;  %v337_v7 = vadd.f32 %v327_v0, %v267_v3 }
 0x114   : > { %1524 = vmatmul.msk.f32.gmra.mxu1 %vm294_vm0, %v1520_v62 }
 0x115   : > { %1517 = vmatmul.msk.f32.gmra.mxu0 %vm294_vm0, %v1513_v1 }
 0x116   : > { %v333_v4 = vpop.f32.mrf.mxu2  ;;  %v379_v5 = vpop.f32.mrf.mxu3 }
 0x117   : > { %v387_v8 = vadd.f32 %v379_v5, %v338_v2  ;;  %v339_v14 = vadd.f32 %v333_v4, %v277_v10 }
 0x119   : > { %v376_v11 = vpop.f32.mrf.mxu1 }
 0x11a   : > { %v386_v12 = vadd.f32 %v376_v11, %v337_v7  ;;  %v541_v13 = vpop.f32.mrf.mxu0 }
 0x11b   : > { %1509 = vmatmul.msk.f32.gmra.mxu3 %vm294_vm0, %v1505_v9 }
 0x11c   : > { %1525 = vmatmul.msk.f32.gmra.mxu1 %vm294_vm0, %v1521_v6 }
 0x11e   : > { %v382_v15 = vpop.f32.mrf.mxu3  ;;  %v432_v16 = vpop.f32.mrf.mxu2 }
 0x11f   : > { %v388_v17 = vadd.f32 %v382_v15, %v339_v14  ;;  %v444_v18 = vadd.f32 %v432_v16, %v385_v63 }
 0x121   : > { %v591_v19 = vpop.f32.mrf.mxu1 }
 0x122   : > { %v544_v20 = vpop.f32.mrf.mxu0 }
 0x126   : > { %v435_v21 = vpop.f32.mrf.mxu2  ;;  %v482_v22 = vpop.f32.mrf.mxu3 }
 0x127   : > { %v445_v23 = vadd.f32 %v435_v21, %v386_v12  ;;  %v494_v24 = vadd.f32 %v482_v22, %v444_v18 }
 0x129   : > { %v553_v25 = vadd.f32 %v541_v13, %v494_v24  ;;  %v594_v26 = vpop.f32.mrf.mxu1 }
 0x12a   : > { %v547_v27 = vpop.f32.mrf.mxu0 }
 0x12b   : > { %v603_v28 = vadd.f32 %v591_v19, %v553_v25 }
 0x12e   : > { %v438_v29 = vpop.f32.mrf.mxu2  ;;  %v485_v30 = vpop.f32.mrf.mxu3 }
 0x12f   : > { %v446_v31 = vadd.f32 %v438_v29, %v387_v8  ;;  %v495_v32 = vadd.f32 %v485_v30, %v445_v23 }
 0x131   : > { %v554_v33 = vadd.f32 %v544_v20, %v495_v32  ;;  %v597_v34 = vpop.f32.mrf.mxu1 }
 0x132   : > { %v550_v35 = vpop.f32.mrf.mxu0 }
 0x133   : > { %v604_v36 = vadd.f32 %v594_v26, %v554_v33 }
 0x136   : > { %v441_v37 = vpop.f32.mrf.mxu2  ;;  %v488_v38 = vpop.f32.mrf.mxu3 }
 0x137   : > { %v447_v39 = vadd.f32 %v441_v37, %v388_v17  ;;  %v496_v40 = vadd.f32 %v488_v38, %v446_v31 }
 0x139   : > { %v555_v41 = vadd.f32 %v547_v27, %v496_v40  ;;  %v600_v42 = vpop.f32.mrf.mxu1 }
 0x13a   : > { %v753_v43 = vpop.f32.mrf.mxu0 }
 0x13b   : > { %v605_v44 = vadd.f32 %v597_v34, %v555_v41 }
 0x13e   : > { %v491_v45 = vpop.f32.mrf.mxu3  ;;  %v650_v46 = vpop.f32.mrf.mxu2 }
 0x13f   : > { %v497_v47 = vadd.f32 %v491_v45, %v447_v39  ;;  %v662_v9 = vadd.f32 %v650_v46, %v603_v28 }
 0x141   : > { %v556_v48 = vadd.f32 %v550_v35, %v497_v47  ;;  %v803_v49 = vpop.f32.mrf.mxu1 }
 0x142   : > { %v756_v50 = vpop.f32.mrf.mxu0 }
 0x143   : > { %v606_v51 = vadd.f32 %v600_v42, %v556_v48 }
 0x146   : > { %v653_v52 = vpop.f32.mrf.mxu2  ;;  %v700_v53 = vpop.f32.mrf.mxu3 }
 0x147   : > { %v712_v6 = vadd.f32 %v700_v53, %v662_v9  ;;  %v663_v14 = vadd.f32 %v653_v52, %v604_v36 }
 0x149   : > { %v806_v54 = vpop.f32.mrf.mxu1  ;;  %v765_v13 = vadd.f32 %v753_v43, %v712_v6 }
 0x14a   : > { %v759_v55 = vpop.f32.mrf.mxu0 }
 0x14b   : > { %v815_v18 = vadd.f32 %v803_v49, %v765_v13 }
 0x14e   : > { %v656_v56 = vpop.f32.mrf.mxu2  ;;  %v703_v57 = vpop.f32.mrf.mxu3 }
 0x14f   : > { %v713_v19 = vadd.f32 %v703_v57, %v663_v14  ;;  %v664_v24 = vadd.f32 %v656_v56, %v605_v44 }
 0x151   : > { %v809_v58 = vpop.f32.mrf.mxu1  ;;  %v766_v22 = vadd.f32 %v756_v50, %v713_v19 }
 0x152   : > { %v762_v59 = vpop.f32.mrf.mxu0 }
 0x153   : > { %v816_v27 = vadd.f32 %v806_v54, %v766_v22 }
 0x156   : > { %v659_v60 = vpop.f32.mrf.mxu2  ;;  %v706_v61 = vpop.f32.mrf.mxu3 }
 0x157   : > { %v714_v28 = vadd.f32 %v706_v61, %v664_v24  ;;  %v665_v36 = vadd.f32 %v659_v60, %v606_v51 }
 0x159   : > { %v812_v62 = vpop.f32.mrf.mxu1  ;;  %v767_v33 = vadd.f32 %v759_v55, %v714_v28 }
 0x15a   : > { %v971_v63 = vpop.f32.mrf.mxu0 }
 0x15b   : > { %v817_v40 = vadd.f32 %v809_v58, %v767_v33 }
 0x15e   : > { %v709_v0 = vpop.f32.mrf.mxu3  ;;  %v862_v1 = vpop.f32.mrf.mxu2 }
 0x15f   : > { %v874_v20 = vadd.f32 %v862_v1, %v815_v18  ;;  %v715_v41 = vadd.f32 %v709_v0, %v665_v36 }
 0x161   : > { %v1021_v2 = vpop.f32.mrf.mxu1  ;;  %v768_v47 = vadd.f32 %v762_v59, %v715_v41 }
 0x162   : > { %v974_v3 = vpop.f32.mrf.mxu0 }
 0x163   : > { %v818_v56 = vadd.f32 %v812_v62, %v768_v47 }
 0x166   : > { %v865_v4 = vpop.f32.mrf.mxu2  ;;  %v912_v5 = vpop.f32.mrf.mxu3 }
 0x167   : > { %v924_v23 = vadd.f32 %v912_v5, %v874_v20  ;;  %v875_v31 = vadd.f32 %v865_v4, %v816_v27 }
 0x169   : > { %v1024_v7 = vpop.f32.mrf.mxu1  ;;  %v983_v29 = vadd.f32 %v971_v63, %v924_v23 }
 0x16a   : > { %v977_v8 = vpop.f32.mrf.mxu0 }
 0x16b   : > { %v1033_v34 = vadd.f32 %v1021_v2, %v983_v29 }
 0x16e   : > { %v868_v10 = vpop.f32.mrf.mxu2  ;;  %v915_v11 = vpop.f32.mrf.mxu3 }
 0x16f   : > { %v925_v35 = vadd.f32 %v915_v11, %v875_v31  ;;  %v876_v44 = vadd.f32 %v868_v10, %v817_v40 }
 0x171   : > { %v1027_v12 = vpop.f32.mrf.mxu1  ;;  %v984_v42 = vadd.f32 %v974_v3, %v925_v35 }
 0x172   : > { %v980_v15 = vpop.f32.mrf.mxu0 }
 0x173   : > { %v1034_v48 = vadd.f32 %v1024_v7, %v984_v42 }
 0x176   : > { %v871_v16 = vpop.f32.mrf.mxu2  ;;  %v918_v17 = vpop.f32.mrf.mxu3 }
 0x177   : > { %v926_v49 = vadd.f32 %v918_v17, %v876_v44  ;;  %v877_v58 = vadd.f32 %v871_v16, %v818_v56 }
 0x179   : > { %v1030_v21 = vpop.f32.mrf.mxu1  ;;  %v985_v51 = vadd.f32 %v977_v8, %v926_v49 }
 0x17a   : > { %v1189_v30 = vpop.f32.mrf.mxu0 }
 0x17b   : > { %v1035_v63 = vadd.f32 %v1027_v12, %v985_v51 }
 0x17e   : > { %v921_v25 = vpop.f32.mrf.mxu3  ;;  %v1080_v26 = vpop.f32.mrf.mxu2 }
 0x17f   : > { %v1092_v37 = vadd.f32 %v1080_v26, %v1033_v34  ;;  %v927_v0 = vadd.f32 %v921_v25, %v877_v58 }
 0x181   : > { %v1239_v32 = vpop.f32.mrf.mxu1  ;;  %v986_v10 = vadd.f32 %v980_v15, %v927_v0 }
 0x182   : > { %v1192_v46 = vpop.f32.mrf.mxu0 }
 0x183   : > { %v1036_v6 = vadd.f32 %v1030_v21, %v986_v10 }
 0x186   : > { %v1083_v38 = vpop.f32.mrf.mxu2  ;;  %v1130_v39 = vpop.f32.mrf.mxu3 }
 0x187   : > { %v1142_v43 = vadd.f32 %v1130_v39, %v1092_v37  ;;  %v1093_v53 = vadd.f32 %v1083_v38, %v1034_v48 }
 0x189   : > { %v1201_v45 = vadd.f32 %v1189_v30, %v1142_v43  ;;  %v1242_v52 = vpop.f32.mrf.mxu1 }
 0x18a   : > { %v1195_v2 = vpop.f32.mrf.mxu0 }
 0x18b   : > { %v1251_v50 = vadd.f32 %v1239_v32, %v1201_v45 }
 0x18d   : > { %v1526_v54 = vmul.f32 -1.442695, %v1251_v50 }
 0x18e   : > { %v1133_v55 = vpop.f32.mrf.mxu3  ;;  %v1086_v60 = vpop.f32.mrf.mxu2 }
 0x18f   : > { %1555 = vpow2.f32 %v1526_v54  ;;  %v1143_v57 = vadd.f32 %v1133_v55, %v1093_v53  ;;  %v1094_v59 = vadd.f32 %v1086_v60, %v1035_v63 }
 0x191   : > { %v1202_v61 = vadd.f32 %v1192_v46, %v1143_v57  ;;  %v1245_v9 = vpop.f32.mrf.mxu1  ;;  %v1313_v46 = vld [vmem:[#allocation3] sm:$0xff] }
 0x192   : > { %v1198_v20 = vpop.f32.mrf.mxu0 }
 0x193   : > { %v1252_v1 = vadd.f32 %v1242_v52, %v1202_v61 }
 0x195   : > { %v1556_v3 = vpop.eup %1555  ;;  %v1527_v4 = vmul.f32 -1.442695, %v1252_v1 }
 0x196   : > { %v1258_v5 = vadd.f32 1.0, %v1556_v3  ;;  %v1136_v7 = vpop.f32.mrf.mxu3  ;;  %v1089_v8 = vpop.f32.mrf.mxu2 }
 0x197   : > { %1557 = vpow2.f32 %v1527_v4  ;;  %v1144_v11 = vadd.f32 %v1136_v7, %v1094_v59  ;;  %v1095_v16 = vadd.f32 %v1089_v8, %v1036_v6 }
 0x198   : > { %1559 = vrcp.f32 %v1258_v5  ;;  %v1270_v29 = vand.u32 2147483648, %v1258_v5  ;;  %vm1264_vm2 = vweird.f32 %v1258_v5  ;;  %v1268_v32 = vand.u32 2147483647, %v1258_v5 }
 0x199   : > { %v1203_v62 = vadd.f32 %v1195_v2, %v1144_v11  ;;  %v1248_v24 = vpop.f32.mrf.mxu1 }
 0x19a   : > { %v1271_v36 = vor.u32 1.1754944e-38, %v1270_v29  ;;  %vm1269_vm4 = vcmp.eq.f32.partialorder %v1268_v32, 8.507059e+37 }
 0x19b   : > { %v1253_v13 = vadd.f32 %v1245_v9, %v1203_v62 }
 0x19d   : > { %v1558_v14 = vpop.eup %1557  ;;  %v1528_v12 = vmul.f32 -1.442695, %v1253_v13 }
 0x19e   : > { %v1560_v17 = vpop.eup %1559  ;;  %v1277_v18 = vadd.f32 1.0, %v1558_v14  ;;  %v1139_v19 = vpop.f32.mrf.mxu3 }
 0x19f   : > { %v1260_v22 = vmul.f32 %v1560_v17, %v1258_v5  ;;  %1561 = vpow2.f32 %v1528_v12  ;;  %v1145_v23 = vadd.f32 %v1139_v19, %v1095_v16  ;;  %vm1265_vm1 = vweird.f32 %v1560_v17 }
 0x1a0   : > { %1563 = vrcp.f32 %v1277_v18  ;;  %vm1266_vm3 = vmor %vm1264_vm2, %vm1265_vm1  ;;  %v1289_v37 = vand.u32 2147483648, %v1277_v18  ;;  %v1287_v41 = vand.u32 2147483647, %v1277_v18  ;;  %vm1283_vm6 = vweird.f32 %v1277_v18 }
 0x1a1   : > { %v1261_v15 = vsub.f32 1.0, %v1260_v22  ;;  %v1204_v25 = vadd.f32 %v1198_v20, %v1145_v23 }
 0x1a2   : > { %v1290_v45 = vor.u32 1.1754944e-38, %v1289_v37  ;;  %vm1288_vm8 = vcmp.eq.f32.partialorder %v1287_v41, 8.507059e+37 }
 0x1a3   : > { %v1254_v26 = vadd.f32 %v1248_v24, %v1204_v25  ;;  %v1262_v27 = vmul.f32 %v1560_v17, %v1261_v15 }
 0x1a5   : > { %v1562_v28 = vpop.eup %1561  ;;  %v1263_v21 = vadd.f32 %v1560_v17, %v1262_v27  ;;  %1565 = vtanh.f32 %v1254_v26 }
 0x1a6   : > { %v1564_v30 = vpop.eup %1563  ;;  %v1296_v31 = vadd.f32 1.0, %v1562_v28 }
 0x1a7   : > { %v1279_v33 = vmul.f32 %v1564_v30, %v1277_v18  ;;  %v1267_v34 = vsel %vm1266_vm3, %v1560_v17, %v1263_v21  ;;  %vm1284_vm5 = vweird.f32 %v1564_v30 }
 0x1a8   : > { %1567 = vrcp.f32 %v1296_v31  ;;  %v1272_v40 = vsel %vm1269_vm4, %v1271_v36, %v1267_v34  ;;  %vm1285_vm7 = vmor %vm1283_vm6, %vm1284_vm5  ;;  %v1308_v56 = vand.u32 2147483648, %v1296_v31  ;;  %vm1302_vm10 = vweird.f32 %v1296_v31 }
 0x1a9   : > { %v1280_v35 = vsub.f32 1.0, %v1279_v33  ;;  %v1306_v51 = vand.u32 2147483647, %v1296_v31 }
 0x1aa   : > { %v1309_v60 = vor.u32 1.1754944e-38, %v1308_v56 }
 0x1ab   : > { %v1566_v38 = vpop.eup %1565  ;;  %v1281_v39 = vmul.f32 %v1564_v30, %v1280_v35  ;;  %vm1307_vm12 = vcmp.eq.f32.partialorder %v1306_v51, 8.507059e+37 }
 0x1ac   : > { %v1315_v42 = vmul.f32 %v1566_v38, %v1272_v40 }
 0x1ad   : > { %v1282_v43 = vadd.f32 %v1564_v30, %v1281_v39 }
 0x1ae   : > { %v1568_v44 = vpop.eup %1567 }
 0x1af   : > { %v1298_v47 = vmul.f32 %v1568_v44, %v1296_v31  ;;  %v1286_v48 = vsel %vm1285_vm7, %v1564_v30, %v1282_v43  ;;  %vm1303_vm9 = vweird.f32 %v1568_v44 }
 0x1b0   : > { %v1291_v49 = vsel %vm1288_vm8, %v1290_v45, %v1286_v48  ;;  %vm1304_vm11 = vmor %vm1302_vm10, %vm1303_vm9 }
 0x1b1   : > { %v1299_v50 = vsub.f32 1.0, %v1298_v47  ;;  %v1314_v52 = vmul.f32 %v1313_v46, %v1291_v49 }
 0x1b3   : > { %v1300_v53 = vmul.f32 %v1568_v44, %v1299_v50  ;;  %v1316_v54 = vadd.f32 %v1315_v42, %v1314_v52 }
 0x1b5   : > { %v1301_v55 = vadd.f32 %v1568_v44, %v1300_v53  ;;  %1569 = vtanh.f32 %v1316_v54  ;;  %1320 = vst [vmem:[#allocation3] sm:$0xff] %v1316_v54 }
 0x1b6   : > { %1322 = vst [vmem:[%s1980_s6] sm:$0xff] %v1316_v54 }
 0x1b7   : > { %v1305_v57 = vsel %vm1304_vm11, %v1568_v44, %v1301_v55 }
 0x1b8   : > { %v1310_v61 = vsel %vm1307_vm12, %v1309_v60, %v1305_v57 }
 0x1bb   : > { %v1570_v58 = vpop.eup %1569 }
 0x1bc   : > { %v1318_v63 = vmul.f32 %v1570_v58, %v1310_v61 }
 0x1be   : > { %1319 = vst [vmem:[#allocation2] sm:$0xff] %v1318_v63 }
 0x1bf   : > { %1321 = vst [vmem:[%s1638_s30] sm:$0xff] %v1318_v63 }
 0x1c0 PF: > { %s17_s21 = sadd.s32 1, %s1577_s21  }
 0x1c1   : > { %p14_p5 = scmp.ge.s32.totalorder %s17_s21, 6  }
 0x1c3   :  { %16 = sbr.rel (!%p14_p5) target bundleno = 1 (0x1), region = 98 }

// kernel: convlstm_regression_forward.3
= control target key start
LH: loop header
LB: loop body
LE: loop exit
PB: predicated region body
PF: predicated region fallthrough
CT: control target
= control target key end

     0   :  { %s1662_s21 = smov 0   ;;  %s2022_s0 = inlined_call_operand.vmem [shape: f32[4,2,128], index: 0, kind: input, shape index: {}]   ;;  %s2023_s1 = inlined_call_operand.vmem [shape: f32[3,3,32,2], index: 1, kind: input, shape index: {}]   ;;  %s2024_s2 = inlined_call_operand.vmem [shape: f32[3,3,32,8], index: 2, kind: input, shape index: {}]   ;;  %s2025_s3 = inlined_call_operand.vmem [shape: f32[32,1], index: 3, kind: input, shape index: {}]   ;;  %s2026_s4 = inlined_call_operand.vmem [shape: f32[9,128], index: 4, kind: input, shape index: {}]   ;;  %s2027_s5 = inlined_call_operand.vmem [shape: f32[4,8,128], index: 5, kind: output, shape index: {0}]   ;;  %s2028_s6 = inlined_call_operand.vmem [shape: f32[8,128], index: 6, kind: output, shape index: {1}]  }
   0x1 LB: > { %s1411_s22 = sadd.s32 4294967295, %s1615_s21   ;;  %p1415_p0 = scmp.ge.s32.totalorder %s1615_s21, 1  ;;  %s1615_s21 = sphi %s1662_s21, %s17_s21  }
   0x2   : > { %p209_p1 = scmp.lt.s32.totalorder %s1615_s21, 5 }
   0x4   : > { %p210_p2 = pnand %p1415_p0, %p209_p1 }
   0x5   : > { %p237_p3 = scmp.lt.s32.totalorder (!%p210_p2), %s1411_s22, 3  ;;  %p1418_p4 = scmp.ne.s32.totalorder (!%p210_p2), %s1411_s22, 0 }
   0x6   : > { %213 = sbr.rel (%p210_p2) target bundleno = 448 (0x1c0), region = 40 }
   0xb   : > { %s238_s23 = scalar_select %p237_p3, %s1411_s22, 3 }
   0xc   : > { %248 = sbr.rel (%p1418_p4) target bundleno = 20 (0x14), region = 44 }
   0xd   : > { %s1416_s24 = sshll.u32 %s238_s23, 1  ;;  %s1417_s25 = sshll.u32 %s238_s23, 3 }
   0xe   : > { %s240_s28 = scalar_lea.vmem %s2022_s0, %s1416_s24  ;;  %s1676_s7 = scalar_lea.vmem %s2027_s5, %s1417_s25 }
  0x11   : > { %v1617_v0 = vmov 0.0  }
  0x12   : > { %249 = vst [vmem:[#allocation2] sm:$0xff] %v1617_v0 }
  0x13   : > { %250 = vst [vmem:[#allocation3] sm:$0xff] %v1617_v0 }
  0x14 PF: > { %v251_v1 = vld [vmem:[%s240_s28] sm:$0x3]  ;;  %s1618_s8 = smov 9   ;;  %s1619_s9 = smov 8   ;;  %v257_v4 = vld [vmem:[%s2025_s3 + $0x10] sm:$0xff]  ;;  %v1626_v5 = vmov 0  }
  0x15   : > { %280 = vrot.lane.b32.xlu0 %v251_v1, %s1618_s8  ;;  %394 = vrot.lane.b32.xlu1 %v251_v1, %s1619_s9  ;;  %s1620_s10 = smov 7   ;;  %s1621_s11 = smov 1   ;;  %v255_v3 = vld [vmem:[%s2025_s3] sm:$0xff]  ;;  %v258_v8 = vld [vmem:[%s2025_s3 + $0x18] sm:$0xff]  ;;  %vm307_vm0 = vcmask 1041408   ;;  %vm294_vm1 = vcmask 15360  }
  0x16   : > { %506 = vrot.lane.b32.xlu2 %v251_v1, %s1620_s10  ;;  %s1622_s12 = smov 127   ;;  %s1623_s13 = smov 121   ;;  %1591 = vset.pattern.permute.xlu0 %v1626_v5  ;;  %v1697_v6 = vld [vmem:[%s2026_s4] sm:$0xff]  ;;  %v292_v17 = vld [vmem:[%s2023_s1 + $0x10] sm:$0xff]  ;;  %v293_v26 = vld [vmem:[%s2023_s1 + $0x18] sm:$0xff]  ;;  %vm348_vm2 = vcmask 64512  }
  0x17   : > { %s1624_s14 = smov 120   ;;  %s1625_s15 = smov 119   ;;  %1589 = vset.pattern.permute.xlu1 %v1626_v5  ;;  %1590 = vset.pattern.permute.xlu2 %v1626_v5  ;;  %v509_v7 = vperm.slane %v1697_v6, 2  ;;  %v283_v9 = vperm.slane %v1697_v6, 0  ;;  %v397_v10 = vperm.slane %v1697_v6, 1  ;;  %v290_v18 = vld [vmem:[%s2023_s1] sm:$0xff] }
  0x18   : > { %v730_v19 = vperm.slane %v1697_v6, 4  ;;  %v346_v27 = vld [vmem:[%s2024_s2 + $0x10] sm:$0xff]  ;;  %v344_v29 = vld [vmem:[%s2024_s2] sm:$0xff]  ;;  %v291_v30 = vld [vmem:[%s2023_s1 + $0x8] sm:$0xff]  ;;  %v621_v32 = vperm.slane %v1697_v6, 3  ;;  %v839_v41 = vperm.slane %v1697_v6, 5 }
  0x19   : > { %v1678_v2 = vld [vmem:[#allocation2] sm:$0xff]  ;;  %v347_v35 = vld [vmem:[%s2024_s2 + $0x18] sm:$0xff]  ;;  %v345_v39 = vld [vmem:[%s2024_s2 + $0x8] sm:$0xff]  ;;  %v951_v51 = vperm.slane %v1697_v6, 6 }
  0x1a   : > { %v731_v20 = vmul.f32 %v730_v19, %v251_v1  ;;  %v732_v31 = vmul.f32 %v730_v19, %v1678_v2  ;;  %v1428_v36 = vld [vmem:[%s2023_s1 + $0x20] sm:$0xff]  ;;  %v1429_v45 = vld [vmem:[%s2023_s1 + $0x28] sm:$0xff]  ;;  %v1430_v56 = vld [vmem:[%s2023_s1 + $0x30] sm:$0xff] }
  0x1b   : > { %v1445_v40 = vld [vmem:[%s2023_s1 + $0x40] sm:$0xff]  ;;  %v1446_v49 = vld [vmem:[%s2023_s1 + $0x48] sm:$0xff]  ;;  %v1447_v59 = vld [vmem:[%s2023_s1 + $0x50] sm:$0xff] }
  0x1c   : > { %v1437_v46 = vld [vmem:[%s2024_s2 + $0x20] sm:$0xff]  ;;  %v256_v50 = vld [vmem:[%s2025_s3 + $0x8] sm:$0xff]  ;;  %v1431_v60 = vld [vmem:[%s2023_s1 + $0x38] sm:$0xff] }
  0x1d   : > { %286 = vrot.lane.b32.xlu0 %v1678_v2, %s1618_s8  ;;  %399 = vrot.lane.b32.xlu1 %v1678_v2, %s1619_s9  ;;  %v1454_v48 = vld [vmem:[%s2024_s2 + $0x40] sm:$0xff]  ;;  %v1438_v57 = vld [vmem:[%s2024_s2 + $0x28] sm:$0xff] }
  0x1e   : > { %511 = vrot.lane.b32.xlu2 %v1678_v2, %s1620_s10  ;;  %v1455_v58 = vld [vmem:[%s2024_s2 + $0x48] sm:$0xff]  ;;  %v1439_v61 = vld [vmem:[%s2024_s2 + $0x30] sm:$0xff]  ;;  %v1448_v63 = vld [vmem:[%s2023_s1 + $0x58] sm:$0xff] }
  0x1f   : > { %v1456_v62 = vld [vmem:[%s2024_s2 + $0x50] sm:$0xff]  ;;  %v1440_v0 = vld [vmem:[%s2024_s2 + $0x38] sm:$0xff]  ;;  %v1472_v19 = vld [vmem:[%s2024_s2 + $0x68] sm:$0xff] }
  0x25   : > { %618 = vrot.lane.b32.xlu0 %v251_v1, %s1621_s11  ;;  %623 = vrot.lane.b32.xlu1 %v1678_v2, %s1621_s11 }
  0x26   : > { %836 = vrot.lane.b32.xlu2 %v251_v1, %s1622_s12 }
  0x2d   : > { %841 = vrot.lane.b32.xlu0 %v1678_v2, %s1622_s12  ;;  %948 = vrot.lane.b32.xlu1 %v251_v1, %s1623_s13 }
  0x2e   : > { %953 = vrot.lane.b32.xlu2 %v1678_v2, %s1623_s13 }
  0x35   : > { %1060 = vrot.lane.b32.xlu0 %v251_v1, %s1624_s14  ;;  %1065 = vrot.lane.b32.xlu1 %v1678_v2, %s1624_s14 }
  0x36   : > { %1172 = vrot.lane.b32.xlu2 %v251_v1, %s1625_s15  ;;  %v1462_v1 = vld [vmem:[%s2023_s1 + $0x60] sm:$0xff] }
  0x3d   : > { %1177 = vrot.lane.b32.xlu0 %v1678_v2, %s1625_s15  ;;  %261 = vperm.xlu1 %1589, %v255_v3   ;;  %v1457_v2 = vld [vmem:[%s2024_s2 + $0x58] sm:$0xff]  ;;  %v1479_v3 = vld [vmem:[%s2023_s1 + $0x80] sm:$0xff] }
  0x3e   : > { %266 = vperm.xlu2 %1590, %v256_v50   ;;  %v1532_v50 = vld [vmem:[%s2023_s1 + $0xf0] sm:$0xff] }
  0x45   : > { %271 = vperm.xlu0 %1591, %v257_v4   ;;  %276 = vperm.xlu1 %1589, %v258_v8   ;;  %v1063_v4 = vperm.slane %v1697_v6, 7  ;;  %v1488_v6 = vld [vmem:[%s2024_s2 + $0x80] sm:$0xff] }
  0x70   : > { %v507_v11 = vpop.permute.xlu2 %506 }
  0x71   : > { %v510_v14 = vmul.f32 %v509_v7, %v507_v11 }
  0x78   : > { %v512_v21 = vpop.permute.xlu2 %511 }
  0x79   : > { %v514_v28 = vmul.f32 %v512_v21, %v509_v7  ;;  %v1481_v21 = vld [vmem:[%s2023_s1 + $0x90] sm:$0xff] }
  0x80   : > { %v837_v42 = vpop.permute.xlu2 %836 }
  0x81   : > { %v840_v43 = vmul.f32 %v839_v41, %v837_v42  ;;  %v1508_v42 = vld [vmem:[%s2024_s2 + $0xb8] sm:$0xff] }
  0x87   : > { %v281_v12 = vpop.permute.xlu0 %280  ;;  %v395_v13 = vpop.permute.xlu1 %394 }
  0x88   : > { %v284_v15 = vmul.f32 %v283_v9, %v281_v12  ;;  %v398_v16 = vmul.f32 %v397_v10, %v395_v13  ;;  %v954_v53 = vpop.permute.xlu2 %953  ;;  %v1480_v12 = vld [vmem:[%s2023_s1 + $0x88] sm:$0xff] }
  0x89   : > { %v956_v55 = vmul.f32 %v954_v53, %v951_v51  ;;  %v1592_v13 = vld [vmem:[%s2026_s4 + $0x8] ss:$0 sm:$0xff] }
  0x8a   : > { %1419 = vmatpush.msk.msra.mxu0 %vm307_vm0, %v284_v15  ;;  %1569 = vmatpush.msk.msra.mxu2 %vm307_vm0, %v284_v15 }
  0x8b   : > { %1422 = vmatmul.msk.f32.vlgmr.msra.gmra.mxu2 %vm294_vm1, %v292_v17  ;;  %1420 = vmatmul.msk.f32.vlgmr.msra.gmra.mxu0 %vm294_vm1, %v290_v18  ;;  %v1464_v18 = vld [vmem:[%s2023_s1 + $0x70] sm:$0xff] }
  0x8c   : > { %1449 = vmatpush.msk.msrb.mxu0 %vm307_vm0, %v510_v14  ;;  %1432 = vmatpush.msk.msrb.mxu2 %vm307_vm0, %v398_v16 }
  0x8e   : > { %1483 = vmatpush.msk.msra.mxu0 %vm307_vm0, %v731_v20  ;;  %v1489_v20 = vld [vmem:[%s2024_s2 + $0x88] sm:$0xff] }
  0x8f   : > { %v287_v22 = vpop.permute.xlu0 %286  ;;  %v400_v23 = vpop.permute.xlu1 %399 }
  0x90   : > { %v289_v24 = vmul.f32 %v287_v22, %v283_v9  ;;  %v402_v25 = vmul.f32 %v400_v23, %v397_v10  ;;  %v1463_v9 = vld [vmem:[%s2023_s1 + $0x68] sm:$0xff]  ;;  %v1471_v10 = vld [vmem:[%s2024_s2 + $0x60] sm:$0xff]  ;;  %v1173_v14 = vpop.permute.xlu2 %1172  ;;  %v1465_v22 = vld [vmem:[%s2023_s1 + $0x78] sm:$0xff] }
  0x91   : > { %v1176_v16 = vmul.f32 %v1592_v13, %v1173_v14  ;;  %v1473_v23 = vld [vmem:[%s2024_s2 + $0x70] sm:$0xff] }
  0x92   : > { %376 = vmatpush.msra.mxu1 %v289_v24  ;;  %1570 = vmatpush.msra.mxu3 %v289_v24  ;;  %v1490_v24 = vld [vmem:[%s2024_s2 + $0x90] sm:$0xff] }
  0x93   : > { %1423 = vmatmul.msk.f32.gmra.mxu2 %vm294_vm1, %v293_v26  ;;  %1426 = vmatmul.msk.f32.vlgmr.msra.gmra.mxu3 %vm348_vm2, %v346_v27  ;;  %v1474_v26 = vld [vmem:[%s2024_s2 + $0x78] sm:$0xff]  ;;  %v1496_v27 = vld [vmem:[%s2023_s1 + $0xa0] sm:$0xff] }
  0x94   : > { %488 = vmatpush.msrb.mxu3 %v402_v25  ;;  %1424 = vmatmul.msk.f32.vlgmr.msra.gmra.mxu1 %vm348_vm2, %v344_v29  ;;  %v1482_v25 = vld [vmem:[%s2023_s1 + $0x98] sm:$0xff]  ;;  %v1513_v29 = vld [vmem:[%s2023_s1 + $0xc0] sm:$0xff] }
  0x95   : > { %600 = vmatpush.msrb.mxu1 %v514_v28  ;;  %1421 = vmatmul.msk.f32.gmra.mxu0 %vm294_vm1, %v291_v30  ;;  %v1491_v28 = vld [vmem:[%s2024_s2 + $0x98] sm:$0xff]  ;;  %v1497_v30 = vld [vmem:[%s2023_s1 + $0xa8] sm:$0xff] }
  0x97   : > { %818 = vmatpush.msra.mxu1 %v732_v31  ;;  %v619_v33 = vpop.permute.xlu0 %618  ;;  %v624_v34 = vpop.permute.xlu1 %623  ;;  %v1505_v31 = vld [vmem:[%s2024_s2 + $0xa0] sm:$0xff] }
  0x98   : > { %v622_v37 = vmul.f32 %v621_v32, %v619_v33  ;;  %v626_v38 = vmul.f32 %v624_v34, %v621_v32  ;;  %v1522_v32 = vld [vmem:[%s2024_s2 + $0xc0] sm:$0xff]  ;;  %v1514_v33 = vld [vmem:[%s2023_s1 + $0xc8] sm:$0xff]  ;;  %v1498_v34 = vld [vmem:[%s2023_s1 + $0xb0] sm:$0xff] }
  0x9a   : > { %1466 = vmatpush.msk.msra.mxu2 %vm307_vm0, %v622_v37  ;;  %712 = vmatpush.msra.mxu3 %v626_v38  ;;  %v1515_v37 = vld [vmem:[%s2023_s1 + $0xd0] sm:$0xff]  ;;  %v1499_v38 = vld [vmem:[%s2023_s1 + $0xb8] sm:$0xff] }
  0x9b   : > { %1427 = vmatmul.msk.f32.gmra.mxu3 %vm348_vm2, %v347_v35  ;;  %1433 = vmatmul.msk.f32.vlgmr.msrb.gmra.mxu2 %vm294_vm1, %v1428_v36  ;;  %v1506_v35 = vld [vmem:[%s2024_s2 + $0xa8] sm:$0xff] }
  0x9c   : > { %1425 = vmatmul.msk.f32.gmra.mxu1 %vm348_vm2, %v345_v39  ;;  %1500 = vmatpush.msk.msrb.mxu2 %vm307_vm0, %v840_v43  ;;  %v1523_v36 = vld [vmem:[%s2024_s2 + $0xc8] sm:$0xff]  ;;  %v1507_v39 = vld [vmem:[%s2024_s2 + $0xb0] sm:$0xff]  ;;  %v1530_v43 = vld [vmem:[%s2023_s1 + $0xe0] sm:$0xff] }
  0x9d   : > { %1450 = vmatmul.msk.f32.vlgmr.msrb.gmra.mxu0 %vm294_vm1, %v1445_v40  ;;  %v1524_v40 = vld [vmem:[%s2024_s2 + $0xd0] sm:$0xff] }
  0x9f   : > { %v842_v44 = vpop.permute.xlu0 %841  ;;  %v949_v52 = vpop.permute.xlu1 %948 }
  0xa0   : > { %v844_v47 = vmul.f32 %v842_v44, %v839_v41  ;;  %v952_v54 = vmul.f32 %v951_v51, %v949_v52  ;;  %v1516_v41 = vld [vmem:[%s2023_s1 + $0xd8] sm:$0xff]  ;;  %v1540_v51 = vld [vmem:[%s2024_s2 + $0xe8] sm:$0xff] }
  0xa1   : > { %v1525_v44 = vld [vmem:[%s2024_s2 + $0xd8] sm:$0xff]  ;;  %v1557_v52 = vld [vmem:[%s2024_s2 + $0x108] sm:$0xff] }
  0xa2   : > { %1517 = vmatpush.msk.msrb.mxu0 %vm307_vm0, %v952_v54  ;;  %v1549_v54 = vld [vmem:[%s2023_s1 + $0x110] sm:$0xff] }
  0xa3   : > { %1434 = vmatmul.msk.f32.gmra.mxu2 %vm294_vm1, %v1429_v45  ;;  %1441 = vmatmul.msk.f32.vlgmr.msrb.gmra.mxu3 %vm348_vm2, %v1437_v46  ;;  %v1547_v45 = vld [vmem:[%s2023_s1 + $0x100] sm:$0xff]  ;;  %v1531_v46 = vld [vmem:[%s2023_s1 + $0xe8] sm:$0xff] }
  0xa4   : > { %1458 = vmatmul.msk.f32.vlgmr.msrb.gmra.mxu1 %vm348_vm2, %v1454_v48  ;;  %930 = vmatpush.msrb.mxu3 %v844_v47  ;;  %v1539_v47 = vld [vmem:[%s2024_s2 + $0xe0] sm:$0xff] }
  0xa5   : > { %1451 = vmatmul.msk.f32.gmra.mxu0 %vm294_vm1, %v1446_v49  ;;  %1042 = vmatpush.msrb.mxu1 %v956_v55  ;;  %v1556_v48 = vld [vmem:[%s2024_s2 + $0x100] sm:$0xff]  ;;  %v1548_v49 = vld [vmem:[%s2023_s1 + $0x108] sm:$0xff] }
  0xa7   : > { %v1061_v5 = vpop.permute.xlu0 %1060  ;;  %v1066_v8 = vpop.permute.xlu1 %1065 }
  0xa8   : > { %v1064_v7 = vmul.f32 %v1063_v4, %v1061_v5  ;;  %v1068_v11 = vmul.f32 %v1066_v8, %v1063_v4 }
  0xab   : > { %1435 = vmatmul.msk.f32.gmra.mxu2 %vm294_vm1, %v1430_v56  ;;  %1442 = vmatmul.msk.f32.gmra.mxu3 %vm348_vm2, %v1438_v57 }
  0xac   : > { %1459 = vmatmul.msk.f32.gmra.mxu1 %vm348_vm2, %v1455_v58  ;;  %v1533_v58 = vld [vmem:[%s2023_s1 + $0xf8] sm:$0xff] }
  0xad   : > { %1452 = vmatmul.msk.f32.gmra.mxu0 %vm294_vm1, %v1447_v59  ;;  %v1541_v59 = vld [vmem:[%s2024_s2 + $0xf0] sm:$0xff] }
  0xaf   : > { %v1178_v15 = vpop.permute.xlu0 %1177  ;;  %v262_v55 = vpop.permute.xlu1 %261 }
  0xb0   : > { %v1180_v17 = vmul.f32 %v1592_v13, %v1178_v15 }
  0xb3   : > { %1436 = vmatmul.msk.f32.gmra.mxu2 %vm294_vm1, %v1431_v60  ;;  %1443 = vmatmul.msk.f32.gmra.mxu3 %vm348_vm2, %v1439_v61 }
  0xb4   : > { %1460 = vmatmul.msk.f32.gmra.mxu1 %vm348_vm2, %v1456_v62  ;;  %v1558_v62 = vld [vmem:[%s2024_s2 + $0x110] sm:$0xff] }
  0xb5   : > { %1453 = vmatmul.msk.f32.gmra.mxu0 %vm294_vm1, %v1448_v63 }
  0xb7   : > { %v272_v60 = vpop.permute.xlu0 %271 }
  0xbb   : > { %1444 = vmatmul.msk.f32.gmra.mxu3 %vm348_vm2, %v1440_v0  ;;  %1467 = vmatmul.msk.f32.vlgmr.msra.gmra.mxu2 %vm294_vm1, %v1462_v1  ;;  %v1550_v1 = vld [vmem:[%s2023_s1 + $0x118] sm:$0xff] }
  0xbc   : > { %1461 = vmatmul.msk.f32.gmra.mxu1 %vm348_vm2, %v1457_v2  ;;  %1534 = vmatpush.msk.msra.mxu2 %vm307_vm0, %v1064_v7 }
  0xbd   : > { %1484 = vmatmul.msk.f32.vlgmr.msra.gmra.mxu0 %vm294_vm1, %v1479_v3  ;;  %v267_v3 = vpop.permute.xlu2 %266 }
  0xbe   : > { %1551 = vmatpush.msk.msra.mxu0 %vm307_vm0, %v1176_v16 }
  0xc3   : > { %1468 = vmatmul.msk.f32.gmra.mxu2 %vm294_vm1, %v1463_v9  ;;  %1475 = vmatmul.msk.f32.vlgmr.msra.gmra.mxu3 %vm348_vm2, %v1471_v10  ;;  %v1542_v9 = vld [vmem:[%s2024_s2 + $0xf8] sm:$0xff]  ;;  %v277_v10 = vpop.permute.xlu1 %276 }
  0xc4   : > { %1492 = vmatmul.msk.f32.vlgmr.msra.gmra.mxu1 %vm348_vm2, %v1488_v6  ;;  %1154 = vmatpush.msra.mxu3 %v1068_v11  ;;  %v1559_v6 = vld [vmem:[%s2024_s2 + $0x118] sm:$0xff] }
  0xc5   : > { %1485 = vmatmul.msk.f32.gmra.mxu0 %vm294_vm1, %v1480_v12  ;;  %1266 = vmatpush.msra.mxu1 %v1180_v17 }
  0xcb   : > { %1469 = vmatmul.msk.f32.gmra.mxu2 %vm294_vm1, %v1464_v18  ;;  %1476 = vmatmul.msk.f32.gmra.mxu3 %vm348_vm2, %v1472_v19 }
  0xcc   : > { %1493 = vmatmul.msk.f32.gmra.mxu1 %vm348_vm2, %v1489_v20 }
  0xcd   : > { %1486 = vmatmul.msk.f32.gmra.mxu0 %vm294_vm1, %v1481_v21 }
  0xd3   : > { %1470 = vmatmul.msk.f32.gmra.mxu2 %vm294_vm1, %v1465_v22  ;;  %1477 = vmatmul.msk.f32.gmra.mxu3 %vm348_vm2, %v1473_v23 }
  0xd4   : > { %1494 = vmatmul.msk.f32.gmra.mxu1 %vm348_vm2, %v1490_v24 }
  0xd5   : > { %1487 = vmatmul.msk.f32.gmra.mxu0 %vm294_vm1, %v1482_v25 }
  0xdb   : > { %1478 = vmatmul.msk.f32.gmra.mxu3 %vm348_vm2, %v1474_v26  ;;  %1501 = vmatmul.msk.f32.vlgmr.msrb.gmra.mxu2 %vm294_vm1, %v1496_v27 }
  0xdc   : > { %1495 = vmatmul.msk.f32.gmra.mxu1 %vm348_vm2, %v1491_v28 }
  0xdd   : > { %1518 = vmatmul.msk.f32.vlgmr.msrb.gmra.mxu0 %vm294_vm1, %v1513_v29 }
  0xe3   : > { %1502 = vmatmul.msk.f32.gmra.mxu2 %vm294_vm1, %v1497_v30  ;;  %1509 = vmatmul.msk.f32.vlgmr.msrb.gmra.mxu3 %vm348_vm2, %v1505_v31 }
  0xe4   : > { %1526 = vmatmul.msk.f32.vlgmr.msrb.gmra.mxu1 %vm348_vm2, %v1522_v32 }
  0xe5   : > { %1519 = vmatmul.msk.f32.gmra.mxu0 %vm294_vm1, %v1514_v33 }
  0xeb   : > { %1503 = vmatmul.msk.f32.gmra.mxu2 %vm294_vm1, %v1498_v34  ;;  %1510 = vmatmul.msk.f32.gmra.mxu3 %vm348_vm2, %v1506_v35 }
  0xec   : > { %1527 = vmatmul.msk.f32.gmra.mxu1 %vm348_vm2, %v1523_v36 }
  0xed   : > { %1520 = vmatmul.msk.f32.gmra.mxu0 %vm294_vm1, %v1515_v37 }
  0xf3   : > { %1504 = vmatmul.msk.f32.gmra.mxu2 %vm294_vm1, %v1499_v38  ;;  %1511 = vmatmul.msk.f32.gmra.mxu3 %vm348_vm2, %v1507_v39 }
  0xf4   : > { %1528 = vmatmul.msk.f32.gmra.mxu1 %vm348_vm2, %v1524_v40 }
  0xf5   : > { %1521 = vmatmul.msk.f32.gmra.mxu0 %vm294_vm1, %v1516_v41 }
  0xfb   : > { %1512 = vmatmul.msk.f32.gmra.mxu3 %vm348_vm2, %v1508_v42  ;;  %1535 = vmatmul.msk.f32.vlgmr.msra.gmra.mxu2 %vm294_vm1, %v1530_v43 }
  0xfc   : > { %1529 = vmatmul.msk.f32.gmra.mxu1 %vm348_vm2, %v1525_v44 }
  0xfd   : > { %1552 = vmatmul.msk.f32.vlgmr.msra.gmra.mxu0 %vm294_vm1, %v1547_v45 }
 0x103   : > { %1536 = vmatmul.msk.f32.gmra.mxu2 %vm294_vm1, %v1531_v46  ;;  %1543 = vmatmul.msk.f32.vlgmr.msra.gmra.mxu3 %vm348_vm2, %v1539_v47 }
 0x104   : > { %1560 = vmatmul.msk.f32.vlgmr.msra.gmra.mxu1 %vm348_vm2, %v1556_v48 }
 0x105   : > { %1553 = vmatmul.msk.f32.gmra.mxu0 %vm294_vm1, %v1548_v49 }
 0x108   : > { %v328_v53 = vpop.f32.mrf.mxu0 }
 0x109   : > { %v340_v57 = vadd.f32 %v328_v53, %v262_v55 }
 0x10b   : > { %1537 = vmatmul.msk.f32.gmra.mxu2 %vm294_vm1, %v1532_v50  ;;  %1544 = vmatmul.msk.f32.gmra.mxu3 %vm348_vm2, %v1540_v51 }
 0x10c   : > { %1561 = vmatmul.msk.f32.gmra.mxu1 %vm348_vm2, %v1557_v52 }
 0x10d   : > { %1554 = vmatmul.msk.f32.gmra.mxu0 %vm294_vm1, %v1549_v54 }
 0x10e   : > { %v334_v56 = vpop.f32.mrf.mxu2 }
 0x10f   : > { %v342_v2 = vadd.f32 %v334_v56, %v272_v60 }
 0x111   : > { %v378_v61 = vpop.f32.mrf.mxu1 }
 0x112   : > { %v390_v63 = vadd.f32 %v378_v61, %v340_v57  ;;  %v331_v0 = vpop.f32.mrf.mxu0 }
 0x113   : > { %1538 = vmatmul.msk.f32.gmra.mxu2 %vm294_vm1, %v1533_v58  ;;  %1545 = vmatmul.msk.f32.gmra.mxu3 %vm348_vm2, %v1541_v59  ;;  %v341_v7 = vadd.f32 %v331_v0, %v267_v3 }
 0x114   : > { %1562 = vmatmul.msk.f32.gmra.mxu1 %vm348_vm2, %v1558_v62 }
 0x115   : > { %1555 = vmatmul.msk.f32.gmra.mxu0 %vm294_vm1, %v1550_v1 }
 0x116   : > { %v337_v4 = vpop.f32.mrf.mxu2  ;;  %v384_v5 = vpop.f32.mrf.mxu3 }
 0x117   : > { %v392_v8 = vadd.f32 %v384_v5, %v342_v2  ;;  %v343_v14 = vadd.f32 %v337_v4, %v277_v10 }
 0x119   : > { %v381_v11 = vpop.f32.mrf.mxu1 }
 0x11a   : > { %v391_v12 = vadd.f32 %v381_v11, %v341_v7  ;;  %v552_v13 = vpop.f32.mrf.mxu0 }
 0x11b   : > { %1546 = vmatmul.msk.f32.gmra.mxu3 %vm348_vm2, %v1542_v9 }
 0x11c   : > { %1563 = vmatmul.msk.f32.gmra.mxu1 %vm348_vm2, %v1559_v6 }
 0x11e   : > { %v387_v15 = vpop.f32.mrf.mxu3  ;;  %v440_v16 = vpop.f32.mrf.mxu2 }
 0x11f   : > { %v393_v17 = vadd.f32 %v387_v15, %v343_v14  ;;  %v452_v18 = vadd.f32 %v440_v16, %v390_v63 }
 0x121   : > { %v602_v19 = vpop.f32.mrf.mxu1 }
 0x122   : > { %v555_v20 = vpop.f32.mrf.mxu0 }
 0x126   : > { %v443_v21 = vpop.f32.mrf.mxu2  ;;  %v490_v22 = vpop.f32.mrf.mxu3 }
 0x127   : > { %v453_v23 = vadd.f32 %v443_v21, %v391_v12  ;;  %v502_v24 = vadd.f32 %v490_v22, %v452_v18 }
 0x129   : > { %v564_v25 = vadd.f32 %v552_v13, %v502_v24  ;;  %v605_v26 = vpop.f32.mrf.mxu1 }
 0x12a   : > { %v558_v27 = vpop.f32.mrf.mxu0 }
 0x12b   : > { %v614_v28 = vadd.f32 %v602_v19, %v564_v25 }
 0x12e   : > { %v446_v29 = vpop.f32.mrf.mxu2  ;;  %v493_v30 = vpop.f32.mrf.mxu3 }
 0x12f   : > { %v454_v31 = vadd.f32 %v446_v29, %v392_v8  ;;  %v503_v32 = vadd.f32 %v493_v30, %v453_v23 }
 0x131   : > { %v565_v33 = vadd.f32 %v555_v20, %v503_v32  ;;  %v608_v34 = vpop.f32.mrf.mxu1 }
 0x132   : > { %v561_v35 = vpop.f32.mrf.mxu0 }
 0x133   : > { %v615_v36 = vadd.f32 %v605_v26, %v565_v33 }
 0x136   : > { %v449_v37 = vpop.f32.mrf.mxu2  ;;  %v496_v38 = vpop.f32.mrf.mxu3 }
 0x137   : > { %v455_v39 = vadd.f32 %v449_v37, %v393_v17  ;;  %v504_v40 = vadd.f32 %v496_v38, %v454_v31 }
 0x139   : > { %v566_v41 = vadd.f32 %v558_v27, %v504_v40  ;;  %v611_v42 = vpop.f32.mrf.mxu1 }
 0x13a   : > { %v770_v43 = vpop.f32.mrf.mxu0 }
 0x13b   : > { %v616_v44 = vadd.f32 %v608_v34, %v566_v41 }
 0x13e   : > { %v499_v45 = vpop.f32.mrf.mxu3  ;;  %v664_v46 = vpop.f32.mrf.mxu2 }
 0x13f   : > { %v505_v47 = vadd.f32 %v499_v45, %v455_v39  ;;  %v676_v9 = vadd.f32 %v664_v46, %v614_v28 }
 0x141   : > { %v567_v48 = vadd.f32 %v561_v35, %v505_v47  ;;  %v820_v49 = vpop.f32.mrf.mxu1 }
 0x142   : > { %v773_v50 = vpop.f32.mrf.mxu0 }
 0x143   : > { %v617_v51 = vadd.f32 %v611_v42, %v567_v48 }
 0x146   : > { %v667_v52 = vpop.f32.mrf.mxu2  ;;  %v714_v53 = vpop.f32.mrf.mxu3 }
 0x147   : > { %v726_v6 = vadd.f32 %v714_v53, %v676_v9  ;;  %v677_v14 = vadd.f32 %v667_v52, %v615_v36 }
 0x149   : > { %v823_v54 = vpop.f32.mrf.mxu1  ;;  %v782_v13 = vadd.f32 %v770_v43, %v726_v6 }
 0x14a   : > { %v776_v55 = vpop.f32.mrf.mxu0 }
 0x14b   : > { %v832_v18 = vadd.f32 %v820_v49, %v782_v13 }
 0x14e   : > { %v670_v56 = vpop.f32.mrf.mxu2  ;;  %v717_v57 = vpop.f32.mrf.mxu3 }
 0x14f   : > { %v727_v19 = vadd.f32 %v717_v57, %v677_v14  ;;  %v678_v24 = vadd.f32 %v670_v56, %v616_v44 }
 0x151   : > { %v826_v58 = vpop.f32.mrf.mxu1  ;;  %v783_v22 = vadd.f32 %v773_v50, %v727_v19 }
 0x152   : > { %v779_v59 = vpop.f32.mrf.mxu0 }
 0x153   : > { %v833_v27 = vadd.f32 %v823_v54, %v783_v22 }
 0x156   : > { %v673_v60 = vpop.f32.mrf.mxu2  ;;  %v720_v61 = vpop.f32.mrf.mxu3 }
 0x157   : > { %v728_v28 = vadd.f32 %v720_v61, %v678_v24  ;;  %v679_v36 = vadd.f32 %v673_v60, %v617_v51 }
 0x159   : > { %v829_v62 = vpop.f32.mrf.mxu1  ;;  %v784_v33 = vadd.f32 %v776_v55, %v728_v28 }
 0x15a   : > { %v994_v63 = vpop.f32.mrf.mxu0 }
 0x15b   : > { %v834_v40 = vadd.f32 %v826_v58, %v784_v33 }
 0x15e   : > { %v723_v0 = vpop.f32.mrf.mxu3  ;;  %v882_v1 = vpop.f32.mrf.mxu2 }
 0x15f   : > { %v894_v20 = vadd.f32 %v882_v1, %v832_v18  ;;  %v729_v41 = vadd.f32 %v723_v0, %v679_v36 }
 0x161   : > { %v1044_v2 = vpop.f32.mrf.mxu1  ;;  %v785_v47 = vadd.f32 %v779_v59, %v729_v41 }
 0x162   : > { %v997_v3 = vpop.f32.mrf.mxu0 }
 0x163   : > { %v835_v56 = vadd.f32 %v829_v62, %v785_v47 }
 0x166   : > { %v885_v4 = vpop.f32.mrf.mxu2  ;;  %v932_v5 = vpop.f32.mrf.mxu3 }
 0x167   : > { %v944_v23 = vadd.f32 %v932_v5, %v894_v20  ;;  %v895_v31 = vadd.f32 %v885_v4, %v833_v27 }
 0x169   : > { %v1047_v7 = vpop.f32.mrf.mxu1  ;;  %v1006_v29 = vadd.f32 %v994_v63, %v944_v23 }
 0x16a   : > { %v1000_v8 = vpop.f32.mrf.mxu0 }
 0x16b   : > { %v1056_v34 = vadd.f32 %v1044_v2, %v1006_v29 }
 0x16e   : > { %v888_v10 = vpop.f32.mrf.mxu2  ;;  %v935_v11 = vpop.f32.mrf.mxu3 }
 0x16f   : > { %v945_v35 = vadd.f32 %v935_v11, %v895_v31  ;;  %v896_v44 = vadd.f32 %v888_v10, %v834_v40 }
 0x171   : > { %v1050_v12 = vpop.f32.mrf.mxu1  ;;  %v1007_v42 = vadd.f32 %v997_v3, %v945_v35 }
 0x172   : > { %v1003_v15 = vpop.f32.mrf.mxu0 }
 0x173   : > { %v1057_v48 = vadd.f32 %v1047_v7, %v1007_v42 }
 0x176   : > { %v891_v16 = vpop.f32.mrf.mxu2  ;;  %v938_v17 = vpop.f32.mrf.mxu3 }
 0x177   : > { %v946_v49 = vadd.f32 %v938_v17, %v896_v44  ;;  %v897_v58 = vadd.f32 %v891_v16, %v835_v56 }
 0x179   : > { %v1053_v21 = vpop.f32.mrf.mxu1  ;;  %v1008_v51 = vadd.f32 %v1000_v8, %v946_v49 }
 0x17a   : > { %v1218_v30 = vpop.f32.mrf.mxu0 }
 0x17b   : > { %v1058_v63 = vadd.f32 %v1050_v12, %v1008_v51 }
 0x17e   : > { %v941_v25 = vpop.f32.mrf.mxu3  ;;  %v1106_v26 = vpop.f32.mrf.mxu2 }
 0x17f   : > { %v1118_v37 = vadd.f32 %v1106_v26, %v1056_v34  ;;  %v947_v0 = vadd.f32 %v941_v25, %v897_v58 }
 0x181   : > { %v1268_v32 = vpop.f32.mrf.mxu1  ;;  %v1009_v10 = vadd.f32 %v1003_v15, %v947_v0 }
 0x182   : > { %v1221_v46 = vpop.f32.mrf.mxu0 }
 0x183   : > { %v1059_v6 = vadd.f32 %v1053_v21, %v1009_v10 }
 0x186   : > { %v1109_v38 = vpop.f32.mrf.mxu2  ;;  %v1156_v39 = vpop.f32.mrf.mxu3 }
 0x187   : > { %v1168_v43 = vadd.f32 %v1156_v39, %v1118_v37  ;;  %v1119_v53 = vadd.f32 %v1109_v38, %v1057_v48 }
 0x189   : > { %v1230_v45 = vadd.f32 %v1218_v30, %v1168_v43  ;;  %v1271_v52 = vpop.f32.mrf.mxu1 }
 0x18a   : > { %v1224_v2 = vpop.f32.mrf.mxu0 }
 0x18b   : > { %v1280_v50 = vadd.f32 %v1268_v32, %v1230_v45 }
 0x18d   : > { %v1564_v54 = vmul.f32 -1.442695, %v1280_v50 }
 0x18e   : > { %v1159_v55 = vpop.f32.mrf.mxu3  ;;  %v1112_v60 = vpop.f32.mrf.mxu2 }
 0x18f   : > { %1593 = vpow2.f32 %v1564_v54  ;;  %v1169_v57 = vadd.f32 %v1159_v55, %v1119_v53  ;;  %v1120_v59 = vadd.f32 %v1112_v60, %v1058_v63 }
 0x191   : > { %v1231_v61 = vadd.f32 %v1221_v46, %v1169_v57  ;;  %v1274_v9 = vpop.f32.mrf.mxu1  ;;  %v1342_v46 = vld [vmem:[#allocation3] sm:$0xff] }
 0x192   : > { %v1227_v20 = vpop.f32.mrf.mxu0 }
 0x193   : > { %v1281_v1 = vadd.f32 %v1271_v52, %v1231_v61 }
 0x195   : > { %v1594_v3 = vpop.eup %1593  ;;  %v1565_v4 = vmul.f32 -1.442695, %v1281_v1 }
 0x196   : > { %v1287_v5 = vadd.f32 1.0, %v1594_v3  ;;  %v1162_v7 = vpop.f32.mrf.mxu3  ;;  %v1115_v8 = vpop.f32.mrf.mxu2 }
 0x197   : > { %1595 = vpow2.f32 %v1565_v4  ;;  %v1170_v11 = vadd.f32 %v1162_v7, %v1120_v59  ;;  %v1121_v16 = vadd.f32 %v1115_v8, %v1059_v6 }
 0x198   : > { %1597 = vrcp.f32 %v1287_v5  ;;  %v1299_v29 = vand.u32 2147483648, %v1287_v5  ;;  %vm1293_vm4 = vweird.f32 %v1287_v5  ;;  %v1297_v32 = vand.u32 2147483647, %v1287_v5 }
 0x199   : > { %v1232_v62 = vadd.f32 %v1224_v2, %v1170_v11  ;;  %v1277_v24 = vpop.f32.mrf.mxu1 }
 0x19a   : > { %v1300_v36 = vor.u32 1.1754944e-38, %v1299_v29  ;;  %vm1298_vm6 = vcmp.eq.f32.partialorder %v1297_v32, 8.507059e+37 }
 0x19b   : > { %v1282_v13 = vadd.f32 %v1274_v9, %v1232_v62 }
 0x19d   : > { %v1596_v14 = vpop.eup %1595  ;;  %v1566_v12 = vmul.f32 -1.442695, %v1282_v13 }
 0x19e   : > { %v1598_v17 = vpop.eup %1597  ;;  %v1306_v18 = vadd.f32 1.0, %v1596_v14  ;;  %v1165_v19 = vpop.f32.mrf.mxu3 }
 0x19f   : > { %v1289_v22 = vmul.f32 %v1598_v17, %v1287_v5  ;;  %1599 = vpow2.f32 %v1566_v12  ;;  %v1171_v23 = vadd.f32 %v1165_v19, %v1121_v16  ;;  %vm1294_vm3 = vweird.f32 %v1598_v17 }
 0x1a0   : > { %1601 = vrcp.f32 %v1306_v18  ;;  %vm1295_vm5 = vmor %vm1293_vm4, %vm1294_vm3  ;;  %v1318_v37 = vand.u32 2147483648, %v1306_v18  ;;  %v1316_v41 = vand.u32 2147483647, %v1306_v18  ;;  %vm1312_vm8 = vweird.f32 %v1306_v18 }
 0x1a1   : > { %v1290_v15 = vsub.f32 1.0, %v1289_v22  ;;  %v1233_v25 = vadd.f32 %v1227_v20, %v1171_v23 }
 0x1a2   : > { %v1319_v45 = vor.u32 1.1754944e-38, %v1318_v37  ;;  %vm1317_vm10 = vcmp.eq.f32.partialorder %v1316_v41, 8.507059e+37 }
 0x1a3   : > { %v1283_v26 = vadd.f32 %v1277_v24, %v1233_v25  ;;  %v1291_v27 = vmul.f32 %v1598_v17, %v1290_v15 }
 0x1a5   : > { %v1600_v28 = vpop.eup %1599  ;;  %v1292_v21 = vadd.f32 %v1598_v17, %v1291_v27  ;;  %1603 = vtanh.f32 %v1283_v26 }
 0x1a6   : > { %v1602_v30 = vpop.eup %1601  ;;  %v1325_v31 = vadd.f32 1.0, %v1600_v28 }
 0x1a7   : > { %v1308_v33 = vmul.f32 %v1602_v30, %v1306_v18  ;;  %v1296_v34 = vsel %vm1295_vm5, %v1598_v17, %v1292_v21  ;;  %vm1313_vm7 = vweird.f32 %v1602_v30 }
 0x1a8   : > { %1605 = vrcp.f32 %v1325_v31  ;;  %v1301_v40 = vsel %vm1298_vm6, %v1300_v36, %v1296_v34  ;;  %vm1314_vm9 = vmor %vm1312_vm8, %vm1313_vm7  ;;  %v1337_v56 = vand.u32 2147483648, %v1325_v31  ;;  %vm1331_vm12 = vweird.f32 %v1325_v31 }
 0x1a9   : > { %v1309_v35 = vsub.f32 1.0, %v1308_v33  ;;  %v1335_v51 = vand.u32 2147483647, %v1325_v31 }
 0x1aa   : > { %v1338_v60 = vor.u32 1.1754944e-38, %v1337_v56 }
 0x1ab   : > { %v1604_v38 = vpop.eup %1603  ;;  %v1310_v39 = vmul.f32 %v1602_v30, %v1309_v35  ;;  %vm1336_vm14 = vcmp.eq.f32.partialorder %v1335_v51, 8.507059e+37 }
 0x1ac   : > { %v1344_v42 = vmul.f32 %v1604_v38, %v1301_v40 }
 0x1ad   : > { %v1311_v43 = vadd.f32 %v1602_v30, %v1310_v39 }
 0x1ae   : > { %v1606_v44 = vpop.eup %1605 }
 0x1af   : > { %v1327_v47 = vmul.f32 %v1606_v44, %v1325_v31  ;;  %v1315_v48 = vsel %vm1314_vm9, %v1602_v30, %v1311_v43  ;;  %vm1332_vm11 = vweird.f32 %v1606_v44 }
 0x1b0   : > { %v1320_v49 = vsel %vm1317_vm10, %v1319_v45, %v1315_v48  ;;  %vm1333_vm13 = vmor %vm1331_vm12, %vm1332_vm11 }
 0x1b1   : > { %v1328_v50 = vsub.f32 1.0, %v1327_v47  ;;  %v1343_v52 = vmul.f32 %v1342_v46, %v1320_v49 }
 0x1b3   : > { %v1329_v53 = vmul.f32 %v1606_v44, %v1328_v50  ;;  %v1345_v54 = vadd.f32 %v1344_v42, %v1343_v52 }
 0x1b5   : > { %v1330_v55 = vadd.f32 %v1606_v44, %v1329_v53  ;;  %1607 = vtanh.f32 %v1345_v54  ;;  %1349 = vst [vmem:[#allocation3] sm:$0xff] %v1345_v54 }
 0x1b6   : > { %1351 = vst [vmem:[%s2028_s6] sm:$0xff] %v1345_v54 }
 0x1b7   : > { %v1334_v57 = vsel %vm1333_vm13, %v1606_v44, %v1330_v55 }
 0x1b8   : > { %v1339_v61 = vsel %vm1336_vm14, %v1338_v60, %v1334_v57 }
 0x1bb   : > { %v1608_v58 = vpop.eup %1607 }
 0x1bc   : > { %v1347_v63 = vmul.f32 %v1608_v58, %v1339_v61 }
 0x1be   : > { %1348 = vst [vmem:[#allocation2] sm:$0xff] %v1347_v63 }
 0x1bf   : > { %1350 = vst [vmem:[%s1676_s7] sm:$0xff] %v1347_v63 }
 0x1c0 PF: > { %s17_s21 = sadd.s32 1, %s1615_s21  }
 0x1c1   : > { %p14_p5 = scmp.ge.s32.totalorder %s17_s21, 6  }
 0x1c3   :  { %16 = sbr.rel (!%p14_p5) target bundleno = 1 (0x1), region = 98 }

</bundles_post_ra>
